<compile_context>
chip_gen: v7x
topology: tpu7x:2x2x1
jax: 0.10.0
libtpu: 0.0.40
codegen_flags: <defaults>
</compile_context>

<pallas_src>
import jax
import jax.numpy as jnp
from jax.experimental import pallas as pl
from jax.experimental.pallas import tpu as pltpu

FEAT0_CH = 10                      # (8+3) - 1
N_FREQS = 4                        # get_embedder(4, 1)
EMBED_DIM = 1 + 2 * N_FREQS        # 9
FEAT_CH = FEAT0_CH + EMBED_DIM     # 19
HID_N = 16


def aggregator_kernel(feats_ref, scores3_ref, scores2_ref,
                      w_ref, b_ref, wc2_ref, wf_ref, sc_ref,
                      gfeat_ref, colorw_ref):
    n_pts = feats_ref.shape[0]

    w = w_ref[...]                     # [32, 19] fused (color | global) weight^T
    b = b_ref[...]                     # [32, 1]
    wc2 = wc2_ref[...]                 # [16, 1]  (already divided by 0.9)
    wf = wf_ref[...]                   # [16, 1]
    bc2 = sc_ref[0, 0]                 # scalar   (already divided by 0.9)
    bf = sc_ref[0, 1]                  # scalar

    feats0 = feats_ref[...]            # [N, 10, TB]
    s3 = scores3_ref[...]              # [N, 1, TB]
    scores = scores2_ref[...]          # [N, TB]

    # --- NeRF positional embedding of the score, vectorised over freqs ------
    a2 = s3 + s3
    a4 = a2 + a2
    a8 = a4 + a4
    ang = jnp.concatenate([s3, a2, a4, a8], axis=1)        # [N, 4, TB]
    sin_a = jnp.sin(ang)
    cos_a = jnp.cos(ang)

    # kernel channel order: feats0(10), s, sin(1,2,4,8*s), cos(1,2,4,8*s)
    # (the wrapper permutes the fused weight rows to match this order)
    x_all = jnp.concatenate([feats0, s3, sin_a, cos_a], axis=1)   # [N, 19, TB]

    logit_rows = []
    fwlog_rows = []
    g_rows = []
    for n in range(n_pts):
        # fused color/global hidden layer: one MXU matmul per point.
        h = jnp.dot(w, x_all[n], preferred_element_type=jnp.float32) + b
        h = jnp.maximum(h, 0.0)                             # [32, TB]
        hc = h[:HID_N]                                      # color hidden  [16, TB]
        hg = h[HID_N:]                                      # global hidden [16, TB]
        g_rows.append(hg)
        # 16 -> 1 projections as VPU multiply + sublane reduce (no 1-wide MXU).
        logit_rows.append(jnp.sum(hc * wc2, axis=0, keepdims=True) + bc2)
        fwlog_rows.append(
            jnp.maximum(jnp.sum(hg * wf, axis=0, keepdims=True) + bf, 0.0))

    logits = jnp.concatenate(logit_rows, axis=0)            # [N, TB]
    fw_log = jnp.concatenate(fwlog_rows, axis=0)            # [N, TB]

    def softmax_pts(x):            # numerically-stable softmax over the point axis
        m = jnp.max(x, axis=0, keepdims=True)
        e = jnp.exp(x - m)
        return e / jnp.sum(e, axis=0, keepdims=True)

    color_w = softmax_pts(logits)             # temperature 0.9 folded into wc2/bc2
    color_w = softmax_pts(color_w * scores)   # temperature 1.0
    feat_w = softmax_pts(fw_log)

    gf = g_rows[0] * feat_w[0:1, :]
    for n in range(1, n_pts):
        gf = gf + g_rows[n] * feat_w[n:n + 1, :]

    gfeat_ref[...] = gf                       # [16, TB]  lane-dense full store
    colorw_ref[...] = color_w                 # [N, TB]   lane-dense full store


def _const_spec(shape):
    zeros = (0,) * len(shape)
    return pl.BlockSpec(shape, lambda i, _z=zeros: _z)


def _prepare_params(params):
    """Fuse / permute / temperature-fold the torch-layout weights."""
    w_c1, b_c1, w_c2, b_c2, w_g, b_g, w_f, b_f = params
    # fuse the two 19->16 linears into one 19->32
    w_fused = jnp.concatenate([w_c1, w_g], axis=1)          # [19, 32]
    b_fused = jnp.concatenate([b_c1, b_g], axis=1)          # [1, 32]
    # reference input-channel order: feats0(10), s, sin1, cos1, sin2, cos2, ...
    # kernel order:                  feats0(10), s, sin1, sin2, sin4, sin8, cos1..cos8
    perm = (list(range(FEAT0_CH)) + [FEAT0_CH]
            + [FEAT0_CH + 1 + 2 * k for k in range(N_FREQS)]
            + [FEAT0_CH + 2 + 2 * k for k in range(N_FREQS)])
    w_fused = w_fused[jnp.array(perm), :]
    w_t = jnp.transpose(w_fused)                            # [32, 19]
    b_col = jnp.transpose(b_fused)                          # [32, 1]
    wc2_col = (w_c2 / 0.9).astype(jnp.float32)              # [16, 1] temp folded
    wf_col = w_f.astype(jnp.float32)                        # [16, 1]
    scalars = jnp.stack([b_c2[0, 0] / 0.9, b_f[0, 0]]).reshape(1, 2).astype(jnp.float32)
    return (w_t.astype(jnp.float32), b_col.astype(jnp.float32),
            wc2_col, wf_col, scalars)


def low_level_aggregator(feats0, scores, params, *, tb=512):
    B, N, c0 = feats0.shape
    assert c0 == FEAT0_CH
    if tb > B:
        tb = B
    assert B % tb == 0, "batch must be divisible by tile size"
    assert tb % 128 == 0 or tb == B, "tile must be lane-aligned (multiple of 128)"

    w_t, b_col, wc2_col, wf_col, scalars = _prepare_params(params)

    # channels-major, lane-dense layout (layout plumbing done by XLA outside).
    feats_t = jnp.transpose(feats0, (1, 2, 0))              # [N, 10, B]
    scores_2d = jnp.transpose(scores[:, :, 0], (1, 0))      # [N, B]
    scores_3d = scores_2d[:, None, :]                       # [N, 1, B]

    out_shape = (jax.ShapeDtypeStruct((HID_N, B), jnp.float32),   # gfeat^T
                 jax.ShapeDtypeStruct((N, B), jnp.float32))       # color_w^T

    cost = pl.CostEstimate(
        flops=2 * B * N * FEAT_CH * (2 * HID_N) + 6 * B * N * HID_N,
        transcendentals=(2 * N_FREQS + 3) * B * N,
        bytes_accessed=4 * (B * N * (FEAT0_CH + 2) + HID_N * B + N * B),
    )

    gfeat_t, colorw_t = pl.pallas_call(
        aggregator_kernel,
        out_shape=out_shape,
        grid_spec=pltpu.PrefetchScalarGridSpec(
            num_scalar_prefetch=0,
            grid=(B // tb,),
            in_specs=[
                pl.BlockSpec((N, FEAT0_CH, tb), lambda i: (0, 0, i)),
                pl.BlockSpec((N, 1, tb), lambda i: (0, 0, i)),
                pl.BlockSpec((N, tb), lambda i: (0, i)),
                _const_spec((2 * HID_N, FEAT_CH)),
                _const_spec((2 * HID_N, 1)),
                _const_spec((HID_N, 1)),
                _const_spec((HID_N, 1)),
                pl.BlockSpec((1, 2), lambda i: (0, 0),
                             memory_space=pltpu.MemorySpace.SMEM),
            ],
            out_specs=[
                pl.BlockSpec((HID_N, tb), lambda i: (0, i)),
                pl.BlockSpec((N, tb), lambda i: (0, i)),
            ],
        ),
        compiler_params=pltpu.CompilerParams(
            dimension_semantics=("parallel",)),
        cost_estimate=cost,
    )(feats_t, scores_3d, scores_2d, w_t, b_col, wc2_col, wf_col, scalars)

    global_feats = jnp.transpose(gfeat_t)                   # [B, 16]
    color_w = jnp.transpose(colorw_t, (1, 0))[:, :, None]   # [B, N, 1]
    return global_feats, color_w


def reference(feats0, scores, params):
    """Pure-JAX reference mirroring the PyTorch forward pass."""
    w_c1, b_c1, w_c2, b_c2, w_g, b_g, w_f, b_f = params
    parts = [scores]
    for k in range(N_FREQS):
        f = float(2 ** k)
        parts += [jnp.sin(scores * f), jnp.cos(scores * f)]
    emb = jnp.concatenate(parts, axis=-1)
    feats = jnp.concatenate([feats0, emb], axis=-1)

    def softmax2(x):
        m = jnp.max(x, axis=-2, keepdims=True)
        e = jnp.exp(x - m)
        return e / jnp.sum(e, axis=-2, keepdims=True)

    h = jnp.maximum(feats @ w_c1 + b_c1, 0.0)
    logits = h @ w_c2 + b_c2
    cw = softmax2(logits / 0.9)
    cw = softmax2(cw * scores)
    g = jnp.maximum(feats @ w_g + b_g, 0.0)
    fw = softmax2(jnp.maximum(g @ w_f + b_f, 0.0))
    gf = jnp.sum(g * fw, axis=-2)
    return gf, cw


if __name__ == "__main__":
    key = jax.random.PRNGKey(0)
    ks = jax.random.split(key, 10)

    B, N = 256, 8
    feats0 = jax.random.normal(ks[0], (B, N, FEAT0_CH), jnp.float32)
    scores = jax.random.uniform(ks[1], (B, N, 1), jnp.float32)

    def lin(kw, kb, cin, cout):
        w = jax.random.normal(kw, (cin, cout), jnp.float32) * 0.1
        b = jax.random.normal(kb, (1, cout), jnp.float32) * 0.01
        return w, b

    w_c1, b_c1 = lin(ks[2], ks[3], FEAT_CH, 16)     # color_weights[0]
    w_c2, b_c2 = lin(ks[4], ks[5], 16, 1)           # color_weights[2]
    w_g, b_g = lin(ks[6], ks[7], FEAT_CH, HID_N)    # global_feat[0]
    w_f, b_f = lin(ks[8], ks[9], HID_N, 1)          # feat_weights[0]
    params = (w_c1, b_c1, w_c2, b_c2, w_g, b_g, w_f, b_f)

    # tb=128 keeps the lane axis dense and the grid at 2 steps for this demo;
    # real workloads should use tb=512..2048.
    gf, cw = low_level_aggregator(feats0, scores, params, tb=128)
    jax.block_until_ready((gf, cw))

    gf_ref, cw_ref = reference(feats0, scores, params)
    assert jnp.allclose(gf, gf_ref, atol=1e-4, rtol=1e-4), \
        float(jnp.max(jnp.abs(gf - gf_ref)))
    assert jnp.allclose(cw, cw_ref, atol=1e-4, rtol=1e-4), \
        float(jnp.max(jnp.abs(cw - cw_ref)))
    print("KERNEL_OK")
</pallas_src>

<mosaic_0001>
module attributes {stable_mosaic.version = 11 : i64} {
  func.func @aggregator_kernel(%arg0: i32, %arg1: memref<8x10x128xf32, #tpu.memory_space<vmem>>, %arg2: memref<8x1x128xf32, #tpu.memory_space<vmem>>, %arg3: memref<8x128xf32, #tpu.memory_space<vmem>>, %arg4: memref<32x19xf32, #tpu.memory_space<vmem>>, %arg5: memref<32x1xf32, #tpu.memory_space<vmem>>, %arg6: memref<16x1xf32, #tpu.memory_space<vmem>>, %arg7: memref<16x1xf32, #tpu.memory_space<vmem>>, %arg8: memref<1x2xf32, #tpu.memory_space<smem>>, %arg9: memref<16x128xf32, #tpu.memory_space<vmem>>, %arg10: memref<8x128xf32, #tpu.memory_space<vmem>>) attributes {dimension_semantics = [#tpu.dimension_semantics<parallel>], iteration_bounds = array<i64: 2>, scalar_prefetch = 0 : i64, scratch_operands = 0 : i64, tpu.core_type = #tpu.core_type<tc>, window_params = [{transform_indices = @transform_0, window_bounds = array<i64: 8, 10, 128>}, {transform_indices = @transform_1, window_bounds = array<i64: 8, 1, 128>}, {transform_indices = @transform_2, window_bounds = array<i64: 8, 128>}, {pipeline_mode = #tpu.pipeline_mode<synchronous>, transform_indices = @transform_3, window_bounds = array<i64: 32, 19>}, {pipeline_mode = #tpu.pipeline_mode<synchronous>, transform_indices = @transform_4, window_bounds = array<i64: 32, 1>}, {pipeline_mode = #tpu.pipeline_mode<synchronous>, transform_indices = @transform_5, window_bounds = array<i64: 16, 1>}, {pipeline_mode = #tpu.pipeline_mode<synchronous>, transform_indices = @transform_6, window_bounds = array<i64: 16, 1>}, {transform_indices = @transform_7, window_bounds = array<i64: 1, 2>}, {transform_indices = @transform_8, window_bounds = array<i64: 16, 128>}, {transform_indices = @transform_9, window_bounds = array<i64: 8, 128>}]} {
    %c0 = arith.constant 0 : index
    %c0_0 = arith.constant 0 : index
    %0 = vector.load %arg4[%c0, %c0_0] : memref<32x19xf32, #tpu.memory_space<vmem>>, vector<32x19xf32>
    %c0_1 = arith.constant 0 : index
    %c0_2 = arith.constant 0 : index
    %1 = vector.load %arg5[%c0_1, %c0_2] : memref<32x1xf32, #tpu.memory_space<vmem>>, vector<32x1xf32>
    %c0_3 = arith.constant 0 : index
    %c0_4 = arith.constant 0 : index
    %2 = vector.load %arg6[%c0_3, %c0_4] : memref<16x1xf32, #tpu.memory_space<vmem>>, vector<16x1xf32>
    %c0_5 = arith.constant 0 : index
    %c0_6 = arith.constant 0 : index
    %3 = vector.load %arg7[%c0_5, %c0_6] : memref<16x1xf32, #tpu.memory_space<vmem>>, vector<16x1xf32>
    %c0_7 = arith.constant 0 : index
    %c0_8 = arith.constant 0 : index
    %4 = memref.load %arg8[%c0_7, %c0_8] : memref<1x2xf32, #tpu.memory_space<smem>>
    %c0_9 = arith.constant 0 : index
    %c1 = arith.constant 1 : index
    %5 = memref.load %arg8[%c0_9, %c1] : memref<1x2xf32, #tpu.memory_space<smem>>
    %c0_10 = arith.constant 0 : index
    %c0_11 = arith.constant 0 : index
    %c0_12 = arith.constant 0 : index
    %6 = vector.load %arg1[%c0_10, %c0_11, %c0_12] : memref<8x10x128xf32, #tpu.memory_space<vmem>>, vector<8x10x128xf32>
    %c0_13 = arith.constant 0 : index
    %c0_14 = arith.constant 0 : index
    %c0_15 = arith.constant 0 : index
    %7 = vector.load %arg2[%c0_13, %c0_14, %c0_15] : memref<8x1x128xf32, #tpu.memory_space<vmem>>, vector<8x1x128xf32>
    %c0_16 = arith.constant 0 : index
    %c0_17 = arith.constant 0 : index
    %8 = vector.load %arg3[%c0_16, %c0_17] : memref<8x128xf32, #tpu.memory_space<vmem>>, vector<8x128xf32>
    %9 = arith.addf %7, %7 : vector<8x1x128xf32>
    %10 = arith.addf %9, %9 : vector<8x1x128xf32>
    %11 = arith.addf %10, %10 : vector<8x1x128xf32>
    %12 = tpu.concatenate %7, %9, %10, %11 in 1 : vector<8x1x128xf32>, vector<8x1x128xf32>, vector<8x1x128xf32>, vector<8x1x128xf32> -> vector<8x4x128xf32>
    %13 = math.sin %12 : vector<8x4x128xf32>
    %14 = math.cos %12 : vector<8x4x128xf32>
    %15 = tpu.concatenate %6, %7, %13, %14 in 1 : vector<8x10x128xf32>, vector<8x1x128xf32>, vector<8x4x128xf32>, vector<8x4x128xf32> -> vector<8x19x128xf32>
    %16 = vector.extract_strided_slice %15 {offsets = [0, 0, 0], sizes = [1, 19, 128], strides = [1, 1, 1]} : vector<8x19x128xf32> to vector<1x19x128xf32>
    %17 = vector.shape_cast %16 : vector<1x19x128xf32> to vector<19x128xf32>
    %cst = arith.constant dense<0.000000e+00> : vector<32x128xf32>
    %18 = tpu.matmul %0, %17, %cst {dimension_numbers = #tpu.dot_dimension_numbers<[1], [0], [0], [1], [0, 0, 1, 1], [], []>} : vector<32x19xf32>, vector<19x128xf32>, vector<32x128xf32> -> vector<32x128xf32>
    %19 = vector.broadcast %1 : vector<32x1xf32> to vector<32x128xf32>
    %20 = arith.addf %18, %19 : vector<32x128xf32>
    %cst_18 = arith.constant 0.000000e+00 : f32
    %21 = vector.broadcast %cst_18 : f32 to vector<32x128xf32>
    %22 = arith.maximumf %20, %21 : vector<32x128xf32>
    %23 = vector.extract_strided_slice %22 {offsets = [0, 0], sizes = [16, 128], strides = [1, 1]} : vector<32x128xf32> to vector<16x128xf32>
    %24 = vector.extract_strided_slice %22 {offsets = [16, 0], sizes = [16, 128], strides = [1, 1]} : vector<32x128xf32> to vector<16x128xf32>
    %25 = vector.broadcast %2 : vector<16x1xf32> to vector<16x128xf32>
    %26 = arith.mulf %23, %25 : vector<16x128xf32>
    %cst_19 = arith.constant dense<0.000000e+00> : vector<128xf32>
    %27 = vector.multi_reduction <add>, %26, %cst_19 [0] : vector<16x128xf32> to vector<128xf32>
    %28 = vector.shape_cast %27 : vector<128xf32> to vector<1x128xf32>
    %29 = vector.broadcast %4 : f32 to vector<1x128xf32>
    %30 = arith.addf %28, %29 : vector<1x128xf32>
    %31 = vector.broadcast %3 : vector<16x1xf32> to vector<16x128xf32>
    %32 = arith.mulf %24, %31 : vector<16x128xf32>
    %cst_20 = arith.constant dense<0.000000e+00> : vector<128xf32>
    %33 = vector.multi_reduction <add>, %32, %cst_20 [0] : vector<16x128xf32> to vector<128xf32>
    %34 = vector.shape_cast %33 : vector<128xf32> to vector<1x128xf32>
    %35 = vector.broadcast %5 : f32 to vector<1x128xf32>
    %36 = arith.addf %34, %35 : vector<1x128xf32>
    %cst_21 = arith.constant 0.000000e+00 : f32
    %37 = vector.broadcast %cst_21 : f32 to vector<1x128xf32>
    %38 = arith.maximumf %36, %37 : vector<1x128xf32>
    %39 = vector.extract_strided_slice %15 {offsets = [1, 0, 0], sizes = [1, 19, 128], strides = [1, 1, 1]} : vector<8x19x128xf32> to vector<1x19x128xf32>
    %40 = vector.shape_cast %39 : vector<1x19x128xf32> to vector<19x128xf32>
    %cst_22 = arith.constant dense<0.000000e+00> : vector<32x128xf32>
    %41 = tpu.matmul %0, %40, %cst_22 {dimension_numbers = #tpu.dot_dimension_numbers<[1], [0], [0], [1], [0, 0, 1, 1], [], []>} : vector<32x19xf32>, vector<19x128xf32>, vector<32x128xf32> -> vector<32x128xf32>
    %42 = vector.broadcast %1 : vector<32x1xf32> to vector<32x128xf32>
    %43 = arith.addf %41, %42 : vector<32x128xf32>
    %cst_23 = arith.constant 0.000000e+00 : f32
    %44 = vector.broadcast %cst_23 : f32 to vector<32x128xf32>
    %45 = arith.maximumf %43, %44 : vector<32x128xf32>
    %46 = vector.extract_strided_slice %45 {offsets = [0, 0], sizes = [16, 128], strides = [1, 1]} : vector<32x128xf32> to vector<16x128xf32>
    %47 = vector.extract_strided_slice %45 {offsets = [16, 0], sizes = [16, 128], strides = [1, 1]} : vector<32x128xf32> to vector<16x128xf32>
    %48 = vector.broadcast %2 : vector<16x1xf32> to vector<16x128xf32>
    %49 = arith.mulf %46, %48 : vector<16x128xf32>
    %cst_24 = arith.constant dense<0.000000e+00> : vector<128xf32>
    %50 = vector.multi_reduction <add>, %49, %cst_24 [0] : vector<16x128xf32> to vector<128xf32>
    %51 = vector.shape_cast %50 : vector<128xf32> to vector<1x128xf32>
    %52 = vector.broadcast %4 : f32 to vector<1x128xf32>
    %53 = arith.addf %51, %52 : vector<1x128xf32>
    %54 = vector.broadcast %3 : vector<16x1xf32> to vector<16x128xf32>
    %55 = arith.mulf %47, %54 : vector<16x128xf32>
    %cst_25 = arith.constant dense<0.000000e+00> : vector<128xf32>
    %56 = vector.multi_reduction <add>, %55, %cst_25 [0] : vector<16x128xf32> to vector<128xf32>
    %57 = vector.shape_cast %56 : vector<128xf32> to vector<1x128xf32>
    %58 = vector.broadcast %5 : f32 to vector<1x128xf32>
    %59 = arith.addf %57, %58 : vector<1x128xf32>
    %cst_26 = arith.constant 0.000000e+00 : f32
    %60 = vector.broadcast %cst_26 : f32 to vector<1x128xf32>
    %61 = arith.maximumf %59, %60 : vector<1x128xf32>
    %62 = vector.extract_strided_slice %15 {offsets = [2, 0, 0], sizes = [1, 19, 128], strides = [1, 1, 1]} : vector<8x19x128xf32> to vector<1x19x128xf32>
    %63 = vector.shape_cast %62 : vector<1x19x128xf32> to vector<19x128xf32>
    %cst_27 = arith.constant dense<0.000000e+00> : vector<32x128xf32>
    %64 = tpu.matmul %0, %63, %cst_27 {dimension_numbers = #tpu.dot_dimension_numbers<[1], [0], [0], [1], [0, 0, 1, 1], [], []>} : vector<32x19xf32>, vector<19x128xf32>, vector<32x128xf32> -> vector<32x128xf32>
    %65 = vector.broadcast %1 : vector<32x1xf32> to vector<32x128xf32>
    %66 = arith.addf %64, %65 : vector<32x128xf32>
    %cst_28 = arith.constant 0.000000e+00 : f32
    %67 = vector.broadcast %cst_28 : f32 to vector<32x128xf32>
    %68 = arith.maximumf %66, %67 : vector<32x128xf32>
    %69 = vector.extract_strided_slice %68 {offsets = [0, 0], sizes = [16, 128], strides = [1, 1]} : vector<32x128xf32> to vector<16x128xf32>
    %70 = vector.extract_strided_slice %68 {offsets = [16, 0], sizes = [16, 128], strides = [1, 1]} : vector<32x128xf32> to vector<16x128xf32>
    %71 = vector.broadcast %2 : vector<16x1xf32> to vector<16x128xf32>
    %72 = arith.mulf %69, %71 : vector<16x128xf32>
    %cst_29 = arith.constant dense<0.000000e+00> : vector<128xf32>
    %73 = vector.multi_reduction <add>, %72, %cst_29 [0] : vector<16x128xf32> to vector<128xf32>
    %74 = vector.shape_cast %73 : vector<128xf32> to vector<1x128xf32>
    %75 = vector.broadcast %4 : f32 to vector<1x128xf32>
    %76 = arith.addf %74, %75 : vector<1x128xf32>
    %77 = vector.broadcast %3 : vector<16x1xf32> to vector<16x128xf32>
    %78 = arith.mulf %70, %77 : vector<16x128xf32>
    %cst_30 = arith.constant dense<0.000000e+00> : vector<128xf32>
    %79 = vector.multi_reduction <add>, %78, %cst_30 [0] : vector<16x128xf32> to vector<128xf32>
    %80 = vector.shape_cast %79 : vector<128xf32> to vector<1x128xf32>
    %81 = vector.broadcast %5 : f32 to vector<1x128xf32>
    %82 = arith.addf %80, %81 : vector<1x128xf32>
    %cst_31 = arith.constant 0.000000e+00 : f32
    %83 = vector.broadcast %cst_31 : f32 to vector<1x128xf32>
    %84 = arith.maximumf %82, %83 : vector<1x128xf32>
    %85 = vector.extract_strided_slice %15 {offsets = [3, 0, 0], sizes = [1, 19, 128], strides = [1, 1, 1]} : vector<8x19x128xf32> to vector<1x19x128xf32>
    %86 = vector.shape_cast %85 : vector<1x19x128xf32> to vector<19x128xf32>
    %cst_32 = arith.constant dense<0.000000e+00> : vector<32x128xf32>
    %87 = tpu.matmul %0, %86, %cst_32 {dimension_numbers = #tpu.dot_dimension_numbers<[1], [0], [0], [1], [0, 0, 1, 1], [], []>} : vector<32x19xf32>, vector<19x128xf32>, vector<32x128xf32> -> vector<32x128xf32>
    %88 = vector.broadcast %1 : vector<32x1xf32> to vector<32x128xf32>
    %89 = arith.addf %87, %88 : vector<32x128xf32>
    %cst_33 = arith.constant 0.000000e+00 : f32
    %90 = vector.broadcast %cst_33 : f32 to vector<32x128xf32>
    %91 = arith.maximumf %89, %90 : vector<32x128xf32>
    %92 = vector.extract_strided_slice %91 {offsets = [0, 0], sizes = [16, 128], strides = [1, 1]} : vector<32x128xf32> to vector<16x128xf32>
    %93 = vector.extract_strided_slice %91 {offsets = [16, 0], sizes = [16, 128], strides = [1, 1]} : vector<32x128xf32> to vector<16x128xf32>
    %94 = vector.broadcast %2 : vector<16x1xf32> to vector<16x128xf32>
    %95 = arith.mulf %92, %94 : vector<16x128xf32>
    %cst_34 = arith.constant dense<0.000000e+00> : vector<128xf32>
    %96 = vector.multi_reduction <add>, %95, %cst_34 [0] : vector<16x128xf32> to vector<128xf32>
    %97 = vector.shape_cast %96 : vector<128xf32> to vector<1x128xf32>
    %98 = vector.broadcast %4 : f32 to vector<1x128xf32>
    %99 = arith.addf %97, %98 : vector<1x128xf32>
    %100 = vector.broadcast %3 : vector<16x1xf32> to vector<16x128xf32>
    %101 = arith.mulf %93, %100 : vector<16x128xf32>
    %cst_35 = arith.constant dense<0.000000e+00> : vector<128xf32>
    %102 = vector.multi_reduction <add>, %101, %cst_35 [0] : vector<16x128xf32> to vector<128xf32>
    %103 = vector.shape_cast %102 : vector<128xf32> to vector<1x128xf32>
    %104 = vector.broadcast %5 : f32 to vector<1x128xf32>
    %105 = arith.addf %103, %104 : vector<1x128xf32>
    %cst_36 = arith.constant 0.000000e+00 : f32
    %106 = vector.broadcast %cst_36 : f32 to vector<1x128xf32>
    %107 = arith.maximumf %105, %106 : vector<1x128xf32>
    %108 = vector.extract_strided_slice %15 {offsets = [4, 0, 0], sizes = [1, 19, 128], strides = [1, 1, 1]} : vector<8x19x128xf32> to vector<1x19x128xf32>
    %109 = vector.shape_cast %108 : vector<1x19x128xf32> to vector<19x128xf32>
    %cst_37 = arith.constant dense<0.000000e+00> : vector<32x128xf32>
    %110 = tpu.matmul %0, %109, %cst_37 {dimension_numbers = #tpu.dot_dimension_numbers<[1], [0], [0], [1], [0, 0, 1, 1], [], []>} : vector<32x19xf32>, vector<19x128xf32>, vector<32x128xf32> -> vector<32x128xf32>
    %111 = vector.broadcast %1 : vector<32x1xf32> to vector<32x128xf32>
    %112 = arith.addf %110, %111 : vector<32x128xf32>
    %cst_38 = arith.constant 0.000000e+00 : f32
    %113 = vector.broadcast %cst_38 : f32 to vector<32x128xf32>
    %114 = arith.maximumf %112, %113 : vector<32x128xf32>
    %115 = vector.extract_strided_slice %114 {offsets = [0, 0], sizes = [16, 128], strides = [1, 1]} : vector<32x128xf32> to vector<16x128xf32>
    %116 = vector.extract_strided_slice %114 {offsets = [16, 0], sizes = [16, 128], strides = [1, 1]} : vector<32x128xf32> to vector<16x128xf32>
    %117 = vector.broadcast %2 : vector<16x1xf32> to vector<16x128xf32>
    %118 = arith.mulf %115, %117 : vector<16x128xf32>
    %cst_39 = arith.constant dense<0.000000e+00> : vector<128xf32>
    %119 = vector.multi_reduction <add>, %118, %cst_39 [0] : vector<16x128xf32> to vector<128xf32>
    %120 = vector.shape_cast %119 : vector<128xf32> to vector<1x128xf32>
    %121 = vector.broadcast %4 : f32 to vector<1x128xf32>
    %122 = arith.addf %120, %121 : vector<1x128xf32>
    %123 = vector.broadcast %3 : vector<16x1xf32> to vector<16x128xf32>
    %124 = arith.mulf %116, %123 : vector<16x128xf32>
    %cst_40 = arith.constant dense<0.000000e+00> : vector<128xf32>
    %125 = vector.multi_reduction <add>, %124, %cst_40 [0] : vector<16x128xf32> to vector<128xf32>
    %126 = vector.shape_cast %125 : vector<128xf32> to vector<1x128xf32>
    %127 = vector.broadcast %5 : f32 to vector<1x128xf32>
    %128 = arith.addf %126, %127 : vector<1x128xf32>
    %cst_41 = arith.constant 0.000000e+00 : f32
    %129 = vector.broadcast %cst_41 : f32 to vector<1x128xf32>
    %130 = arith.maximumf %128, %129 : vector<1x128xf32>
    %131 = vector.extract_strided_slice %15 {offsets = [5, 0, 0], sizes = [1, 19, 128], strides = [1, 1, 1]} : vector<8x19x128xf32> to vector<1x19x128xf32>
    %132 = vector.shape_cast %131 : vector<1x19x128xf32> to vector<19x128xf32>
    %cst_42 = arith.constant dense<0.000000e+00> : vector<32x128xf32>
    %133 = tpu.matmul %0, %132, %cst_42 {dimension_numbers = #tpu.dot_dimension_numbers<[1], [0], [0], [1], [0, 0, 1, 1], [], []>} : vector<32x19xf32>, vector<19x128xf32>, vector<32x128xf32> -> vector<32x128xf32>
    %134 = vector.broadcast %1 : vector<32x1xf32> to vector<32x128xf32>
    %135 = arith.addf %133, %134 : vector<32x128xf32>
    %cst_43 = arith.constant 0.000000e+00 : f32
    %136 = vector.broadcast %cst_43 : f32 to vector<32x128xf32>
    %137 = arith.maximumf %135, %136 : vector<32x128xf32>
    %138 = vector.extract_strided_slice %137 {offsets = [0, 0], sizes = [16, 128], strides = [1, 1]} : vector<32x128xf32> to vector<16x128xf32>
    %139 = vector.extract_strided_slice %137 {offsets = [16, 0], sizes = [16, 128], strides = [1, 1]} : vector<32x128xf32> to vector<16x128xf32>
    %140 = vector.broadcast %2 : vector<16x1xf32> to vector<16x128xf32>
    %141 = arith.mulf %138, %140 : vector<16x128xf32>
    %cst_44 = arith.constant dense<0.000000e+00> : vector<128xf32>
    %142 = vector.multi_reduction <add>, %141, %cst_44 [0] : vector<16x128xf32> to vector<128xf32>
    %143 = vector.shape_cast %142 : vector<128xf32> to vector<1x128xf32>
    %144 = vector.broadcast %4 : f32 to vector<1x128xf32>
    %145 = arith.addf %143, %144 : vector<1x128xf32>
    %146 = vector.broadcast %3 : vector<16x1xf32> to vector<16x128xf32>
    %147 = arith.mulf %139, %146 : vector<16x128xf32>
    %cst_45 = arith.constant dense<0.000000e+00> : vector<128xf32>
    %148 = vector.multi_reduction <add>, %147, %cst_45 [0] : vector<16x128xf32> to vector<128xf32>
    %149 = vector.shape_cast %148 : vector<128xf32> to vector<1x128xf32>
    %150 = vector.broadcast %5 : f32 to vector<1x128xf32>
    %151 = arith.addf %149, %150 : vector<1x128xf32>
    %cst_46 = arith.constant 0.000000e+00 : f32
    %152 = vector.broadcast %cst_46 : f32 to vector<1x128xf32>
    %153 = arith.maximumf %151, %152 : vector<1x128xf32>
    %154 = vector.extract_strided_slice %15 {offsets = [6, 0, 0], sizes = [1, 19, 128], strides = [1, 1, 1]} : vector<8x19x128xf32> to vector<1x19x128xf32>
    %155 = vector.shape_cast %154 : vector<1x19x128xf32> to vector<19x128xf32>
    %cst_47 = arith.constant dense<0.000000e+00> : vector<32x128xf32>
    %156 = tpu.matmul %0, %155, %cst_47 {dimension_numbers = #tpu.dot_dimension_numbers<[1], [0], [0], [1], [0, 0, 1, 1], [], []>} : vector<32x19xf32>, vector<19x128xf32>, vector<32x128xf32> -> vector<32x128xf32>
    %157 = vector.broadcast %1 : vector<32x1xf32> to vector<32x128xf32>
    %158 = arith.addf %156, %157 : vector<32x128xf32>
    %cst_48 = arith.constant 0.000000e+00 : f32
    %159 = vector.broadcast %cst_48 : f32 to vector<32x128xf32>
    %160 = arith.maximumf %158, %159 : vector<32x128xf32>
    %161 = vector.extract_strided_slice %160 {offsets = [0, 0], sizes = [16, 128], strides = [1, 1]} : vector<32x128xf32> to vector<16x128xf32>
    %162 = vector.extract_strided_slice %160 {offsets = [16, 0], sizes = [16, 128], strides = [1, 1]} : vector<32x128xf32> to vector<16x128xf32>
    %163 = vector.broadcast %2 : vector<16x1xf32> to vector<16x128xf32>
    %164 = arith.mulf %161, %163 : vector<16x128xf32>
    %cst_49 = arith.constant dense<0.000000e+00> : vector<128xf32>
    %165 = vector.multi_reduction <add>, %164, %cst_49 [0] : vector<16x128xf32> to vector<128xf32>
    %166 = vector.shape_cast %165 : vector<128xf32> to vector<1x128xf32>
    %167 = vector.broadcast %4 : f32 to vector<1x128xf32>
    %168 = arith.addf %166, %167 : vector<1x128xf32>
    %169 = vector.broadcast %3 : vector<16x1xf32> to vector<16x128xf32>
    %170 = arith.mulf %162, %169 : vector<16x128xf32>
    %cst_50 = arith.constant dense<0.000000e+00> : vector<128xf32>
    %171 = vector.multi_reduction <add>, %170, %cst_50 [0] : vector<16x128xf32> to vector<128xf32>
    %172 = vector.shape_cast %171 : vector<128xf32> to vector<1x128xf32>
    %173 = vector.broadcast %5 : f32 to vector<1x128xf32>
    %174 = arith.addf %172, %173 : vector<1x128xf32>
    %cst_51 = arith.constant 0.000000e+00 : f32
    %175 = vector.broadcast %cst_51 : f32 to vector<1x128xf32>
    %176 = arith.maximumf %174, %175 : vector<1x128xf32>
    %177 = vector.extract_strided_slice %15 {offsets = [7, 0, 0], sizes = [1, 19, 128], strides = [1, 1, 1]} : vector<8x19x128xf32> to vector<1x19x128xf32>
    %178 = vector.shape_cast %177 : vector<1x19x128xf32> to vector<19x128xf32>
    %cst_52 = arith.constant dense<0.000000e+00> : vector<32x128xf32>
    %179 = tpu.matmul %0, %178, %cst_52 {dimension_numbers = #tpu.dot_dimension_numbers<[1], [0], [0], [1], [0, 0, 1, 1], [], []>} : vector<32x19xf32>, vector<19x128xf32>, vector<32x128xf32> -> vector<32x128xf32>
    %180 = vector.broadcast %1 : vector<32x1xf32> to vector<32x128xf32>
    %181 = arith.addf %179, %180 : vector<32x128xf32>
    %cst_53 = arith.constant 0.000000e+00 : f32
    %182 = vector.broadcast %cst_53 : f32 to vector<32x128xf32>
    %183 = arith.maximumf %181, %182 : vector<32x128xf32>
    %184 = vector.extract_strided_slice %183 {offsets = [0, 0], sizes = [16, 128], strides = [1, 1]} : vector<32x128xf32> to vector<16x128xf32>
    %185 = vector.extract_strided_slice %183 {offsets = [16, 0], sizes = [16, 128], strides = [1, 1]} : vector<32x128xf32> to vector<16x128xf32>
    %186 = vector.broadcast %2 : vector<16x1xf32> to vector<16x128xf32>
    %187 = arith.mulf %184, %186 : vector<16x128xf32>
    %cst_54 = arith.constant dense<0.000000e+00> : vector<128xf32>
    %188 = vector.multi_reduction <add>, %187, %cst_54 [0] : vector<16x128xf32> to vector<128xf32>
    %189 = vector.shape_cast %188 : vector<128xf32> to vector<1x128xf32>
    %190 = vector.broadcast %4 : f32 to vector<1x128xf32>
    %191 = arith.addf %189, %190 : vector<1x128xf32>
    %192 = vector.broadcast %3 : vector<16x1xf32> to vector<16x128xf32>
    %193 = arith.mulf %185, %192 : vector<16x128xf32>
    %cst_55 = arith.constant dense<0.000000e+00> : vector<128xf32>
    %194 = vector.multi_reduction <add>, %193, %cst_55 [0] : vector<16x128xf32> to vector<128xf32>
    %195 = vector.shape_cast %194 : vector<128xf32> to vector<1x128xf32>
    %196 = vector.broadcast %5 : f32 to vector<1x128xf32>
    %197 = arith.addf %195, %196 : vector<1x128xf32>
    %cst_56 = arith.constant 0.000000e+00 : f32
    %198 = vector.broadcast %cst_56 : f32 to vector<1x128xf32>
    %199 = arith.maximumf %197, %198 : vector<1x128xf32>
    %200 = tpu.concatenate %30, %53, %76, %99, %122, %145, %168, %191 in 0 : vector<1x128xf32>, vector<1x128xf32>, vector<1x128xf32>, vector<1x128xf32>, vector<1x128xf32>, vector<1x128xf32>, vector<1x128xf32>, vector<1x128xf32> -> vector<8x128xf32>
    %201 = tpu.concatenate %38, %61, %84, %107, %130, %153, %176, %199 in 0 : vector<1x128xf32>, vector<1x128xf32>, vector<1x128xf32>, vector<1x128xf32>, vector<1x128xf32>, vector<1x128xf32>, vector<1x128xf32>, vector<1x128xf32> -> vector<8x128xf32>
    %cst_57 = arith.constant dense<0xFF800000> : vector<128xf32>
    %202 = vector.multi_reduction <maximumf>, %200, %cst_57 [0] : vector<8x128xf32> to vector<128xf32>
    %203 = vector.shape_cast %202 : vector<128xf32> to vector<1x128xf32>
    %204 = vector.broadcast %203 : vector<1x128xf32> to vector<8x128xf32>
    %205 = arith.subf %200, %204 : vector<8x128xf32>
    %206 = math.exp %205 : vector<8x128xf32>
    %cst_58 = arith.constant dense<0.000000e+00> : vector<128xf32>
    %207 = vector.multi_reduction <add>, %206, %cst_58 [0] : vector<8x128xf32> to vector<128xf32>
    %208 = vector.shape_cast %207 : vector<128xf32> to vector<1x128xf32>
    %209 = vector.broadcast %208 : vector<1x128xf32> to vector<8x128xf32>
    %210 = arith.divf %206, %209 : vector<8x128xf32>
    %211 = arith.mulf %210, %8 : vector<8x128xf32>
    %cst_59 = arith.constant dense<0xFF800000> : vector<128xf32>
    %212 = vector.multi_reduction <maximumf>, %211, %cst_59 [0] : vector<8x128xf32> to vector<128xf32>
    %213 = vector.shape_cast %212 : vector<128xf32> to vector<1x128xf32>
    %214 = vector.broadcast %213 : vector<1x128xf32> to vector<8x128xf32>
    %215 = arith.subf %211, %214 : vector<8x128xf32>
    %216 = math.exp %215 : vector<8x128xf32>
    %cst_60 = arith.constant dense<0.000000e+00> : vector<128xf32>
    %217 = vector.multi_reduction <add>, %216, %cst_60 [0] : vector<8x128xf32> to vector<128xf32>
    %218 = vector.shape_cast %217 : vector<128xf32> to vector<1x128xf32>
    %219 = vector.broadcast %218 : vector<1x128xf32> to vector<8x128xf32>
    %220 = arith.divf %216, %219 : vector<8x128xf32>
    %cst_61 = arith.constant dense<0xFF800000> : vector<128xf32>
    %221 = vector.multi_reduction <maximumf>, %201, %cst_61 [0] : vector<8x128xf32> to vector<128xf32>
    %222 = vector.shape_cast %221 : vector<128xf32> to vector<1x128xf32>
    %223 = vector.broadcast %222 : vector<1x128xf32> to vector<8x128xf32>
    %224 = arith.subf %201, %223 : vector<8x128xf32>
    %225 = math.exp %224 : vector<8x128xf32>
    %cst_62 = arith.constant dense<0.000000e+00> : vector<128xf32>
    %226 = vector.multi_reduction <add>, %225, %cst_62 [0] : vector<8x128xf32> to vector<128xf32>
    %227 = vector.shape_cast %226 : vector<128xf32> to vector<1x128xf32>
    %228 = vector.broadcast %227 : vector<1x128xf32> to vector<8x128xf32>
    %229 = arith.divf %225, %228 : vector<8x128xf32>
    %230 = vector.extract_strided_slice %229 {offsets = [0, 0], sizes = [1, 128], strides = [1, 1]} : vector<8x128xf32> to vector<1x128xf32>
    %231 = vector.broadcast %230 : vector<1x128xf32> to vector<16x128xf32>
    %232 = arith.mulf %24, %231 : vector<16x128xf32>
    %233 = vector.extract_strided_slice %229 {offsets = [1, 0], sizes = [1, 128], strides = [1, 1]} : vector<8x128xf32> to vector<1x128xf32>
    %234 = vector.broadcast %233 : vector<1x128xf32> to vector<16x128xf32>
    %235 = arith.mulf %47, %234 : vector<16x128xf32>
    %236 = arith.addf %232, %235 : vector<16x128xf32>
    %237 = vector.extract_strided_slice %229 {offsets = [2, 0], sizes = [1, 128], strides = [1, 1]} : vector<8x128xf32> to vector<1x128xf32>
    %238 = vector.broadcast %237 : vector<1x128xf32> to vector<16x128xf32>
    %239 = arith.mulf %70, %238 : vector<16x128xf32>
    %240 = arith.addf %236, %239 : vector<16x128xf32>
    %241 = vector.extract_strided_slice %229 {offsets = [3, 0], sizes = [1, 128], strides = [1, 1]} : vector<8x128xf32> to vector<1x128xf32>
    %242 = vector.broadcast %241 : vector<1x128xf32> to vector<16x128xf32>
    %243 = arith.mulf %93, %242 : vector<16x128xf32>
    %244 = arith.addf %240, %243 : vector<16x128xf32>
    %245 = vector.extract_strided_slice %229 {offsets = [4, 0], sizes = [1, 128], strides = [1, 1]} : vector<8x128xf32> to vector<1x128xf32>
    %246 = vector.broadcast %245 : vector<1x128xf32> to vector<16x128xf32>
    %247 = arith.mulf %116, %246 : vector<16x128xf32>
    %248 = arith.addf %244, %247 : vector<16x128xf32>
    %249 = vector.extract_strided_slice %229 {offsets = [5, 0], sizes = [1, 128], strides = [1, 1]} : vector<8x128xf32> to vector<1x128xf32>
    %250 = vector.broadcast %249 : vector<1x128xf32> to vector<16x128xf32>
    %251 = arith.mulf %139, %250 : vector<16x128xf32>
    %252 = arith.addf %248, %251 : vector<16x128xf32>
    %253 = vector.extract_strided_slice %229 {offsets = [6, 0], sizes = [1, 128], strides = [1, 1]} : vector<8x128xf32> to vector<1x128xf32>
    %254 = vector.broadcast %253 : vector<1x128xf32> to vector<16x128xf32>
    %255 = arith.mulf %162, %254 : vector<16x128xf32>
    %256 = arith.addf %252, %255 : vector<16x128xf32>
    %257 = vector.extract_strided_slice %229 {offsets = [7, 0], sizes = [1, 128], strides = [1, 1]} : vector<8x128xf32> to vector<1x128xf32>
    %258 = vector.broadcast %257 : vector<1x128xf32> to vector<16x128xf32>
    %259 = arith.mulf %185, %258 : vector<16x128xf32>
    %260 = arith.addf %256, %259 : vector<16x128xf32>
    %c0_63 = arith.constant 0 : index
    %c0_64 = arith.constant 0 : index
    %261 = vector.load %arg9[%c0_63, %c0_64] : memref<16x128xf32, #tpu.memory_space<vmem>>, vector<16x128xf32>
    tpu.vector_store %arg9[%c0_63, %c0_64], %260 {strides = array<i32>} : memref<16x128xf32, #tpu.memory_space<vmem>>, vector<16x128xf32>,
    %c0_65 = arith.constant 0 : index
    %c0_66 = arith.constant 0 : index
    %262 = vector.load %arg10[%c0_65, %c0_66] : memref<8x128xf32, #tpu.memory_space<vmem>>, vector<8x128xf32>
    tpu.vector_store %arg10[%c0_65, %c0_66], %220 {strides = array<i32>} : memref<8x128xf32, #tpu.memory_space<vmem>>, vector<8x128xf32>,
    return
  }
  func.func @transform_0(%arg0: i32) -> (i32, i32, i32) {
    %c0_i32 = arith.constant 0 : i32
    %c0_i32_0 = arith.constant 0 : i32
    %c0_i32_1 = arith.constant 0 : i32
    return %c0_i32, %c0_i32_0, %arg0 : i32, i32, i32
  }
  func.func @transform_1(%arg0: i32) -> (i32, i32, i32) {
    %c0_i32 = arith.constant 0 : i32
    %c0_i32_0 = arith.constant 0 : i32
    %c0_i32_1 = arith.constant 0 : i32
    return %c0_i32, %c0_i32_0, %arg0 : i32, i32, i32
  }
  func.func @transform_2(%arg0: i32) -> (i32, i32) {
    %c0_i32 = arith.constant 0 : i32
    %c0_i32_0 = arith.constant 0 : i32
    return %c0_i32, %arg0 : i32, i32
  }
  func.func @transform_3(%arg0: i32) -> (i32, i32) {
    %c0_i32 = arith.constant 0 : i32
    %c0_i32_0 = arith.constant 0 : i32
    %c0_i32_1 = arith.constant 0 : i32
    return %c0_i32, %c0_i32_0 : i32, i32
  }
  func.func @transform_4(%arg0: i32) -> (i32, i32) {
    %c0_i32 = arith.constant 0 : i32
    %c0_i32_0 = arith.constant 0 : i32
    %c0_i32_1 = arith.constant 0 : i32
    return %c0_i32, %c0_i32_0 : i32, i32
  }
  func.func @transform_5(%arg0: i32) -> (i32, i32) {
    %c0_i32 = arith.constant 0 : i32
    %c0_i32_0 = arith.constant 0 : i32
    %c0_i32_1 = arith.constant 0 : i32
    return %c0_i32, %c0_i32_0 : i32, i32
  }
  func.func @transform_6(%arg0: i32) -> (i32, i32) {
    %c0_i32 = arith.constant 0 : i32
    %c0_i32_0 = arith.constant 0 : i32
    %c0_i32_1 = arith.constant 0 : i32
    return %c0_i32, %c0_i32_0 : i32, i32
  }
  func.func @transform_7(%arg0: i32) -> (i32, i32) {
    %c0_i32 = arith.constant 0 : i32
    %c0_i32_0 = arith.constant 0 : i32
    %c0_i32_1 = arith.constant 0 : i32
    return %c0_i32, %c0_i32_0 : i32, i32
  }
  func.func @transform_8(%arg0: i32) -> (i32, i32) {
    %c0_i32 = arith.constant 0 : i32
    %c0_i32_0 = arith.constant 0 : i32
    return %c0_i32, %arg0 : i32, i32
  }
  func.func @transform_9(%arg0: i32) -> (i32, i32) {
    %c0_i32 = arith.constant 0 : i32
    %c0_i32_0 = arith.constant 0 : i32
    return %c0_i32, %arg0 : i32, i32
  }
}

</mosaic_0001>

<bundles_post_ra>
// kernel: tpu_custom_call.1
= control target key start
LH: loop header
LB: loop body
LE: loop exit
PB: predicated region body
PF: predicated region fallthrough
CT: control target
= control target key end

     0   :  { %s6062_s0 = inlined_call_operand.vmem [shape: f32[8,10,256], index: 0, kind: input, shape index: {}]   ;;  %s6063_s1 = inlined_call_operand.vmem [shape: f32[8,1,256], index: 1, kind: input, shape index: {}]   ;;  %s6064_s2 = inlined_call_operand.vmem [shape: f32[8,256], index: 2, kind: input, shape index: {}]   ;;  %s6065_s3 = inlined_call_operand.vmem [shape: f32[32,19], index: 3, kind: input, shape index: {}]   ;;  %s6066_s4 = inlined_call_operand.vmem [shape: f32[32,1], index: 4, kind: input, shape index: {}]   ;;  %s6067_s5 = inlined_call_operand.vmem [shape: f32[16,1], index: 5, kind: input, shape index: {}]   ;;  %s6068_s6 = inlined_call_operand.vmem [shape: f32[16,1], index: 6, kind: input, shape index: {}]   ;;  %s6069_s7 = inlined_call_operand.vmem [shape: f32[1,2], index: 7, kind: input, shape index: {}]   ;;  %s6070_s8 = inlined_call_operand.hbm [shape: f32[16,256], index: 8, kind: output, shape index: {0}]   ;;  %s6071_s9 = inlined_call_operand.hbm [shape: f32[8,256], index: 9, kind: output, shape index: {1}]  }
   0x1   :  { %6084 = sst [smem:[#allocation13_spill]] %s6062_s0 }
   0x2   :  { %15 = vsyncpa [#allocation6], 0 }
   0x3   :  { %16 = vsyncpa [#allocation5], 0 }
   0x4   :  { %18 = vsyncpa [#allocation5 + $0x1], 0 }
   0x5   :  { %19 = vsyncpa [#allocation9], 0 }
   0x6   :  { %21 = vsyncpa [#allocation9 + $0x1], 0  ;;  %s4461_s30 = smov 0   ;;  %s4463_s10 = smov 0  }
   0x7   :  { %s4465_s11 = smov 0   ;;  %s4467_s12 = smov 0  }
   0x8 LB: > { %s4482_s13 = sadd.s32 4294967295, %s4396_s12   ;;  %s3823_s14 = sadd.s32 4294967294, %s4396_s12   ;;  %s4396_s12 = sphi %s4467_s12, %s6127_s12   ;;  %s4392_s11 = sphi %s4465_s11, %s6126_s11   ;;  %s4388_s10 = sphi %s4463_s10, %s6125_s10   ;;  %s4384_s30 = sphi %s4461_s30, %s6124_s30  }
   0x9   : > { %s4486_s15 = sadd.s32 1, %s4396_s12   ;;  %s34_s16 = sadd.s32 1, %s4392_s11 }
   0xa   : > { %s31_s17 = ssub.s32 %s4396_s12, %s4486_s15  ;;  %p41_p0 = scmp.ne.s32.totalorder %s4392_s11, %s4388_s10 }
   0xb   : > { %p32_p1 = scmp.eq.s32.totalorder %s31_s17, 0  ;;  %p42_p2 = scmp.eq.s32.totalorder %s4396_s12, 0 }
   0xc   : > { %p228_p3 = scmp.eq.s32.totalorder %s4482_s13, 1  ;;  %p233_p4 = scmp.ne.s32.totalorder %s4388_s10, %s4384_s30 }
   0xd   : > { %s4498_s18 = scalar_select %p32_p1, %s4392_s11, %s34_s16  }
   0xe   : > { %p4500_p5 = por %p42_p2, %p41_p0  ;;  %p4504_p6 = por %p228_p3, %p41_p0 }
   0xf   : > { %p234_p7 = scmp.eq.s32.totalorder %s3823_s14, 1  ;;  %p3824_p8 = scmp.ge.s32.totalorder %s4396_s12, 1 }
  0x10   : > { %s6086_s20 = scalar_select %p4504_p6, 1, 0 }
  0x11   : > { %p267_p9 = scmp.lt.s32.totalorder %s4396_s12, 3  ;;  %p4510_p10 = por %p234_p7, %p233_p4 }
  0x12   : > { %p4183_p11 = scmp.eq.s32.totalorder %s4482_s13, 0  ;;  %s292_s25 = sshll.u32 %s6069_s7, 4  ;;  %s293_s25 = int_to_ptr.vmem [resolvable:$true] %s292_s25 }
  0x13   : > { %s6087_s21 = scalar_select %p4510_p10, 1, 0 }
  0x14   : > { %p4515_p12 = pnand %p3824_p8, %p267_p9  ;;  %s4283_s26 = scalar_lea.vmem %s293_s25, 16 }
  0x15   : > { %p4284_p1 = scmp.ne.s32.totalorder %s293_s25, %s4283_s26  ;;  %p4291_p7 = scmp.lt.s32.totalorder %s293_s25, %s293_s25 }
  0x16   : > { %p4172_p13 = pneg %p4515_p12  ;;  %p4292_p8 = scmp.lt.s32.totalorder %s4283_s26, %s4283_s26 }
  0x18   : > { %p4173_p0 = pnand %p4183_p11, %p4172_p13  ;;  %p4293_p9 = por %p4292_p8, %p4291_p7 }
  0x1a   : > { %p4285_p2 = pneg %p4173_p0 }
  0x1c   : > { %p4286_p3 = pnand %p4285_p2, %p4284_p1 }
  0x1e   : > { %p4287_p4 = pneg %p4286_p3 }
  0x20   : > { %p4294_p10 = pnand %p4293_p9, %p4287_p4 }
  0x22   : > { %4297 = shalt.err (!%p4294_p10)
}
  0x23   : > { %s4398_s27 = smov [#allocation4]   ;;  %p3826_p6 = scmp.ge.s32.totalorder %s4396_s12, 2 }
  0x24   : > { %4175 = dma.vmem_to_smem (!%p4173_p0), %s293_s25, 16, %s4398_s27, [#allocation6]  }
  0x25   : > { %299 = sbr.rel (%p3826_p6) target bundleno = 70 (0x46), region = 36 }
  0x2c   : > { %302 = sbr.rel (!%p4500_p5) target bundleno = 62 (0x3e), region = 40  ;;  %s304_s28 = sand.u32 (%p4500_p5), 1, %s4392_s11  }
  0x2d   : > { %s3828_s29 = sshll.u32 (%p4500_p5), %s4396_s12, 3  ;;  %s3827_s14 = sshll.u32 (%p4500_p5), %s304_s28, 7 }
  0x2e   : > { %s6089_s0 = sld [smem:[#allocation13_spill]] (%p4500_p5)  ;;  %s306_s24 = scalar_lea.vmem (%p4500_p5), [#allocation2], %s3827_s14 }
  0x34   : > { %s4536_s23 = scalar_lea.vmem %s6089_s0, %s3828_s29 }
  0x35   : > { %v366_v0 = vld [vmem:[%s4536_s23] sm:$0xff]  ;;  %v368_v1 = vld [vmem:[%s4536_s23 + $0x10] sm:$0xff] }
  0x36   : > { %v370_v2 = vld [vmem:[%s4536_s23 + $0x20] sm:$0xff]  ;;  %367 = vst [vmem:[%s306_s24] sm:$0xff] %v366_v0  ;;  %369 = vst [vmem:[%s306_s24 + $0x8] sm:$0xff] %v368_v1  ;;  %v372_v3 = vld [vmem:[%s4536_s23 + $0x30] sm:$0xff] }
  0x37   : > { %371 = vst [vmem:[%s306_s24 + $0x10] sm:$0xff] %v370_v2  ;;  %v374_v4 = vld [vmem:[%s4536_s23 + $0x40] sm:$0xff]  ;;  %v376_v5 = vld [vmem:[%s4536_s23 + $0x50] sm:$0xff]  ;;  %373 = vst [vmem:[%s306_s24 + $0x18] sm:$0xff] %v372_v3 }
  0x38   : > { %375 = vst [vmem:[%s306_s24 + $0x20] sm:$0xff] %v374_v4  ;;  %377 = vst [vmem:[%s306_s24 + $0x28] sm:$0xff] %v376_v5  ;;  %v378_v6 = vld [vmem:[%s4536_s23 + $0x60] sm:$0xff]  ;;  %v380_v7 = vld [vmem:[%s4536_s23 + $0x70] sm:$0xff] }
  0x39   : > { %v382_v8 = vld [vmem:[%s4536_s23 + $0x80] sm:$0xff]  ;;  %379 = vst [vmem:[%s306_s24 + $0x30] sm:$0xff] %v378_v6  ;;  %381 = vst [vmem:[%s306_s24 + $0x38] sm:$0xff] %v380_v7  ;;  %v384_v9 = vld [vmem:[%s4536_s23 + $0x90] sm:$0xff] }
  0x3a   : > { %383 = vst [vmem:[%s306_s24 + $0x40] sm:$0xff] %v382_v8  ;;  %v386_v10 = vld [vmem:[%s4536_s23 + $0xa0] sm:$0xff]  ;;  %v388_v11 = vld [vmem:[%s4536_s23 + $0xb0] sm:$0xff]  ;;  %385 = vst [vmem:[%s306_s24 + $0x48] sm:$0xff] %v384_v9 }
  0x3b   : > { %387 = vst [vmem:[%s306_s24 + $0x50] sm:$0xff] %v386_v10  ;;  %389 = vst [vmem:[%s306_s24 + $0x58] sm:$0xff] %v388_v11  ;;  %v390_v12 = vld [vmem:[%s4536_s23 + $0xc0] sm:$0xff]  ;;  %v392_v13 = vld [vmem:[%s4536_s23 + $0xd0] sm:$0xff] }
  0x3c   : > { %v394_v14 = vld [vmem:[%s4536_s23 + $0xe0] sm:$0xff]  ;;  %391 = vst [vmem:[%s306_s24 + $0x60] sm:$0xff] %v390_v12  ;;  %393 = vst [vmem:[%s306_s24 + $0x68] sm:$0xff] %v392_v13  ;;  %v396_v15 = vld [vmem:[%s4536_s23 + $0xf0] sm:$0xff] }
  0x3d   : > { %395 = vst [vmem:[%s306_s24 + $0x70] sm:$0xff] %v394_v14  ;;  %397 = vst [vmem:[%s306_s24 + $0x78] sm:$0xff] %v396_v15 }
  0x3e PF: > { %403 = sbr.rel (!%p4500_p5) target bundleno = 70 (0x46), region = 78  ;;  %s405_s25 = sand.u32 (%p4500_p5), 1, %s4392_s11  }
  0x3f   : > { %s408_s28 = scalar_lea.vmem (%p4500_p5), %s6063_s1, %s4396_s12  ;;  %s3829_s29 = sshll.u32 (%p4500_p5), %s405_s25, 3 }
  0x40   : > { %v424_v16 = vld [vmem:[%s408_s28] sm:$0x1] (%p4500_p5)  ;;  %v426_v17 = vld [vmem:[%s408_s28 + $0x2] sm:$0x1] (%p4500_p5)  ;;  %v428_v18 = vld [vmem:[%s408_s28 + $0x4] sm:$0x1] (%p4500_p5) }
  0x41   : > { %v430_v19 = vld [vmem:[%s408_s28 + $0x6] sm:$0x1] (%p4500_p5)  ;;  %s407_s14 = scalar_lea.vmem (%p4500_p5), [#allocation3], %s3829_s29  ;;  %v432_v20 = vld [vmem:[%s408_s28 + $0x8] sm:$0x1] (%p4500_p5) }
  0x42   : > { %425 = vst [vmem:[%s407_s14] sm:$0x1] (%p4500_p5), %v424_v16  ;;  %427 = vst [vmem:[%s407_s14 + $0x1] sm:$0x1] (%p4500_p5), %v426_v17  ;;  %v434_v21 = vld [vmem:[%s408_s28 + $0xa] sm:$0x1] (%p4500_p5) }
  0x43   : > { %429 = vst [vmem:[%s407_s14 + $0x2] sm:$0x1] (%p4500_p5), %v428_v18  ;;  %431 = vst [vmem:[%s407_s14 + $0x3] sm:$0x1] (%p4500_p5), %v430_v19  ;;  %v436_v22 = vld [vmem:[%s408_s28 + $0xc] sm:$0x1] (%p4500_p5) }
  0x44   : > { %433 = vst [vmem:[%s407_s14 + $0x4] sm:$0x1] (%p4500_p5), %v432_v20  ;;  %435 = vst [vmem:[%s407_s14 + $0x5] sm:$0x1] (%p4500_p5), %v434_v21  ;;  %v438_v23 = vld [vmem:[%s408_s28 + $0xe] sm:$0x1] (%p4500_p5) }
  0x45   : > { %437 = vst [vmem:[%s407_s14 + $0x6] sm:$0x1] %v436_v22  ;;  %439 = vst [vmem:[%s407_s14 + $0x7] sm:$0x1] %v438_v23 }
  0x46 PF: > { %488 = sbr.rel (%p4515_p12) target bundleno = 751 (0x2ef), region = 123  ;;  %s4564_s19 = sand.u32 (!%p4515_p12), 1, %s4388_s10  }
  0x47   : > { %s3831_s16 = sshll.u32 (!%p4515_p12), %s4564_s19, 7  ;;  %s6083_s17 = sshll.u32 (!%p4515_p12), %s4564_s19, 3 }
  0x48   : > { %s4568_s23 = scalar_lea.vmem (!%p4515_p12), [#allocation2], %s3831_s16  ;;  %s4572_s24 = scalar_lea.vmem (!%p4515_p12), [#allocation3], %s6083_s17 }
  0x4d   : > { %4371 = dma.done.wait (%p4183_p11), [#allocation6], 16  }
  0x4e   : > { %4373 = vsyncadd (%p4183_p11), [#allocation6], 4294967280 }
  0x4f   : > { %508 = sfence }
  0x50   : > { %v4579_v24 = vld [vmem:[%s4572_s24] sm:$0x1]  ;;  %v626_v25 = vlaneseq  ;;  %v4594_v31 = vld [vmem:[%s4572_s24 + $0x1] sm:$0x1]  ;;  %vm2586_vm0 = vcmask 154624   ;;  %vm6073_vm1 = vcmask 1040384  }
  0x51   : > { %v594_v26 = vadd.f32 %v4579_v24, %v4579_v24  ;;  %v4588_v28 = vld [vmem:[%s6065_s3] sm:$0xff]  ;;  %v595_v33 = vadd.f32 %v4594_v31, %v4594_v31  ;;  %vm6074_vm2 = vcmask 1041408   ;;  %vm780_vm3 = vcmask 1042432   ;;  %s3837_s16 = sld [smem:[#allocation4 + $0x1]]  ;;  %p551_p5 = scmp.lt.s32.totalorder %s4482_s13, 1 }
  0x52   : > { %v4583_v27 = vshrl.u32 %v626_v25, 7  ;;  %4010 = vmatprep.mubr.msk.f32.mxu0 %vm2586_vm0, %v4588_v28  ;;  %4022 = vmatprep.mubr.msk.f32.mxu1 %vm2586_vm0, %v4588_v28  ;;  %v4605_v36 = vld [vmem:[%s4572_s24 + $0x2] sm:$0x1]  ;;  %v4644_v6 = vld [vmem:[%s4572_s24 + $0x3] sm:$0x1]  ;;  %s3834_s29 = sshll.u32 %s4564_s19, 4 }
  0x53   : > { %v602_v29 = vadd.f32 %v594_v26, %v594_v26  ;;  %v603_v38 = vadd.f32 %v595_v33, %v595_v33  ;;  %v596_v40 = vadd.f32 %v4605_v36, %v4605_v36  ;;  %v4650_v15 = vadd.f32 %v4644_v6, %v4644_v6  ;;  %s552_s22 = scalar_select %p551_p5, %s4482_s13, 1 }
  0x54   : > { %v4591_v30 = vsub.s32 0, %v4583_v27  ;;  %v4399_v17 = vmov 683565275   ;;  %v4400_v19 = vmov 2475754826   ;;  %s3652_s26 = scalar_lea.sflag [#allocation5], %s4564_s19 }
  0x55   : > { %v610_v32 = vadd.f32 %v602_v29, %v602_v29  ;;  %v611_v43 = vadd.f32 %v603_v38, %v603_v38  ;;  %v604_v47 = vadd.f32 %v596_v40, %v596_v40  ;;  %v4401_v21 = vmov 2131351028   ;;  %s3836_s25 = sshll.u32 %s552_s22, 3  ;;  %p6120_p11 = scmp.ne.s32.totalorder %s6086_s20, 0 }
  0x56   : > { %v629_v34 = vrot.slane %v594_v26, %v4591_v30  ;;  %v677_v35 = vrot.slane %v602_v29, %v4591_v30  ;;  %v633_v39 = vrot.slane %v595_v33, %v4591_v30  ;;  %v681_v44 = vrot.slane %v603_v38, %v4591_v30  ;;  %s554_s28 = scalar_lea.vmem %s6064_s2, %s3836_s25 }
  0x57   : > { %v725_v37 = vrot.slane %v610_v32, %v4591_v30  ;;  %v637_v48 = vrot.slane %v596_v40, %v4591_v30  ;;  %v729_v51 = vrot.slane %v611_v43, %v4591_v30  ;;  %v612_v53 = vadd.f32 %v604_v47, %v604_v47 }
  0x58   : > { %v763_v41 = vsel %vm6073_vm1, %v4579_v24, %v629_v34  ;;  %v764_v45 = vsel %vm6073_vm1, %v4594_v31, %v633_v39  ;;  %v685_v54 = vrot.slane %v604_v47, %v4591_v30  ;;  %v4402_v23 = vmov 2102212464  }
  0x59   : > { %v772_v42 = vsel %vm6074_vm2, %v763_v41, %v677_v35  ;;  %v773_v52 = vsel %vm6074_vm2, %v764_v45, %v681_v44  ;;  %v765_v56 = vsel %vm6073_vm1, %v4605_v36, %v637_v48  ;;  %v733_v59 = vrot.slane %v612_v53, %v4591_v30 }
  0x5a   : > { %v4618_v46 = vsel %vm780_vm3, %v772_v42, %v725_v37  ;;  %v4631_v58 = vsel %vm780_vm3, %v773_v52, %v729_v51  ;;  %v774_v60 = vsel %vm6074_vm2, %v765_v56, %v685_v54  ;;  %v4403_v26 = vmov 920167782  }
  0x5b   : > { %v789_v49 = vand.u32 2147483647, %v4618_v46  ;;  %v792_v50 = vand.u32 2139095040, %v4618_v46  ;;  %v893_v62 = vand.u32 2147483647, %v4631_v58  ;;  %v896_v63 = vand.u32 2139095040, %v4631_v58 }
  0x5c   : > { %v4638_v0 = vsel %vm780_vm3, %v774_v60, %v733_v59  ;;  %v4404_v39 = vmov 1326507024  }
  0x5d   : > { %v793_v55 = vshrl.u32 %v792_v50, 23  ;;  %v796_v57 = vand.u32 8388607, %v789_v49  ;;  %v900_v2 = vand.u32 8388607, %v893_v62  ;;  %v897_v4 = vshrl.u32 %v896_v63, 23 }
  0x5e   : > { %v1000_v5 = vand.u32 2139095040, %v4638_v0 }
  0x5f   : > { %v3838_v61 = vadd.s32 4294967169, %v793_v55  ;;  %v797_v3 = vor.u32 8388608, %v796_v57  ;;  %v3842_v8 = vadd.s32 4294967169, %v897_v4  ;;  %v901_v9 = vor.u32 8388608, %v900_v2 }
  0x60   : > { %v1001_v14 = vshrl.u32 %v1000_v5, 23 }
  0x61   : > { %v799_v1 = vadd.s32 1, %v3838_v61  ;;  %v4646_v12 = vshll.u32 %v797_v3, 8  ;;  %v903_v13 = vadd.s32 1, %v3842_v8  ;;  %v4657_v32 = vshll.u32 %v901_v9, 8 }
  0x62   : > { %v3846_v3 = vadd.s32 4294967169, %v1001_v14 }
  0x63   : > { %vm800_vm4 = vcmp.gt.s32.totalorder %v799_v1, 0  ;;  %vm904_vm8 = vcmp.gt.s32.totalorder %v903_v13, 0 }
  0x64   : > { %v801_v7 = vsel %vm800_vm4, %v799_v1, 0  ;;  %v905_v47 = vsel %vm904_vm8, %v903_v13, 0 }
  0x65   : > { %v802_v10 = vshrl.u32 %v801_v7, 5  ;;  %v803_v11 = vand.u32 31, %v801_v7  ;;  %v906_v56 = vshrl.u32 %v905_v47, 5  ;;  %v907_v61 = vand.u32 31, %v905_v47 }
  0x67   : > { %v804_v16 = vsub.s32 32, %v803_v11  ;;  %v806_v18 = vshll.u32 %v4399_v17, %v803_v11  ;;  %v809_v20 = vshll.u32 %v4400_v19, %v803_v11  ;;  %v812_v22 = vshll.u32 %v4401_v21, %v803_v11 }
  0x68   : > { %v815_v25 = vshll.u32 %v4402_v23, %v803_v11  ;;  %v818_v29 = vshll.u32 %v4403_v26, %v803_v11  ;;  %vm821_vm5 = vcmp.lt.s32.totalorder %v802_v10, 1  ;;  %vm822_vm6 = vcmp.lt.s32.totalorder %v802_v10, 2 }
  0x69   : > { %v805_v33 = vshrl.u32 %v4399_v17, %v804_v16  ;;  %v807_v34 = vshrl.u32 %v4400_v19, %v804_v16  ;;  %v810_v35 = vshrl.u32 %v4401_v21, %v804_v16  ;;  %v813_v37 = vshrl.u32 %v4402_v23, %v804_v16 }
  0x6a   : > { %v816_v38 = vshrl.u32 %v4403_v26, %v804_v16  ;;  %v819_v40 = vshrl.u32 %v4404_v39, %v804_v16  ;;  %vm824_vm7 = vcmp.lt.s32.totalorder %v802_v10, 4  ;;  %vm823_vm9 = vcmp.lt.s32.totalorder %v802_v10, 3 }
  0x6b   : > { %v808_v41 = vor.u32 %v807_v34, %v806_v18  ;;  %v811_v42 = vor.u32 %v810_v35, %v809_v20  ;;  %v814_v43 = vor.u32 %v813_v37, %v812_v22  ;;  %v908_v9 = vsub.s32 32, %v907_v61 }
  0x6c   : > { %v817_v44 = vor.u32 %v816_v38, %v815_v25  ;;  %v820_v45 = vor.u32 %v819_v40, %v818_v29  ;;  %v910_v11 = vshll.u32 %v4399_v17, %v907_v61  ;;  %v913_v13 = vshll.u32 %v4400_v19, %v907_v61 }
  0x6d   : > { %v825_v48 = vsel %vm821_vm5, %v805_v33, %v808_v41  ;;  %v826_v50 = vsel %vm824_vm7, %v814_v43, 2102212464  ;;  %v829_v51 = vsel %vm821_vm5, %v808_v41, %v811_v42  ;;  %v833_v52 = vsel %vm821_vm5, %v811_v42, %v814_v43 }
  0x6e   : > { %v827_v53 = vsel %vm823_vm9, %v811_v42, %v826_v50  ;;  %v830_v54 = vsel %vm824_vm7, %v817_v44, 920167782  ;;  %v834_v55 = vsel %vm824_vm7, %v820_v45, 1326507024  ;;  %v916_v10 = vshll.u32 %v4401_v21, %v907_v61 }
  0x6f   : > { %v828_v57 = vsel %vm822_vm6, %v825_v48, %v827_v53  ;;  %v831_v59 = vsel %vm823_vm9, %v814_v43, %v830_v54  ;;  %v835_v60 = vsel %vm823_vm9, %v817_v44, %v834_v55  ;;  %v919_v16 = vshll.u32 %v4402_v23, %v907_v61 }
  0x70   : > { %v832_v63 = vsel %vm822_vm6, %v829_v51, %v831_v59  ;;  %v836_v1 = vsel %vm822_vm6, %v833_v52, %v835_v60  ;;  %v844_v2 = vmul.u32 %v4646_v12, %v828_v57  ;;  %v922_v14 = vshll.u32 %v4403_v26, %v907_v61 }
  0x71   : > { %v4673_v4 = vmul.u32.u64.low %v4646_v12, %v836_v1  ;;  %v4674_v5 = vmul.u32.u64.high %v4646_v12, %v836_v1, %v4673_v4  ;;  %v4677_v7 = vmul.u32.u64.low %v4646_v12, %v832_v63  ;;  %v4678_v8 = vmul.u32.u64.high %v4646_v12, %v832_v63, %v4677_v7 }
  0x72   : > { %vm925_vm10 = vcmp.lt.s32.totalorder %v906_v56, 1  ;;  %vm926_vm11 = vcmp.lt.s32.totalorder %v906_v56, 2  ;;  %v909_v18 = vshrl.u32 %v4399_v17, %v908_v9  ;;  %v911_v20 = vshrl.u32 %v4400_v19, %v908_v9 }
  0x73   : > { %v914_v12 = vshrl.u32 %v4401_v21, %v908_v9  ;;  %v917_v22 = vshrl.u32 %v4402_v23, %v908_v9  ;;  %vm846_vm12 = vc.u32 %v4674_v5, %v4677_v7  ;;  %v847_v25 = vadd.s32 1, %v4678_v8 }
  0x74   : > { %v920_v29 = vshrl.u32 %v4403_v26, %v908_v9  ;;  %vm927_vm13 = vcmp.lt.s32.totalorder %v906_v56, 3  ;;  %v912_v33 = vor.u32 %v911_v20, %v910_v11  ;;  %v923_v37 = vshrl.u32 %v4404_v39, %v908_v9 }
  0x75   : > { %v915_v34 = vor.u32 %v914_v12, %v913_v13  ;;  %v918_v35 = vor.u32 %v917_v22, %v916_v10  ;;  %v848_v38 = vsel %vm846_vm12, %v847_v25, %v4678_v8  ;;  %vm928_vm14 = vcmp.lt.s32.totalorder %v906_v56, 4 }
  0x76   : > { %v921_v40 = vor.u32 %v920_v29, %v919_v16  ;;  %v1007_v41 = vadd.s32 1, %v3846_v3  ;;  %v849_v42 = vadd.s32 %v848_v38, %v844_v2  ;;  %v924_v43 = vor.u32 %v923_v37, %v922_v14 }
  0x77   : > { %v929_v44 = vsel %vm925_vm10, %v909_v18, %v912_v33  ;;  %v930_v45 = vsel %vm928_vm14, %v918_v35, 2102212464  ;;  %v933_v48 = vsel %vm925_vm10, %v912_v33, %v915_v34  ;;  %v937_v51 = vsel %vm925_vm10, %v915_v34, %v918_v35 }
  0x78   : > { %v931_v47 = vsel %vm927_vm13, %v915_v34, %v930_v45  ;;  %v934_v50 = vsel %vm928_vm14, %v921_v40, 920167782  ;;  %v850_v52 = vadd.s32 536870912, %v849_v42  ;;  %v938_v54 = vsel %vm928_vm14, %v924_v43, 1326507024 }
  0x79   : > { %v935_v53 = vsel %vm927_vm13, %v918_v35, %v934_v50  ;;  %v997_v55 = vand.u32 2147483647, %v4638_v0  ;;  %v932_v57 = vsel %vm926_vm11, %v929_v44, %v931_v47  ;;  %v939_v60 = vsel %vm927_vm13, %v921_v40, %v938_v54 }
  0x7a   : > { %v936_v59 = vsel %vm926_vm11, %v933_v48, %v935_v53  ;;  %vm1008_vm15 = vcmp.gt.s32.totalorder %v1007_v41, 0  ;;  %v851_v61 = vshrl.u32 %v850_v52, 30  ;;  %v940_v63 = vsel %vm926_vm11, %v937_v51, %v939_v60  ;;  %v4768_v60 = vld [vmem:[%s4572_s24 + $0x4] sm:$0x1] }
  0x7b   : > { %v4707_v1 = vmul.u32.u64.low %v4657_v32, %v936_v59  ;;  %v4708_v2 = vmul.u32.u64.high %v4657_v32, %v936_v59, %v4707_v1  ;;  %v4712_v3 = vmul.u32.u64.low %v4657_v32, %v940_v63  ;;  %v4713_v4 = vmul.u32.u64.high %v4657_v32, %v940_v63, %v4712_v3 }
  0x7c   : > { %v852_v8 = vshll.u32 %v851_v61, 30  ;;  %v1009_v9 = vsel %vm1008_vm15, %v1007_v41, 0  ;;  %v948_v11 = vmul.u32 %v4657_v32, %v932_v57  ;;  %v1004_v13 = vand.u32 8388607, %v997_v55 }
  0x7d   : > { %v4720_v56 = vadd.f32 %v4650_v15, %v4650_v15  ;;  %v951_v16 = vadd.s32 1, %v4708_v2  ;;  %vm950_vm4 = vc.u32 %v4713_v4, %v4707_v1  ;;  %v1011_v14 = vand.u32 31, %v1009_v9 }
  0x7e   : > { %v853_v10 = vsub.s32 %v849_v42, %v852_v8  ;;  %v1005_v22 = vor.u32 8388608, %v1004_v13  ;;  %v875_v29 = vsub.s32 4, %v851_v61  ;;  %v2456_v33 = vrot.slane %v4579_v24, %v4591_v30 }
  0x7f   : > { %v952_v20 = vsel %vm950_vm4, %v951_v16, %v4708_v2  ;;  %v4728_v32 = vadd.f32 %v4720_v56, %v4720_v56  ;;  %v641_v34 = vrot.slane %v4650_v15, %v4591_v30  ;;  %vm791_vm5 = vcmp.lt.s32.totalorder %v4618_v46, 0 }
  0x80   : > { %v855_v18 = vsub.s32 0, %v853_v10  ;;  %v953_v12 = vadd.s32 %v952_v20, %v948_v11  ;;  %v2460_v37 = vrot.slane %v4594_v31, %v4591_v30  ;;  %v1012_v38 = vsub.s32 32, %v1011_v14 }
  0x81   : > { %vm4739_vm6 = vcmp.le.f32.partialorder %v789_v49, 0.7853982  ;;  %v845_v41 = vadd.s32 %v4677_v7, %v4674_v5  ;;  %v689_v15 = vrot.slane %v4720_v56, %v4591_v30  ;;  %v4749_v44 = vshrl.u32 %v1009_v9, 5 }
  0x82   : > { %v3839_v25 = vmin.u32 %v855_v18, %v853_v10  ;;  %v954_v35 = vadd.s32 536870912, %v953_v12  ;;  %v4751_v45 = vshll.u32 %v1005_v22, 8  ;;  %v737_v49 = vrot.slane %v4728_v32, %v4591_v30 }
  0x83   : > { %v876_v48 = vsel %vm791_vm5, %v875_v29, %v851_v61  ;;  %v1014_v5 = vshll.u32 %v4399_v17, %v1011_v14  ;;  %v766_v7 = vsel %vm6073_vm1, %v4644_v6, %v641_v34  ;;  %v1015_v51 = vshrl.u32 %v4400_v19, %v1012_v38 }
  0x84   : > { %v857_v42 = vclz %v3839_v25  ;;  %v4747_v43 = vshrl.u32 %v954_v35, 30  ;;  %v1017_v52 = vshll.u32 %v4400_v19, %v1011_v14  ;;  %v1018_v53 = vshrl.u32 %v4401_v21, %v1012_v38 }
  0x85   : > { %v1020_v54 = vshll.u32 %v4401_v21, %v1011_v14  ;;  %v1021_v57 = vshrl.u32 %v4402_v23, %v1012_v38  ;;  %v1023_v59 = vshll.u32 %v4402_v23, %v1011_v14  ;;  %v1024_v6 = vshrl.u32 %v4403_v26, %v1012_v38 }
  0x86   : > { %v3840_v47 = vadd.s32 4294967294, %v857_v42  ;;  %v956_v50 = vshll.u32 %v4747_v43, 30  ;;  %v1026_v2 = vshll.u32 %v4403_v26, %v1011_v14  ;;  %v1027_v11 = vshrl.u32 %v4404_v39, %v1012_v38 }
  0x87   : > { %v878_v13 = vsel %vm4739_vm6, 0, %v876_v48  ;;  %v1013_v18 = vshrl.u32 %v4399_v17, %v1012_v38  ;;  %v4781_v20 = vadd.f32 %v4768_v60, %v4768_v60  ;;  %v1016_v25 = vor.u32 %v1015_v51, %v1014_v5 }
  0x88   : > { %vm3841_vm7 = vcmp.lt.s32.totalorder %v3840_v47, 0  ;;  %v4770_v63 = vsub.s32 %v953_v12, %v956_v50  ;;  %v1019_v14 = vor.u32 %v1018_v53, %v1017_v52  ;;  %v1022_v29 = vor.u32 %v1021_v57, %v1020_v54 }
  0x89   : > { %v860_v61 = vsel %vm3841_vm7, 0, %v3840_v47  ;;  %v1025_v34 = vor.u32 %v1024_v6, %v1023_v59  ;;  %vm1029_vm8 = vcmp.lt.s32.totalorder %v4749_v44, 1  ;;  %v1028_v47 = vor.u32 %v1027_v11, %v1026_v2 }
  0x8a   : > { %v861_v3 = vsub.s32 32, %v860_v61  ;;  %v862_v8 = vshll.u32 %v853_v10, %v860_v61  ;;  %v865_v9 = vsub.s32 4294967266, %v860_v61  ;;  %v959_v16 = vsub.s32 0, %v4770_v63 }
  0x8b   : > { %vm1032_vm9 = vcmp.lt.s32.totalorder %v4749_v44, 4  ;;  %v949_v38 = vadd.s32 %v4707_v1, %v4713_v4  ;;  %vm1031_vm10 = vcmp.lt.s32.totalorder %v4749_v44, 3  ;;  %vm895_vm11 = vcmp.lt.s32.totalorder %v4631_v58, 0 }
  0x8c   : > { %v863_v12 = vshrl.u32 %v845_v41, %v861_v3  ;;  %v866_v22 = vadd.s32 127, %v865_v9  ;;  %v3843_v10 = vmin.u32 %v959_v16, %v4770_v63  ;;  %v979_v41 = vsub.s32 4, %v4747_v43 }
  0x8d   : > { %vm1030_vm12 = vcmp.lt.s32.totalorder %v4749_v44, 2  ;;  %v1034_v51 = vsel %vm1032_vm9, %v1022_v29, 2102212464  ;;  %v1037_v53 = vsel %vm1029_vm8, %v1016_v25, %v1019_v14  ;;  %v1038_v1 = vsel %vm1032_vm9, %v1025_v34, 920167782 }
  0x8e   : > { %v864_v35 = vor.u32 %v863_v12, %v862_v8  ;;  %v867_v42 = vshll.u32 %v866_v22, 23  ;;  %v961_v48 = vclz %v3843_v10  ;;  %v1041_v4 = vsel %vm1029_vm8, %v1019_v14, %v1022_v29 }
  0x8f   : > { %v1033_v57 = vsel %vm1029_vm8, %v1013_v18, %v1016_v25  ;;  %v1039_v59 = vsel %vm1031_vm10, %v1022_v29, %v1038_v1  ;;  %v1042_v61 = vsel %vm1032_vm9, %v1028_v47, 1326507024  ;;  %vm4808_vm13 = vcmp.le.f32.partialorder %v893_v62, 0.7853982 }
  0x90   : > { %v868_v5 = vor.u32 4788187, %v867_v42  ;;  %v871_v50 = vcvt.s32.f32 %v864_v35  ;;  %v3844_v52 = vadd.s32 4294967294, %v961_v48  ;;  %v1035_v2 = vsel %vm1031_vm10, %v1019_v14, %v1034_v51  ;;  %v570_v42 = vld [vmem:[%s4568_s23 + $0x8] sm:$0x3] }
  0x91   : > { %v1043_v3 = vsel %vm1031_vm10, %v1025_v34, %v1042_v61  ;;  %v775_v8 = vsel %vm6074_vm2, %v766_v7, %v689_v15  ;;  %v1040_v62 = vsel %vm1030_vm12, %v1037_v53, %v1039_v59  ;;  %v1036_v7 = vsel %vm1030_vm12, %v1033_v57, %v1035_v2 }
  0x92   : > { %v869_v54 = vand.u32 2147483647, %v868_v5  ;;  %vm3845_vm14 = vcmp.lt.s32.totalorder %v3844_v52, 0  ;;  %v1044_v16 = vsel %vm1030_vm12, %v1041_v4, %v1043_v3  ;;  %v4829_v56 = vsel %vm780_vm3, %v775_v8, %v737_v49 }
  0x93   : > { %v964_v11 = vsel %vm3845_vm14, 0, %v3844_v52  ;;  %v4834_v25 = vmul.u32.u64.low %v4751_v45, %v1044_v16  ;;  %v4835_v14 = vmul.u32.u64.high %v4751_v45, %v1044_v16, %v4834_v25  ;;  %v882_v49 = vadd.s32 3, %v878_v13 }
  0x94   : > { %v872_v9 = vmul.f32 %v871_v50, %v869_v54  ;;  %v965_v18 = vsub.s32 32, %v964_v11  ;;  %v966_v12 = vshll.u32 %v4770_v63, %v964_v11  ;;  %v969_v22 = vsub.s32 4294967266, %v964_v11  ;;  %v572_v50 = vld [vmem:[%s4568_s23 + $0x18] sm:$0x3] }
  0x95   : > { %v4838_v63 = vmul.u32.u64.low %v4751_v45, %v1040_v62  ;;  %v4839_v34 = vmul.u32.u64.high %v4751_v45, %v1040_v62, %v4838_v63  ;;  %v4844_v35 = vand.u32 3, %v878_v13  ;;  %v1104_v44 = vand.u32 2139095040, %v4829_v56 }
  0x96   : > { %v873_v15 = vxor.u32 2147483648, %v872_v9  ;;  %v967_v10 = vshrl.u32 %v949_v38, %v965_v18  ;;  %v970_v29 = vadd.s32 127, %v969_v22  ;;  %v980_v5 = vsel %vm895_vm11, %v979_v41, %v4747_v43 }
  0x97   : > { %v1052_v51 = vmul.u32 %v4751_v45, %v1036_v7  ;;  %vm1054_vm15 = vc.u32 %v4835_v14, %v4838_v63  ;;  %v1105_v13 = vshrl.u32 %v1104_v44, 23  ;;  %v1055_v40 = vadd.s32 1, %v4839_v34 }
  0x98   : > { %v874_v32 = vsel %vm791_vm5, %v873_v15, %v872_v9  ;;  %v968_v38 = vor.u32 %v967_v10, %v966_v12  ;;  %v971_v48 = vshll.u32 %v970_v29, 23  ;;  %v4863_v1 = vsel %vm6074_vm2, %v570_v42, %v2456_v33 }
  0x99   : > { %v877_v47 = vsel %vm4739_vm6, %v4618_v46, %v874_v32  ;;  %v982_v43 = vsel %vm4808_vm13, 0, %v980_v5  ;;  %v1101_v45 = vand.u32 2147483647, %v4829_v56  ;;  %v3850_v41 = vadd.s32 4294967169, %v1105_v13 }
  0x9a   : > { %4231 = vcosq.f32 %v877_v47  ;;  %v972_v52 = vor.u32 4788187, %v971_v48  ;;  %v975_v53 = vcvt.s32.f32 %v968_v38  ;;  %v4872_v54 = vsel %vm6074_vm2, %v572_v50, %v2460_v37 }
  0x9b   : > { %4233 = vsinq.f32 %v877_v47  ;;  %v1056_v57 = vsel %vm1054_vm15, %v1055_v40, %v4839_v34  ;;  %v606_v24 = vadd.f32 %v4781_v20, %v4781_v20  ;;  %v883_v33 = vand.u32 3, %v882_v49 }
  0x9c   : > { %v973_v4 = vand.u32 2147483647, %v972_v52  ;;  %v1057_v59 = vadd.s32 %v1056_v57, %v1052_v51  ;;  %v1111_v61 = vadd.s32 1, %v3850_v41  ;;  %v645_v2 = vrot.slane %v4781_v20, %v4591_v30 }
  0x9d   : > { %vm881_vm4 = vweird.f32 %v4618_v46  ;;  %vm1715_vm5 = vcmp.lt.s32.totalorder %v4844_v35, 2  ;;  %vm1716_vm6 = vcmp.eq.s32.totalorder %v4844_v35, 0  ;;  %v986_v37 = vadd.s32 3, %v982_v43 }
  0x9e   : > { %v976_v31 = vmul.f32 %v975_v53, %v973_v4  ;;  %vm1719_vm7 = vcmp.eq.s32.totalorder %v4844_v35, 2  ;;  %v1058_v3 = vadd.s32 536870912, %v1057_v59  ;;  %v1108_v8 = vand.u32 8388607, %v1101_v45 }
  0x9f   : > { %vm1112_vm8 = vcmp.gt.s32.totalorder %v1111_v61, 0  ;;  %vm999_vm9 = vcmp.lt.s32.totalorder %v4638_v0, 0  ;;  %v614_v20 = vadd.f32 %v606_v24, %v606_v24  ;;  %v693_v62 = vrot.slane %v606_v24, %v4591_v30 }
  0xa0   : > { %v977_v9 = vxor.u32 2147483648, %v976_v31  ;;  %v1113_v11 = vsel %vm1112_vm8, %v1111_v61, 0  ;;  %vm884_vm10 = vcmp.lt.s32.totalorder %v883_v33, 2  ;;  %vm885_vm12 = vcmp.eq.s32.totalorder %v883_v33, 0 }
  0xa1   : > { %v1059_v16 = vshrl.u32 %v1058_v3, 30  ;;  %v767_v18 = vsel %vm6073_vm1, %v4768_v60, %v645_v2  ;;  %vm2557_vm14 = vcmask 1046528   ;;  %v4891_v22 = vand.u32 3, %v986_v37 }
  0xa2   : > { %v978_v12 = vsel %vm895_vm11, %v977_v9, %v976_v31  ;;  %v4893_v15 = vand.u32 3, %v982_v43  ;;  %v4895_v7 = vand.u32 31, %v1113_v11  ;;  %vm888_vm15 = vcmp.eq.s32.totalorder %v883_v33, 2  ;;  %v569_v31 = vld [vmem:[%s4568_s23] sm:$0xff] }
  0xa3   : > { %v981_v10 = vsel %vm4808_vm13, %v4631_v58, %v978_v12  ;;  %vm4902_vm8 = vcmp.le.f32.partialorder %v997_v55, 0.7853982  ;;  %v1060_v34 = vshll.u32 %v1059_v16, 30  ;;  %v1109_v32 = vor.u32 8388608, %v1108_v8 }
  0xa4   : > { %v4232_v25 = vpop.eup %4231  ;;  %4235 = vcosq.f32 %v981_v10  ;;  %v741_v42 = vrot.slane %v614_v20, %v4591_v30  ;;  %v776_v47 = vsel %vm6074_vm2, %v767_v18, %v693_v62  ;;  %v1083_v6 = vsub.s32 4, %v1059_v16 }
  0xa5   : > { %v4234_v49 = vpop.eup %4233  ;;  %v889_v44 = vxor.u32 2147483648, %v4232_v25  ;;  %4237 = vsinq.f32 %v981_v10  ;;  %v4908_v48 = vsub.s32 %v1057_v59, %v1060_v34  ;;  %vm992_vm11 = vcmp.eq.s32.totalorder %v4891_v22, 2 }
  0xa6   : > { %v886_v38 = vxor.u32 2147483648, %v4234_v49  ;;  %vm1822_vm13 = vcmp.eq.s32.totalorder %v4893_v15, 2  ;;  %v4916_v50 = vadd.s32 %v4838_v63, %v4835_v14  ;;  %v1116_v51 = vsub.s32 32, %v4895_v7 }
  0xa7   : > { %v890_v5 = vsel %vm888_vm15, %v889_v44, %v4234_v49  ;;  %v1721_v55 = vsel %vm1719_vm7, %v889_v44, %v4234_v49  ;;  %vm989_vm15 = vcmp.eq.s32.totalorder %v4891_v22, 0  ;;  %vm1819_vm1 = vcmp.eq.s32.totalorder %v4893_v15, 0 }
  0xa8   : > { %v887_v13 = vsel %vm885_vm12, %v4232_v25, %v886_v38  ;;  %v1718_v52 = vsel %vm1716_vm6, %v4232_v25, %v886_v38  ;;  %v1063_v53 = vsub.s32 0, %v4908_v48  ;;  %v4925_v40 = vshll.u32 %v1109_v32, 8 }
  0xa9   : > { %v891_v43 = vsel %vm884_vm10, %v887_v13, %v890_v5  ;;  %v1722_v14 = vsel %vm1715_vm5, %v1718_v52, %v1721_v55  ;;  %vm988_vm7 = vcmp.lt.s32.totalorder %v4891_v22, 2  ;;  %vm1818_vm12 = vcmp.lt.s32.totalorder %v4893_v15, 2  ;;  %v4999_v15 = vld [vmem:[%s6065_s3 + $0x10] sm:$0xff] }
  0xaa   : > { %v4932_v63 = vshrl.u32 %v1113_v11, 5  ;;  %v4935_v41 = vsel %vm780_vm3, %v776_v47, %v741_v42  ;;  %v892_v4 = vsel %vm881_vm4, nan, %v891_v43  ;;  %v1723_v57 = vsel %vm881_vm4, nan, %v1722_v14 }
  0xab   : > { %vm985_vm6 = vweird.f32 %v4631_v58  ;;  %v3847_v35 = vmin.u32 %v1063_v53, %v4908_v48  ;;  %v1084_v24 = vsel %vm999_vm9, %v1083_v6, %v1059_v16  ;;  %v2501_v33 = vrot.slane %v892_v4, 5 }
  0xac   : > { %v2525_v59 = vrot.slane %v1723_v57, 1  ;;  %v1118_v61 = vshll.u32 %v4399_v17, %v4895_v7  ;;  %v1119_v2 = vshrl.u32 %v4400_v19, %v1116_v51  ;;  %v1121_v46 = vshll.u32 %v4400_v19, %v4895_v7 }
  0xad   : > { %v1065_v37 = vclz %v3847_v35  ;;  %v1205_v3 = vand.u32 2147483647, %v4935_v41  ;;  %v1208_v8 = vand.u32 2139095040, %v4935_v41  ;;  %v2549_v9 = vsel %vm780_vm3, %v4863_v1, %v2501_v33 }
  0xae   : > { %v4957_v11 = vsel %vm4902_vm8, 0, %v1084_v24  ;;  %v1117_v20 = vshrl.u32 %v4399_v17, %v1116_v51  ;;  %v1122_v62 = vshrl.u32 %v4401_v21, %v1116_v51  ;;  %v2558_v16 = vsel %vm2557_vm14, %v2549_v9, %v2525_v59  ;;  %v4236_v10 = vpop.eup %4235  ;;  %v571_v9 = vld [vmem:[%s4568_s23 + $0x10] sm:$0xff] }
  0xaf   : > { %v3848_v18 = vadd.s32 4294967294, %v1065_v37  ;;  %v1124_v12 = vshll.u32 %v4401_v21, %v4895_v7  ;;  %v1125_v25 = vshrl.u32 %v4402_v23, %v1116_v51  ;;  %v4100_v34 = vpack.c.bf16 %v2558_v16, %v569_v31  ;;  %v4238_v44 = vpop.eup %4237 }
  0xb0   : > { %v1120_v32 = vor.u32 %v1119_v2, %v1118_v61  ;;  %v1127_v1 = vshll.u32 %v4402_v23, %v4895_v7  ;;  %v1128_v49 = vshrl.u32 %v4403_v26, %v1116_v51  ;;  %v993_v42 = vxor.u32 2147483648, %v4236_v10 }
  0xb1   : > { %vm3849_vm4 = vcmp.lt.s32.totalorder %v3848_v18, 0  ;;  %v1123_v47 = vor.u32 %v1122_v62, %v1121_v46  ;;  %v1126_v38 = vor.u32 %v1125_v25, %v1124_v12  ;;  %4101 = vmatprep.subr.bf16.mxu0 %v4100_v34  ;;  %v990_v6 = vxor.u32 2147483648, %v4238_v44  ;;  %v5023_v25 = vld [vmem:[%s6065_s3 + $0x18] sm:$0xff] }
  0xb2   : > { %v1068_v5 = vsel %vm3849_vm4, 0, %v3848_v18  ;;  %v1130_v55 = vshll.u32 %v4403_v26, %v4895_v7  ;;  %v1131_v13 = vshrl.u32 %v4404_v39, %v1116_v51  ;;  %v994_v52 = vsel %vm992_vm11, %v993_v42, %v4238_v44  ;;  %4103 = vmatpush3.bf16.msra.mxu0 %v4100_v34 }
  0xb3   : > { %v1824_v53 = vsel %vm1822_vm13, %v993_v42, %v4238_v44  ;;  %v1069_v43 = vsub.s32 32, %v1068_v5  ;;  %v1070_v14 = vshll.u32 %v4908_v48, %v1068_v5  ;;  %v991_v4 = vsel %vm989_vm15, %v4236_v10, %v990_v6  ;;  %4008 = vmatprep.subr.msk.mxu0 %vm780_vm3, %v2525_v59  ;;  %v4988_v48 = vld [vmem:[%s6065_s3 + $0x8] sm:$0xff] }
  0xb4   : > { %v1821_v57 = vsel %vm1819_vm1, %v4236_v10, %v990_v6  ;;  %v1073_v7 = vsub.s32 4294967266, %v1068_v5  ;;  %v1129_v51 = vor.u32 %v1128_v49, %v1127_v1  ;;  %v995_v35 = vsel %vm988_vm7, %v991_v4, %v994_v52 }
  0xb5   : > { %v1825_v24 = vsel %vm1818_vm12, %v1821_v57, %v1824_v53  ;;  %v1071_v33 = vshrl.u32 %v4916_v50, %v1069_v43  ;;  %vm1133_vm1 = vcmp.lt.s32.totalorder %v4932_v63, 1  ;;  %v996_v61 = vsel %vm985_vm6, nan, %v995_v35 }
  0xb6   : > { %v1826_v22 = vsel %vm985_vm6, nan, %v1825_v24  ;;  %v1074_v2 = vadd.s32 127, %v1073_v7  ;;  %v1132_v31 = vor.u32 %v1131_v13, %v1130_v55  ;;  %v2502_v37 = vrot.slane %v996_v61, 5  ;;  %4009 = vmatpush3.msk.msra.mxu0 %vm780_vm3, %v2525_v59  ;;  %v5044_v13 = vld [vmem:[%s4572_s24 + $0x5] sm:$0x1] }
  0xb7   : > { %v2526_v46 = vrot.slane %v1826_v22, 1  ;;  %v1072_v50 = vor.u32 %v1071_v33, %v1070_v14  ;;  %vm1135_vm5 = vcmp.lt.s32.totalorder %v4932_v63, 3  ;;  %4011 = vmatmul.mubr.msk.f32.vlgmr.msra.gmra.mrb[0].mxu0 %vm2586_vm0, %v4988_v48  ;;  %vm1134_vm10 = vcmp.lt.s32.totalorder %v4932_v63, 2 }
  0xb8   : > { %v1075_v58 = vshll.u32 %v1074_v2, 23  ;;  %vm1136_vm11 = vcmp.lt.s32.totalorder %v4932_v63, 4  ;;  %v1141_v62 = vsel %vm1133_vm1, %v1120_v32, %v1123_v47  ;;  %v2550_v16 = vsel %vm780_vm3, %v4872_v54, %v2502_v37  ;;  %4013 = vmatprep.mubr.msk.f32.mxu0 %vm2586_vm0, %v4999_v15 }
  0xb9   : > { %v1137_v59 = vsel %vm1133_vm1, %v1117_v20, %v1120_v32  ;;  %v1138_v18 = vsel %vm1136_vm11, %v1126_v38, 2102212464  ;;  %v1142_v12 = vsel %vm1136_vm11, %v1129_v51, 920167782  ;;  %v2559_v54 = vsel %vm2557_vm14, %v2550_v16, %v2526_v46 }
  0xba   : > { %v1076_v10 = vor.u32 4788187, %v1075_v58  ;;  %v1079_v34 = vcvt.s32.f32 %v1072_v50  ;;  %v1143_v20 = vsel %vm1135_vm5, %v1126_v38, %v1142_v12  ;;  %v4104_v32 = vpack.c.bf16 %v2559_v54, %v571_v9 }
  0xbb   : > { %v1139_v1 = vsel %vm1135_vm5, %v1123_v47, %v1138_v18  ;;  %v1144_v49 = vsel %vm1134_vm10, %v1141_v62, %v1143_v20  ;;  %v1145_v44 = vsel %vm1133_vm1, %v1123_v47, %v1126_v38  ;;  %v1146_v6 = vsel %vm1136_vm11, %v1132_v31, 1326507024  ;;  %4014 = vmatmul.mubr.msk.f32.gmra.mrb[2].mxu0 %vm2586_vm0, %v5023_v25 }
  0xbc   : > { %v1077_v42 = vand.u32 2147483647, %v1076_v10  ;;  %v5037_v5 = vmul.u32.u64.low %v4925_v40, %v1144_v49  ;;  %v5038_v55 = vmul.u32.u64.high %v4925_v40, %v1144_v49, %v5037_v5  ;;  %4105 = vmatprep.subr.bf16.mxu1 %v4104_v32  ;;  %v1147_v52 = vsel %vm1135_vm5, %v1129_v51, %v1146_v6  ;;  %4034 = vmatprep.mubr.msk.f32.mxu0 %vm2586_vm0, %v4588_v28  ;;  %v5065_v51 = vld [vmem:[%s4572_s24 + $0x6] sm:$0x1] }
  0xbd   : > { %v1209_v47 = vshrl.u32 %v1208_v8, 23  ;;  %4107 = vmatpush3.bf16.msra.mxu1 %v4104_v32  ;;  %v1090_v53 = vadd.s32 3, %v4957_v11  ;;  %v1140_v43 = vsel %vm1134_vm10, %v1137_v59, %v1139_v1  ;;  %v1148_v14 = vsel %vm1134_vm10, %v1145_v44, %v1147_v52 }
  0xbe   : > { %v1080_v38 = vmul.f32 %v1079_v34, %v1077_v42  ;;  %4020 = vmatprep.subr.msk.mxu1 %vm780_vm3, %v2526_v46  ;;  %v5059_v4 = vmul.u32.u64.low %v4925_v40, %v1148_v14  ;;  %v5060_v57 = vmul.u32.u64.high %v4925_v40, %v1148_v14, %v5059_v4  ;;  %v599_v8 = vadd.f32 %v5044_v13, %v5044_v13 }
  0xbf   : > { %v3854_v7 = vadd.s32 4294967169, %v1209_v47  ;;  %v1159_v24 = vadd.s32 1, %v5038_v55  ;;  %v1212_v63 = vand.u32 8388607, %v1205_v3  ;;  %v2464_v33 = vrot.slane %v4605_v36, %v4591_v30  ;;  %v574_v36 = vld [vmem:[%s4568_s23 + $0x28] sm:$0x3] }
  0xc0   : > { %v1081_v35 = vxor.u32 2147483648, %v1080_v38  ;;  %v1156_v61 = vmul.u32 %v4925_v40, %v1140_v43  ;;  %v5076_v31 = vand.u32 3, %v1090_v53  ;;  %v5079_v37 = vand.u32 3, %v4957_v11 }
  0xc1   : > { %v1215_v22 = vadd.s32 1, %v3854_v7  ;;  %4021 = vmatpush3.msk.msra.mxu1 %vm780_vm3, %v2526_v46  ;;  %v5083_v50 = vadd.f32 %v5065_v51, %v5065_v51  ;;  %v607_v46 = vadd.f32 %v599_v8, %v599_v8  ;;  %v1213_v9 = vor.u32 8388608, %v1212_v63 }
  0xc2   : > { %v1082_v2 = vsel %vm999_vm9, %v1081_v35, %v1080_v38  ;;  %4023 = vmatmul.mubr.msk.f32.vlgmr.msra.gmra.mrb[0].mxu1 %vm2586_vm0, %v4988_v48  ;;  %vm1158_vm9 = vc.u32 %v5060_v57, %v5037_v5  ;;  %v649_v59 = vrot.slane %v599_v8, %v4591_v30  ;;  %v5098_v29 = vsel %vm6074_vm2, %v574_v36, %v2464_v33 }
  0xc3   : > { %v1085_v40 = vsel %vm4902_vm8, %v4638_v0, %v1082_v2  ;;  %vm1216_vm13 = vcmp.gt.s32.totalorder %v1215_v22, 0  ;;  %v1160_v11 = vsel %vm1158_vm9, %v1159_v24, %v5038_v55  ;;  %4025 = vmatprep.mubr.msk.f32.mxu1 %vm2586_vm0, %v4999_v15  ;;  %vm1093_vm8 = vcmp.eq.s32.totalorder %v5076_v31, 0 }
  0xc4   : > { %4239 = vcosq.f32 %v1085_v40  ;;  %v1217_v58 = vsel %vm1216_vm13, %v1215_v22, 0  ;;  %v1161_v62 = vadd.s32 %v1160_v11, %v1156_v61  ;;  %vm1096_vm15 = vcmp.eq.s32.totalorder %v5076_v31, 2 }
  0xc5   : > { %4241 = vsinq.f32 %v1085_v40  ;;  %v1219_v16 = vand.u32 31, %v1217_v58  ;;  %vm1922_vm7 = vcmp.eq.s32.totalorder %v5079_v37, 0  ;;  %v5105_v54 = vadd.f32 %v607_v46, %v607_v46 }
  0xc6   : > { %v1162_v18 = vadd.s32 536870912, %v1161_v62  ;;  %4026 = vmatmul.mubr.msk.f32.gmra.mrb[2].mxu1 %vm2586_vm0, %v5023_v25  ;;  %vm1092_vm12 = vcmp.lt.s32.totalorder %v5076_v31, 2  ;;  %vm1921_vm6 = vcmp.lt.s32.totalorder %v5079_v37, 2  ;;  %vm1925_vm4 = vcmp.eq.s32.totalorder %v5079_v37, 2 }
  0xc7   : > { %v1220_v12 = vsub.s32 32, %v1219_v16  ;;  %4046 = vmatprep.mubr.msk.f32.mxu1 %vm2586_vm0, %v4588_v28  ;;  %v5112_v10 = vshll.u32 %v1213_v9, 8  ;;  %v697_v34 = vrot.slane %v607_v46, %v4591_v30  ;;  %v5117_v20 = vadd.f32 %v5083_v50, %v5083_v50 }
  0xc8   : > { %vm1089_vm1 = vweird.f32 %v4638_v0  ;;  %v5120_v32 = vshrl.u32 %v1162_v18, 30  ;;  %v5122_v1 = vshrl.u32 %v1217_v58, 5  ;;  %v1231_v49 = vshll.u32 %v4402_v23, %v1219_v16 }
  0xc9   : > { %vm6096_vm5 = vcmask 1040384   ;;  %v5129_v28 = vadd.s32 %v5037_v5, %v5060_v57  ;;  %v1228_v42 = vshll.u32 %v4401_v21, %v1219_v16  ;;  %v1229_v6 = vshrl.u32 %v4402_v23, %v1220_v12 }
  0xca   : > { %v768_v44 = vsel %vm6096_vm5, %v5044_v13, %v649_v59  ;;  %v1232_v55 = vshrl.u32 %v4403_v26, %v1220_v12  ;;  %v1164_v52 = vshll.u32 %v5120_v32, 30  ;;  %v1222_v47 = vshll.u32 %v4399_v17, %v1219_v16 }
  0xcb   : > { %v1223_v38 = vshrl.u32 %v4400_v19, %v1220_v12  ;;  %v745_v53 = vrot.slane %v5105_v54, %v4591_v30  ;;  %v1225_v43 = vshll.u32 %v4400_v19, %v1219_v16  ;;  %v1226_v5 = vshrl.u32 %v4401_v21, %v1220_v12 }
  0xcc   : > { %v777_v14 = vsel %vm6074_vm2, %v768_v44, %v697_v34  ;;  %v5144_v4 = vadd.f32 %v5117_v20, %v5117_v20  ;;  %v5146_v57 = vsub.s32 %v1161_v62, %v1164_v52  ;;  %v1233_v7 = vor.u32 %v1232_v55, %v1231_v49 }
  0xcd   : > { %v1234_v8 = vshll.u32 %v4403_v26, %v1219_v16  ;;  %vm1237_vm10 = vcmp.lt.s32.totalorder %v5122_v1, 1  ;;  %v1221_v24 = vshrl.u32 %v4399_v17, %v1220_v12  ;;  %v1230_v63 = vor.u32 %v1229_v6, %v1228_v42 }
  0xce   : > { %v4240_v35 = vpop.eup %4239  ;;  %v1235_v33 = vshrl.u32 %v4404_v39, %v1220_v12  ;;  %vm1240_vm11 = vcmp.lt.s32.totalorder %v5122_v1, 4  ;;  %v1167_v2 = vsub.s32 0, %v5146_v57  ;;  %v1224_v36 = vor.u32 %v1223_v38, %v1222_v47 }
  0xcf   : > { %v4242_v61 = vpop.eup %4241  ;;  %v1097_v22 = vxor.u32 2147483648, %v4240_v35  ;;  %vm1238_vm9 = vcmp.lt.s32.totalorder %v5122_v1, 2  ;;  %v1227_v46 = vor.u32 %v1226_v5, %v1225_v43  ;;  %vm1239_vm13 = vcmp.lt.s32.totalorder %v5122_v1, 3  ;;  %v573_v5 = vld [vmem:[%s4568_s23 + $0x20] sm:$0xff] }
  0xd0   : > { %v1094_v40 = vxor.u32 2147483648, %v4242_v61  ;;  %v1242_v11 = vsel %vm1240_vm11, %v1230_v63, 2102212464  ;;  %v3851_v62 = vmin.u32 %v1167_v2, %v5146_v57  ;;  %v1246_v16 = vsel %vm1240_vm11, %v1233_v7, 920167782 }
  0xd1   : > { %v1098_v9 = vsel %vm1096_vm15, %v1097_v22, %v4242_v61  ;;  %v1927_v58 = vsel %vm1925_vm4, %v1097_v22, %v4242_v61  ;;  %v1236_v12 = vor.u32 %v1235_v33, %v1234_v8  ;;  %v1241_v54 = vsel %vm1237_vm10, %v1221_v24, %v1224_v36 }
  0xd2   : > { %v1095_v59 = vsel %vm1093_vm8, %v4240_v35, %v1094_v40  ;;  %v1924_v18 = vsel %vm1922_vm7, %v4240_v35, %v1094_v40  ;;  %v1169_v44 = vclz %v3851_v62  ;;  %v1243_v42 = vsel %vm1239_vm13, %v1227_v46, %v1242_v11  ;;  %vm6097_vm7 = vmmov %vm6096_vm5 }
  0xd3   : > { %v1099_v34 = vsel %vm1092_vm12, %v1095_v59, %v1098_v9  ;;  %v1928_v49 = vsel %vm1921_vm6, %v1924_v18, %v1927_v58  ;;  %v1245_v52 = vsel %vm1237_vm10, %v1224_v36, %v1227_v46  ;;  %v1247_v31 = vsel %vm1239_vm13, %v1230_v63, %v1246_v16 }
  0xd4   : > { %v1100_v6 = vsel %vm1089_vm1, nan, %v1099_v34  ;;  %v1929_v55 = vsel %vm1089_vm1, nan, %v1928_v49  ;;  %v3852_v37 = vadd.s32 4294967294, %v1169_v44  ;;  %v1249_v43 = vsel %vm1237_vm10, %v1227_v46, %v1230_v63 }
  0xd5   : > { %v2503_v47 = vrot.slane %v1100_v6, 5  ;;  %v2527_v38 = vrot.slane %v1929_v55, 1  ;;  %v1187_v8 = vsub.s32 4, %v5120_v32  ;;  %v1244_v35 = vsel %vm1238_vm9, %v1241_v54, %v1243_v42 }
  0xd6   : > { %v1250_v0 = vsel %vm1240_vm11, %v1236_v12, 1326507024  ;;  %v653_v24 = vrot.slane %v5083_v50, %v4591_v30  ;;  %vm3853_vm8 = vcmp.lt.s32.totalorder %v3852_v37, 0  ;;  %v1248_v61 = vsel %vm1238_vm9, %v1245_v52, %v1247_v31  ;;  %v4281_v52 = vld [vmem:[%s4572_s24 + $0x3] ss:$0 sm:$0xff] }
  0xd7   : > { %v2551_v33 = vsel %vm780_vm3, %v5098_v29, %v2503_v47  ;;  %v1251_v63 = vsel %vm1239_vm13, %v1233_v7, %v1250_v0  ;;  %v1172_v2 = vsel %vm3853_vm8, 0, %v3852_v37  ;;  %v5205_v40 = vsel %vm780_vm3, %v777_v14, %v745_v53  ;;  %v576_v37 = vld [vmem:[%s4568_s23 + $0x38] sm:$0x3] }
  0xd8   : > { %v2560_v22 = vsel %vm2557_vm14, %v2551_v33, %v2527_v38  ;;  %v1252_v36 = vsel %vm1238_vm9, %v1249_v43, %v1251_v63  ;;  %v1173_v46 = vsub.s32 32, %v1172_v2  ;;  %v1174_v29 = vshll.u32 %v5146_v57, %v1172_v2 }
  0xd9   : > { %v4108_v50 = vpack.c.bf16 %v2560_v22, %v573_v5  ;;  %v1177_v11 = vsub.s32 4294967266, %v1172_v2  ;;  %v5209_v9 = vmul.u32.u64.low %v5112_v10, %v1252_v36  ;;  %v5210_v58 = vmul.u32.u64.high %v5112_v10, %v1252_v36, %v5209_v9  ;;  %v5272_v36 = vld [vmem:[%s6065_s3] sm:$0xff] }
  0xda   : > { %v5213_v7 = vmul.u32.u64.low %v5112_v10, %v1248_v61  ;;  %v5214_v62 = vmul.u32.u64.high %v5112_v10, %v1248_v61, %v5213_v7  ;;  %vm1103_vm15 = vcmp.lt.s32.totalorder %v4829_v56, 0  ;;  %v1175_v1 = vshrl.u32 %v5129_v28, %v1173_v46 }
  0xdb   : > { %4109 = vmatprep.subr.bf16.mxu0 %v4108_v50  ;;  %v1178_v53 = vadd.s32 127, %v1177_v11  ;;  %v1188_v14 = vsel %vm1103_vm15, %v1187_v8, %v5120_v32  ;;  %v1312_v57 = vand.u32 2139095040, %v5205_v40  ;;  %v701_v16 = vrot.slane %v5117_v20, %v4591_v30  ;;  %v578_v8 = vld [vmem:[%s4568_s23 + $0x48] sm:$0x3] }
  0xdc   : > { %4111 = vmatpush3.bf16.msra.mxu0 %v4108_v50  ;;  %v1176_v59 = vor.u32 %v1175_v1, %v1174_v29  ;;  %v1260_v12 = vmul.u32 %v5112_v10, %v1244_v35  ;;  %v769_v28 = vsel %vm6097_vm7, %v5065_v51, %v653_v24  ;;  %vm1262_vm12 = vc.u32 %v5210_v58, %v5213_v7 }
  0xdd   : > { %v1179_v18 = vshll.u32 %v1178_v53, 23  ;;  %4032 = vmatprep.subr.msk.mxu0 %vm780_vm3, %v2527_v38  ;;  %v1263_v32 = vadd.s32 1, %v5214_v62  ;;  %v1313_v54 = vshrl.u32 %v1312_v57, 23  ;;  %v749_v34 = vrot.slane %v5144_v4, %v4591_v30 }
  0xde   : > { %vm5236_vm6 = vcmp.le.f32.partialorder %v1101_v45, 0.7853982  ;;  %v1183_v49 = vcvt.s32.f32 %v1176_v59  ;;  %v778_v51 = vsel %vm6074_vm2, %v769_v28, %v701_v16  ;;  %v1309_v4 = vand.u32 2147483647, %v5205_v40 }
  0xdf   : > { %v1180_v10 = vor.u32 4788187, %v1179_v18  ;;  %v1190_v44 = vsel %vm5236_vm6, 0, %v1188_v14  ;;  %v1264_v42 = vsel %vm1262_vm12, %v1263_v32, %v5214_v62  ;;  %v3858_v6 = vadd.s32 4294967169, %v1313_v54 }
  0xe0   : > { %4033 = vmatpush3.msk.msra.mxu0 %vm780_vm3, %v2527_v38  ;;  %v1265_v55 = vadd.s32 %v1264_v42, %v1260_v12  ;;  %v2472_v31 = vrot.slane %v4768_v60, %v4591_v30  ;;  %v5254_v38 = vsel %vm780_vm3, %v778_v51, %v749_v34  ;;  %v1194_v5 = vadd.s32 3, %v1190_v44  ;;  %v5300_v34 = vld [vmem:[%s4572_s24 + $0x7] sm:$0x1] }
  0xe1   : > { %v1181_v45 = vand.u32 2147483647, %v1180_v10  ;;  %4035 = vmatmul.mubr.msk.f32.vlgmr.msra.gmra.mrb[4].mxu0 %vm2586_vm0, %v4988_v48  ;;  %v1319_v47 = vadd.s32 1, %v3858_v6  ;;  %v1316_v0 = vand.u32 8388607, %v1309_v4  ;;  %v1416_v60 = vand.u32 2139095040, %v5254_v38 }
  0xe2   : > { %4037 = vmatprep.mubr.msk.f32.mxu0 %vm2586_vm0, %v4999_v15  ;;  %v1266_v35 = vadd.s32 536870912, %v1265_v55  ;;  %v5264_v63 = vsel %vm6074_vm2, %v576_v37, %v4281_v52  ;;  %v5267_v22 = vsel %vm6074_vm2, %v578_v8, %v2472_v31  ;;  %v5278_v46 = vand.u32 3, %v1194_v5 }
  0xe3   : > { %v1184_v43 = vmul.f32 %v1183_v49, %v1181_v45  ;;  %vm1320_vm4 = vcmp.gt.s32.totalorder %v1319_v47, 0  ;;  %v5280_v29 = vand.u32 3, %v1190_v44  ;;  %vm1207_vm1 = vcmp.lt.s32.totalorder %v4935_v41, 0 }
  0xe4   : > { %v1267_v33 = vshrl.u32 %v1266_v35, 30  ;;  %v1321_v61 = vsel %vm1320_vm4, %v1319_v47, 0  ;;  %v1317_v62 = vor.u32 8388608, %v1316_v0  ;;  %v1413_v14 = vand.u32 2147483647, %v5254_v38 }
  0xe5   : > { %v1185_v24 = vxor.u32 2147483648, %v1184_v43  ;;  %4038 = vmatmul.mubr.msk.f32.gmra.mrb[6].mxu0 %vm2586_vm0, %v5023_v25  ;;  %v1323_v2 = vand.u32 31, %v1321_v61  ;;  %v1417_v57 = vshrl.u32 %v1416_v60, 23  ;;  %v5289_v16 = vshrl.u32 %v1321_v61, 5 }
  0xe6   : > { %4058 = vmatprep.mubr.msk.f32.mxu0 %vm2586_vm0, %v5272_v36  ;;  %v1268_v11 = vshll.u32 %v1267_v33, 30  ;;  %vm1200_vm5 = vcmp.eq.s32.totalorder %v5278_v46, 2  ;;  %vm2028_vm10 = vcmp.eq.s32.totalorder %v5280_v29, 2  ;;  %vm1197_vm11 = vcmp.eq.s32.totalorder %v5278_v46, 0 }
  0xe7   : > { %v1186_v50 = vsel %vm1103_vm15, %v1185_v24, %v1184_v43  ;;  %v1324_v1 = vsub.s32 32, %v1323_v2  ;;  %v1326_v59 = vshll.u32 %v4399_v17, %v1323_v2  ;;  %v1329_v18 = vshll.u32 %v4400_v19, %v1323_v2 }
  0xe8   : > { %v1189_v9 = vsel %vm5236_vm6, %v4829_v56, %v1186_v50  ;;  %v5286_v53 = vsub.s32 %v1265_v55, %v1268_v11  ;;  %v1332_v54 = vshll.u32 %v4401_v21, %v1323_v2  ;;  %vm2025_vm9 = vcmp.eq.s32.totalorder %v5280_v29, 0 }
  0xe9   : > { %4243 = vcosq.f32 %v1189_v9  ;;  %v1327_v28 = vshrl.u32 %v4400_v19, %v1324_v1  ;;  %v1330_v32 = vshrl.u32 %v4401_v21, %v1324_v1  ;;  %v1291_v20 = vsub.s32 4, %v1267_v33 }
  0xea   : > { %4245 = vsinq.f32 %v1189_v9  ;;  %v1271_v12 = vsub.s32 0, %v5286_v53  ;;  %v1333_v10 = vshrl.u32 %v4402_v23, %v1324_v1  ;;  %v1335_v49 = vshll.u32 %v4402_v23, %v1323_v2 }
  0xeb   : > { %v1336_v51 = vshrl.u32 %v4403_v26, %v1324_v1  ;;  %vm1196_vm13 = vcmp.lt.s32.totalorder %v5278_v46, 2  ;;  %vm2024_vm8 = vcmp.lt.s32.totalorder %v5280_v29, 2  ;;  %v1261_v44 = vadd.s32 %v5213_v7, %v5210_v58  ;;  %v575_v29 = vld [vmem:[%s4568_s23 + $0x30] sm:$0xff] }
  0xec   : > { %v3855_v42 = vmin.u32 %v1271_v12, %v5286_v53  ;;  %v1325_v6 = vshrl.u32 %v4399_v17, %v1324_v1  ;;  %v5313_v45 = vshll.u32 %v1317_v62, 8  ;;  %vm1193_vm15 = vweird.f32 %v4829_v56 }
  0xed   : > { %v1337_v55 = vor.u32 %v1336_v51, %v1335_v49  ;;  %v3862_v52 = vadd.s32 4294967169, %v1417_v57  ;;  %v5318_v31 = vand.u32 8388607, %v1413_v14  ;;  %v5322_v47 = vadd.f32 %v5300_v34, %v5300_v34 }
  0xee   : > { %v1273_v37 = vclz %v3855_v42  ;;  %v1328_v58 = vor.u32 %v1327_v28, %v1326_v59  ;;  %v1331_v7 = vor.u32 %v1330_v32, %v1329_v18  ;;  %v1334_v43 = vor.u32 %v1333_v10, %v1332_v54 }
  0xef   : > { %v1292_v5 = vsel %vm1207_vm1, %v1291_v20, %v1267_v33  ;;  %v1338_v8 = vshll.u32 %v4403_v26, %v1323_v2  ;;  %v1339_v35 = vshrl.u32 %v4404_v39, %v1324_v1  ;;  %vm1341_vm7 = vcmp.lt.s32.totalorder %v5289_v16, 1 }
  0xf0   : > { %v3856_v0 = vadd.s32 4294967294, %v1273_v37  ;;  %vm1343_vm12 = vcmp.lt.s32.totalorder %v5289_v16, 3  ;;  %vm1344_vm6 = vcmp.lt.s32.totalorder %v5289_v16, 4  ;;  %v1345_v24 = vsel %vm1341_vm7, %v1325_v6, %v1328_v58 }
  0xf1   : > { %v1340_v61 = vor.u32 %v1339_v35, %v1338_v8  ;;  %vm1342_vm4 = vcmp.lt.s32.totalorder %v5289_v16, 2  ;;  %v1346_v33 = vsel %vm1344_vm6, %v1334_v43, 2102212464  ;;  %v1350_v60 = vsel %vm1344_vm6, %v1337_v55, 920167782 }
  0xf2   : > { %vm3857_vm2 = vcmp.lt.s32.totalorder %v3856_v0, 0  ;;  %v1347_v50 = vsel %vm1343_vm12, %v1331_v7, %v1346_v33  ;;  %v1349_v11 = vsel %vm1341_vm7, %v1328_v58, %v1331_v7  ;;  %v1351_v9 = vsel %vm1343_vm12, %v1334_v43, %v1350_v60 }
  0xf3   : > { %v4244_v2 = vpop.eup %4243  ;;  %v1276_v57 = vsel %vm3857_vm2, 0, %v3856_v0  ;;  %v5346_v59 = vsel %vm1342_vm4, %v1345_v24, %v1347_v50  ;;  %v1353_v18 = vsel %vm1341_vm7, %v1331_v7, %v1334_v43  ;;  %v1352_v49 = vsel %vm1342_vm4, %v1349_v11, %v1351_v9 }
  0xf4   : > { %v4246_v62 = vpop.eup %4245  ;;  %v1201_v1 = vxor.u32 2147483648, %v4244_v2  ;;  %v1277_v28 = vsub.s32 32, %v1276_v57  ;;  %v1278_v32 = vshll.u32 %v5286_v53, %v1276_v57  ;;  %v1281_v54 = vsub.s32 4294967266, %v1276_v57 }
  0xf5   : > { %v1198_v12 = vxor.u32 2147483648, %v4246_v62  ;;  %v1354_v51 = vsel %vm1344_vm6, %v1340_v61, 1326507024  ;;  %v1423_v8 = vadd.s32 1, %v3862_v52 }
  0xf6   : > { %v1202_v20 = vsel %vm1200_vm5, %v1201_v1, %v4246_v62  ;;  %v2030_v10 = vsel %vm2028_vm10, %v1201_v1, %v4246_v62  ;;  %v1279_v6 = vshrl.u32 %v1261_v44, %v1277_v28  ;;  %v1282_v37 = vadd.s32 127, %v1281_v54 }
  0xf7   : > { %v1199_v42 = vsel %vm1197_vm11, %v4244_v2, %v1198_v12  ;;  %v2027_v53 = vsel %vm2025_vm9, %v4244_v2, %v1198_v12  ;;  %v1355_v43 = vsel %vm1343_vm12, %v1337_v55, %v1354_v51  ;;  %vm1424_vm2 = vcmp.gt.s32.totalorder %v1423_v8, 0 }
  0xf8   : > { %v1203_v58 = vsel %vm1196_vm13, %v1199_v42, %v1202_v20  ;;  %v2031_v7 = vsel %vm2024_vm8, %v2027_v53, %v2030_v10  ;;  %v1280_v24 = vor.u32 %v1279_v6, %v1278_v32  ;;  %v1283_v61 = vshll.u32 %v1282_v37, 23 }
  0xf9   : > { %v1204_v35 = vsel %vm1193_vm15, nan, %v1203_v58  ;;  %v2032_v0 = vsel %vm1193_vm15, nan, %v2031_v7  ;;  %v1356_v46 = vsel %vm1342_vm4, %v1353_v18, %v1355_v43  ;;  %v1425_v9 = vsel %vm1424_vm2, %v1423_v8, 0 }
  0xfa   : > { %v2504_v44 = vrot.slane %v1204_v35, 5  ;;  %v2528_v33 = vrot.slane %v2032_v0, 1  ;;  %v1284_v60 = vor.u32 4788187, %v1283_v61  ;;  %v1287_v2 = vcvt.s32.f32 %v1280_v24 }
  0xfb   : > { %v5377_v55 = vmul.u32.u64.low %v5313_v45, %v1356_v46  ;;  %v5378_v52 = vmul.u32.u64.high %v5313_v45, %v1356_v46, %v5377_v55  ;;  %v5383_v56 = vmul.u32.u64.low %v5313_v45, %v1352_v49  ;;  %v5384_v11 = vmul.u32.u64.high %v5313_v45, %v1352_v49, %v5383_v56 }
  0xfc   : > { %v2552_v50 = vsel %vm780_vm3, %v5264_v63, %v2504_v44  ;;  %vm5390_vm5 = vcmp.le.f32.partialorder %v1205_v3, 0.7853982  ;;  %v1285_v1 = vand.u32 2147483647, %v1284_v60  ;;  %v1427_v57 = vand.u32 31, %v1425_v9 }
  0xfd   : > { %v2561_v16 = vsel %vm2557_vm14, %v2552_v50, %v2528_v33  ;;  %v1294_v63 = vsel %vm5390_vm5, 0, %v1292_v5  ;;  %v1421_v12 = vor.u32 8388608, %v5318_v31  ;;  %v5399_v28 = vadd.f32 %v5322_v47, %v5322_v47 }
  0xfe   : > { %v4112_v18 = vpack.c.bf16 %v2561_v16, %v575_v29  ;;  %v1288_v32 = vmul.f32 %v1287_v2, %v1285_v1  ;;  %v1364_v54 = vmul.u32 %v5313_v45, %v5346_v59  ;;  %vm1366_vm10 = vc.u32 %v5378_v52, %v5383_v56 }
  0xff   : > { %v1428_v3 = vsub.s32 32, %v1427_v57  ;;  %v1367_v20 = vadd.s32 1, %v5384_v11  ;;  %v1430_v10 = vshll.u32 %v4399_v17, %v1427_v57  ;;  %v1433_v5 = vshll.u32 %v4400_v19, %v1427_v57 }
 0x100   : > { %4113 = vmatprep.subr.bf16.mxu1 %v4112_v18  ;;  %v1436_v31 = vshll.u32 %v4401_v21, %v1427_v57  ;;  %v1289_v49 = vxor.u32 2147483648, %v1288_v32  ;;  %v1426_v51 = vshrl.u32 %v1425_v9, 5  ;;  %v1439_v6 = vshll.u32 %v4402_v23, %v1427_v57 }
 0x101   : > { %4115 = vmatpush3.bf16.msra.mxu1 %v4112_v18  ;;  %v1431_v42 = vshrl.u32 %v4400_v19, %v1428_v3  ;;  %v1434_v45 = vshrl.u32 %v4401_v21, %v1428_v3  ;;  %v1368_v59 = vsel %vm1366_vm10, %v1367_v20, %v5384_v11  ;;  %v1437_v53 = vshrl.u32 %v4402_v23, %v1428_v3 }
 0x102   : > { %4044 = vmatprep.subr.msk.mxu1 %vm780_vm3, %v2528_v33  ;;  %v1440_v37 = vshrl.u32 %v4403_v26, %v1428_v3  ;;  %v1290_v58 = vsel %vm1207_vm1, %v1289_v49, %v1288_v32  ;;  %v1369_v7 = vadd.s32 %v1368_v59, %v1364_v54  ;;  %v1442_v61 = vshll.u32 %v4403_v26, %v1427_v57 }
 0x103   : > { %v1432_v43 = vor.u32 %v1431_v42, %v1430_v10  ;;  %v1435_v8 = vor.u32 %v1434_v45, %v1433_v5  ;;  %v1293_v35 = vsel %vm5390_vm5, %v4935_v41, %v1290_v58  ;;  %v1438_v0 = vor.u32 %v1437_v53, %v1436_v31 }
 0x104   : > { %v1441_v24 = vor.u32 %v1440_v37, %v1439_v6  ;;  %4247 = vcosq.f32 %v1293_v35  ;;  %v1370_v44 = vadd.s32 536870912, %v1369_v7  ;;  %v1443_v46 = vshrl.u32 %v4404_v39, %v1428_v3 }
 0x105   : > { %4045 = vmatpush3.msk.msra.mxu1 %vm780_vm3, %v2528_v33  ;;  %vm1445_vm11 = vcmp.lt.s32.totalorder %v1426_v51, 1  ;;  %4249 = vsinq.f32 %v1293_v35  ;;  %v1298_v29 = vadd.s32 3, %v1294_v63  ;;  %vm1447_vm1 = vcmp.lt.s32.totalorder %v1426_v51, 3 }
 0x106   : > { %4047 = vmatmul.mubr.msk.f32.vlgmr.msra.gmra.mrb[4].mxu1 %vm2586_vm0, %v4988_v48  ;;  %vm1448_vm9 = vcmp.lt.s32.totalorder %v1426_v51, 4  ;;  %v5426_v60 = vshrl.u32 %v1370_v44, 30  ;;  %v1429_v2 = vshrl.u32 %v4399_v17, %v1428_v3  ;;  %v1444_v33 = vor.u32 %v1443_v46, %v1442_v61 }
 0x107   : > { %4049 = vmatprep.mubr.msk.f32.mxu1 %vm2586_vm0, %v4999_v15  ;;  %vm1446_vm13 = vcmp.lt.s32.totalorder %v1426_v51, 2  ;;  %v1450_v55 = vsel %vm1448_vm9, %v1438_v0, 2102212464  ;;  %v1453_v50 = vsel %vm1445_vm11, %v1432_v43, %v1435_v8  ;;  %v1454_v11 = vsel %vm1448_vm9, %v1441_v24, 920167782 }
 0x108   : > { %v1461_v9 = vshll.u32 %v1421_v12, 8  ;;  %v2126_v16 = vand.u32 3, %v1294_v63  ;;  %v1372_v62 = vshll.u32 %v5426_v60, 30  ;;  %v1455_v1 = vsel %vm1447_vm1, %v1438_v0, %v1454_v11 }
 0x109   : > { %v1457_v57 = vsel %vm1445_vm11, %v1435_v8, %v1438_v0  ;;  %vm1297_vm8 = vweird.f32 %v4935_v41  ;;  %v1299_v18 = vand.u32 3, %v1298_v29  ;;  %v1456_v32 = vsel %vm1446_vm13, %v1453_v50, %v1455_v1 }
 0x10a   : > { %4050 = vmatmul.mubr.msk.f32.gmra.mrb[6].mxu1 %vm2586_vm0, %v5023_v25  ;;  %v1458_v54 = vsel %vm1448_vm9, %v1444_v33, 1326507024  ;;  %v657_v12 = vrot.slane %v5322_v47, %v4591_v30  ;;  %v5444_v63 = vsub.s32 %v1369_v7, %v1372_v62  ;;  %v1449_v3 = vsel %vm1445_vm11, %v1429_v2, %v1432_v43 }
 0x10b   : > { %4070 = vmatprep.mubr.msk.f32.mxu1 %vm2586_vm0, %v5272_v36  ;;  %v1451_v20 = vsel %vm1447_vm1, %v1435_v8, %v1450_v55  ;;  %v1459_v10 = vsel %vm1447_vm1, %v1441_v24, %v1458_v54  ;;  %v5452_v31 = vmul.u32.u64.low %v1461_v9, %v1456_v32  ;;  %v5453_v49 = vmul.u32.u64.high %v1461_v9, %v1456_v32, %v5452_v31 }
 0x10c   : > { %v1460_v5 = vsel %vm1446_vm13, %v1457_v57, %v1459_v10  ;;  %v617_v47 = vadd.f32 %v5399_v28, %v5399_v28  ;;  %vm2127_vm15 = vcmp.lt.s32.totalorder %v2126_v16, 2  ;;  %vm2128_vm7 = vcmp.eq.s32.totalorder %v2126_v16, 0 }
 0x10d   : > { %v1375_v42 = vsub.s32 0, %v5444_v63  ;;  %v705_v45 = vrot.slane %v5399_v28, %v4591_v30  ;;  %v1452_v59 = vsel %vm1446_vm13, %v1449_v3, %v1451_v20  ;;  %vm6102_vm12 = vcmask 1040384  }
 0x10e   : > { %v5462_v53 = vmul.u32.u64.low %v1461_v9, %v1460_v5  ;;  %v5463_v6 = vmul.u32.u64.high %v1461_v9, %v1460_v5, %v5462_v53  ;;  %v770_v37 = vsel %vm6102_vm12, %v5300_v34, %v657_v12  ;;  %v4248_v58 = vpop.eup %4247  ;;  %vm1300_vm6 = vcmp.lt.s32.totalorder %v1299_v18, 2 }
 0x10f   : > { %vm1304_vm4 = vcmp.eq.s32.totalorder %v1299_v18, 2  ;;  %vm2131_vm2 = vcmp.eq.s32.totalorder %v2126_v16, 2  ;;  %v3859_v7 = vmin.u32 %v1375_v42, %v5444_v63  ;;  %v4250_v43 = vpop.eup %4249  ;;  %vm1301_vm5 = vcmp.eq.s32.totalorder %v1299_v18, 0  ;;  %v577_v16 = vld [vmem:[%s4568_s23 + $0x40] sm:$0xff] }
 0x110   : > { %v1305_v8 = vxor.u32 2147483648, %v4248_v58  ;;  %v1471_v35 = vadd.s32 1, %v5453_v49  ;;  %v753_v28 = vrot.slane %v617_v47, %v4591_v30  ;;  %v1302_v51 = vxor.u32 2147483648, %v4250_v43 }
 0x111   : > { %v1377_v0 = vclz %v3859_v7  ;;  %v1468_v24 = vmul.u32 %v1461_v9, %v1452_v59  ;;  %vm6103_vm10 = vcmask 1041408   ;;  %v1365_v29 = vadd.s32 %v5383_v56, %v5378_v52 }
 0x112   : > { %v779_v61 = vsel %vm6103_vm10, %v770_v37, %v705_v45  ;;  %v1306_v44 = vsel %vm1304_vm4, %v1305_v8, %v4250_v43  ;;  %v2133_v46 = vsel %vm2131_vm2, %v1305_v8, %v4250_v43  ;;  %v1395_v2 = vsub.s32 4, %v5426_v60 }
 0x113   : > { %v1303_v33 = vsel %vm1301_vm5, %v4248_v58, %v1302_v51  ;;  %v2130_v55 = vsel %vm2128_vm7, %v4248_v58, %v1302_v51  ;;  %v3860_v50 = vadd.s32 4294967294, %v1377_v0  ;;  %vm1470_vm11 = vc.u32 %v5463_v6, %v5452_v31 }
 0x114   : > { %v1307_v11 = vsel %vm1300_vm6, %v1303_v33, %v1306_v44  ;;  %v2134_v9 = vsel %vm2127_vm15, %v2130_v55, %v2133_v46  ;;  %v1472_v62 = vsel %vm1470_vm11, %v1471_v35, %v5453_v49  ;;  %v5481_v1 = vsel %vm780_vm3, %v779_v61, %v753_v28  ;;  %v563_v35 = vld [vmem:[%s6067_s5] sm:$0xff]  ;;  %v580_v33 = vld [vmem:[%s4568_s23 + $0x58] sm:$0x3]  ;;  %vm6106_vm15 = vmmov %vm6103_vm10 }
 0x115   : > { %v1308_v52 = vsel %vm1297_vm8, nan, %v1307_v11  ;;  %v2135_v56 = vsel %vm1297_vm8, nan, %v2134_v9  ;;  %vm3861_vm1 = vcmp.lt.s32.totalorder %v3860_v50, 0  ;;  %v1473_v57 = vadd.s32 %v1472_v62, %v1468_v24 }
 0x116   : > { %v2505_v32 = vrot.slane %v1308_v52, 5  ;;  %v2529_v54 = vrot.slane %v2135_v56, 1  ;;  %vm1311_vm9 = vcmp.lt.s32.totalorder %v5205_v40, 0  ;;  %v1380_v18 = vsel %vm3861_vm1, 0, %v3860_v50  ;;  %v564_v50 = vld [vmem:[%s6067_s5 + $0x8] sm:$0xff] }
 0x117   : > { %v1381_v12 = vsub.s32 32, %v1380_v18  ;;  %v1382_v3 = vshll.u32 %v5444_v63, %v1380_v18  ;;  %v1385_v20 = vsub.s32 4294967266, %v1380_v18  ;;  %v1474_v10 = vadd.s32 536870912, %v1473_v57 }
 0x118   : > { %v2553_v5 = vsel %vm780_vm3, %v5267_v22, %v2505_v32  ;;  %v1396_v41 = vsel %vm1311_vm9, %v1395_v2, %v5426_v60  ;;  %v1517_v49 = vand.u32 2147483647, %v5481_v1  ;;  %v1520_v47 = vand.u32 2139095040, %v5481_v1 }
 0x119   : > { %v2562_v42 = vsel %vm2557_vm14, %v2553_v5, %v2529_v54  ;;  %v1383_v45 = vshrl.u32 %v1365_v29, %v1381_v12  ;;  %v1386_v59 = vadd.s32 127, %v1385_v20  ;;  %v5498_v53 = vshrl.u32 %v1474_v10, 30  ;;  %v561_v5 = vld [vmem:[%s6066_s4 + $0x10] sm:$0xff] }
 0x11a   : > { %v4116_v63 = vpack.c.bf16 %v2562_v42, %v577_v16  ;;  %v1521_v37 = vshrl.u32 %v1520_v47, 23  ;;  %vm5502_vm13 = vcmp.le.f32.partialorder %v1309_v4, 0.7853982  ;;  %v559_v4 = vld [vmem:[%s6066_s4] sm:$0xff]  ;;  %v1524_v24 = vand.u32 8388607, %v1517_v49 }
 0x11b   : > { %v1384_v58 = vor.u32 %v1383_v45, %v1382_v3  ;;  %v1387_v60 = vshll.u32 %v1386_v59, 23  ;;  %v1476_v7 = vshll.u32 %v5498_v53, 30  ;;  %v1398_v43 = vsel %vm5502_vm13, 0, %v1396_v41 }
 0x11c   : > { %4117 = vmatprep.subr.bf16.mxu0 %v4116_v63  ;;  %v3866_v8 = vadd.s32 4294967169, %v1521_v37  ;;  %v4405_v61 = vmov 0   ;;  %v2476_v29 = vrot.slane %v5044_v13, %v4591_v30  ;;  %v1402_v55 = vadd.s32 3, %v1398_v43  ;;  %v560_v13 = vld [vmem:[%s6066_s4 + $0x8] sm:$0xff] }
 0x11d   : > { %4119 = vmatpush3.bf16.msra.mxu0 %v4116_v63  ;;  %v1388_v28 = vor.u32 4788187, %v1387_v60  ;;  %v1391_v51 = vcvt.s32.f32 %v1384_v58  ;;  %v5515_v0 = vsub.s32 %v1473_v57, %v1476_v7  ;;  %4230 = vset.pattern.permute.xlu1 %v4405_v61  ;;  %v1525_v62 = vor.u32 8388608, %v1524_v24 }
 0x11e   : > { %4056 = vmatprep.subr.msk.mxu0 %vm780_vm3, %v2529_v54  ;;  %v1527_v44 = vadd.s32 1, %v3866_v8  ;;  %4229 = vset.pattern.permute.xlu0 %v4405_v61  ;;  %v5535_v57 = vsel %vm6106_vm15, %v580_v33, %v2476_v29  ;;  %v5541_v18 = vand.u32 3, %v1398_v43  ;;  %v1469_v16 = vadd.s32 %v5452_v31, %v5463_v6 }
 0x11f   : > { %v1389_v46 = vand.u32 2147483647, %v1388_v28  ;;  %v1479_v2 = vsub.s32 0, %v5515_v0  ;;  %2692 = vperm.xlu1 %4230, %v563_v35   ;;  %2568 = vperm.xlu0 %4229, %v559_v4   ;;  %vm1415_vm11 = vcmp.lt.s32.totalorder %v5254_v38, 0  ;;  %vm1401_vm15 = vweird.f32 %v5205_v40 }
 0x120   : > { %vm1528_vm8 = vcmp.gt.s32.totalorder %v1527_v44, 0  ;;  %vm2234_vm6 = vcmp.eq.s32.totalorder %v5541_v18, 2  ;;  %vm2231_vm2 = vcmp.eq.s32.totalorder %v5541_v18, 0  ;;  %vm2230_vm10 = vcmp.lt.s32.totalorder %v5541_v18, 2 }
 0x121   : > { %v1392_v11 = vmul.f32 %v1391_v51, %v1389_v46  ;;  %4057 = vmatpush3.msk.msra.mxu0 %vm780_vm3, %v2529_v54  ;;  %v3863_v9 = vmin.u32 %v1479_v2, %v5515_v0  ;;  %v1529_v52 = vsel %vm1528_vm8, %v1527_v44, 0  ;;  %v5539_v54 = vand.u32 3, %v1402_v55 }
 0x122   : > { %4059 = vmatmul.mubr.msk.f32.vlgmr.msra.gmra.mrb[8].mxu0 %vm2586_vm0, %v4988_v48  ;;  %v1531_v12 = vand.u32 31, %v1529_v52  ;;  %v562_v48 = vld [vmem:[%s6066_s4 + $0x18] sm:$0xff]  ;;  %v5550_v10 = vshrl.u32 %v1529_v52, 5 }
 0x123   : > { %v1393_v56 = vxor.u32 2147483648, %v1392_v11  ;;  %v1481_v32 = vclz %v3863_v9  ;;  %4061 = vmatprep.mubr.msk.f32.mxu0 %vm2586_vm0, %v4999_v15  ;;  %2697 = vperm.xlu1 %4230, %v564_v50   ;;  %v5552_v15 = vshll.u32 %v1525_v62, 8  ;;  %vm1408_vm12 = vcmp.eq.s32.totalorder %v5539_v54, 2 }
 0x124   : > { %2573 = vperm.xlu0 %4229, %v560_v13   ;;  %v1532_v6 = vsub.s32 32, %v1531_v12  ;;  %v1534_v41 = vshll.u32 %v4399_v17, %v1531_v12  ;;  %v1537_v47 = vshll.u32 %v4400_v19, %v1531_v12  ;;  %v1540_v42 = vshll.u32 %v4401_v21, %v1531_v12 }
 0x125   : > { %v1394_v3 = vsel %vm1311_vm9, %v1393_v56, %v1392_v11  ;;  %v3864_v20 = vadd.s32 4294967294, %v1481_v32  ;;  %v1543_v45 = vshll.u32 %v4402_v23, %v1531_v12  ;;  %vm1405_vm4 = vcmp.eq.s32.totalorder %v5539_v54, 0 }
 0x126   : > { %v1397_v31 = vsel %vm5502_vm13, %v5205_v40, %v1394_v3  ;;  %4062 = vmatmul.mubr.msk.f32.gmra.mrb[10].mxu0 %vm2586_vm0, %v5023_v25  ;;  %v1533_v63 = vshrl.u32 %v4399_v17, %v1532_v6  ;;  %v1535_v37 = vshrl.u32 %v4400_v19, %v1532_v6  ;;  %v566_v25 = vld [vmem:[%s6068_s6 + $0x8] sm:$0xff]  ;;  %v1538_v7 = vshrl.u32 %v4401_v21, %v1532_v6  ;;  %v565_v17 = vld [vmem:[%s6068_s6] sm:$0xff] }
 0x127   : > { %4251 = vcosq.f32 %v1397_v31  ;;  %vm3865_vm7 = vcmp.lt.s32.totalorder %v3864_v20, 0  ;;  %4082 = vmatprep.mubr.msk.f32.mxu0 %vm2586_vm0, %v5272_v36  ;;  %2583 = vperm.xlu1 %4230, %v562_v48   ;;  %v1541_v43 = vshrl.u32 %v4402_v23, %v1532_v6  ;;  %v1544_v8 = vshrl.u32 %v4403_v26, %v1532_v6 }
 0x128   : > { %4253 = vsinq.f32 %v1397_v31  ;;  %v1484_v59 = vsel %vm3865_vm7, 0, %v3864_v20  ;;  %2578 = vperm.xlu0 %4229, %v561_v5   ;;  %v1536_v19 = vor.u32 %v1535_v37, %v1534_v41  ;;  %v1546_v35 = vshll.u32 %v4403_v26, %v1531_v12 }
 0x129   : > { %v1485_v22 = vsub.s32 32, %v1484_v59  ;;  %v1486_v58 = vshll.u32 %v5515_v0, %v1484_v59  ;;  %v1489_v60 = vsub.s32 4294967266, %v1484_v59  ;;  %vm1404_vm5 = vcmp.lt.s32.totalorder %v5539_v54, 2  ;;  %v579_v54 = vld [vmem:[%s4568_s23 + $0x50] sm:$0xff] }
 0x12a   : > { %v1539_v28 = vor.u32 %v1538_v7, %v1537_v47  ;;  %v1547_v51 = vshrl.u32 %v4404_v39, %v1532_v6  ;;  %v1542_v0 = vor.u32 %v1541_v43, %v1540_v42  ;;  %v1545_v24 = vor.u32 %v1544_v8, %v1543_v45 }
 0x12b   : > { %v1487_v21 = vshrl.u32 %v1469_v16, %v1485_v22  ;;  %v1490_v4 = vadd.s32 127, %v1489_v60  ;;  %2718 = vperm.xlu1 %4230, %v566_v25   ;;  %vm1549_vm1 = vcmp.lt.s32.totalorder %v5550_v10, 1  ;;  %vm1550_vm9 = vcmp.lt.s32.totalorder %v5550_v10, 2 }
 0x12c   : > { %2713 = vperm.xlu0 %4229, %v565_v17   ;;  %v1548_v61 = vor.u32 %v1547_v51, %v1546_v35  ;;  %vm1551_vm13 = vcmp.lt.s32.totalorder %v5550_v10, 3  ;;  %vm1552_vm8 = vcmp.lt.s32.totalorder %v5550_v10, 4  ;;  %v1553_v44 = vsel %vm1549_vm1, %v1533_v63, %v1536_v19 }
 0x12d   : > { %v1488_v23 = vor.u32 %v1487_v21, %v1486_v58  ;;  %v1491_v26 = vshll.u32 %v1490_v4, 23  ;;  %v1557_v46 = vsel %vm1549_vm1, %v1536_v19, %v1539_v28  ;;  %v1561_v29 = vsel %vm1549_vm1, %v1539_v28, %v1542_v0 }
 0x12e   : > { %v1554_v33 = vsel %vm1552_vm8, %v1542_v0, 2102212464  ;;  %v1558_v55 = vsel %vm1552_vm8, %v1545_v24, 920167782  ;;  %v1499_v50 = vsub.s32 4, %v5498_v53  ;;  %vm1505_vm1 = vweird.f32 %v5254_v38 }
 0x12f   : > { %v1492_v2 = vor.u32 4788187, %v1491_v26  ;;  %v1495_v39 = vcvt.s32.f32 %v1488_v23  ;;  %v1555_v11 = vsel %vm1551_vm13, %v1539_v28, %v1554_v33  ;;  %v1559_v9 = vsel %vm1551_vm13, %v1542_v0, %v1558_v55  ;;  %v5661_v33 = vld [vmem:[%s6065_s3 + $0x10] sm:$0xff]  ;;  %v582_v55 = vld [vmem:[%s4568_s23 + $0x68] sm:$0x3] }
 0x130   : > { %v1562_v62 = vsel %vm1552_vm8, %v1548_v61, 1326507024  ;;  %v1556_v56 = vsel %vm1550_vm9, %v1553_v44, %v1555_v11  ;;  %v1560_v32 = vsel %vm1550_vm9, %v1557_v46, %v1559_v9  ;;  %v1500_v45 = vsel %vm1415_vm11, %v1499_v50, %v5498_v53  ;;  %v5653_v44 = vld [vmem:[%s6065_s3 + $0x8] sm:$0xff] }
 0x131   : > { %v4252_v13 = vpop.eup %4251  ;;  %v1493_v52 = vand.u32 2147483647, %v1492_v2  ;;  %v1563_v16 = vsel %vm1551_vm13, %v1545_v24, %v1562_v62  ;;  %v5607_v20 = vmul.u32.u64.low %v5552_v15, %v1560_v32  ;;  %v5608_v5 = vmul.u32.u64.high %v5552_v15, %v1560_v32, %v5607_v20 }
 0x132   : > { %v4254_v12 = vpop.eup %4253  ;;  %v1409_v48 = vxor.u32 2147483648, %v4252_v13  ;;  %v1564_v3 = vsel %vm1550_vm9, %v1561_v29, %v1563_v16  ;;  %vm1414_vm7 = vcmp.le.f32.partialorder %v1413_v14, 0.7853982  ;;  %v1572_v22 = vmul.u32 %v5552_v15, %v1556_v56  ;;  %v5672_v16 = vld [vmem:[%s6065_s3 + $0x18] sm:$0xff] }
 0x133   : > { %v1406_v31 = vxor.u32 2147483648, %v4254_v12  ;;  %v1496_v6 = vmul.f32 %v1495_v39, %v1493_v52  ;;  %v5612_v41 = vmul.u32.u64.low %v5552_v15, %v1564_v3  ;;  %v5613_v47 = vmul.u32.u64.high %v5552_v15, %v1564_v3, %v5612_v41  ;;  %v4282_v39 = vld [vmem:[%s4572_s24 + $0x6] ss:$0 sm:$0xff]  ;;  %s543_s24 = scalar_lea.vmem [#allocation7], %s3834_s29 }
 0x134   : > { %v1410_v42 = vsel %vm1408_vm12, %v1409_v48, %v4254_v12  ;;  %v2236_v10 = vsel %vm2234_vm6, %v1409_v48, %v4254_v12  ;;  %v1575_v53 = vadd.s32 1, %v5608_v5  ;;  %v1502_v17 = vsel %vm1414_vm7, 0, %v1500_v45  ;;  %s3669_s14 = sshll.u32 %s543_s24, 4  ;;  %s5978_s14 = int_to_ptr.vmem [resolvable:$true] %s3669_s14 }
 0x135   : > { %v1407_v59 = vsel %vm1405_vm4, %v4252_v13, %v1406_v31  ;;  %v2233_v63 = vsel %vm2231_vm2, %v4252_v13, %v1406_v31  ;;  %v1497_v40 = vxor.u32 2147483648, %v1496_v6  ;;  %vm1574_vm12 = vc.u32 %v5613_v47, %v5607_v20  ;;  %s4298_s27 = scalar_lea.vmem %s5978_s14, 256 }
 0x136   : > { %v1411_v37 = vsel %vm1404_vm5, %v1407_v59, %v1410_v42  ;;  %v2237_v25 = vsel %vm2230_vm10, %v2233_v63, %v2236_v10  ;;  %v1576_v18 = vsel %vm1574_vm12, %v1575_v53, %v5608_v5  ;;  %v1506_v21 = vadd.s32 3, %v1502_v17  ;;  %p4299_p10 = scmp.ne.s32.totalorder %s5978_s14, %s4298_s27 }
 0x137   : > { %v1412_v58 = vsel %vm1401_vm15, nan, %v1411_v37  ;;  %v2238_v60 = vsel %vm1401_vm15, nan, %v2237_v25  ;;  %v1498_v7 = vsel %vm1415_vm11, %v1497_v40, %v1496_v6  ;;  %v1577_v8 = vadd.s32 %v1576_v18, %v1572_v22  ;;  %v581_v6 = vld [vmem:[%s4568_s23 + $0x60] sm:$0xff] }
 0x138   : > { %v2506_v19 = vrot.slane %v1412_v58, 5  ;;  %v2530_v43 = vrot.slane %v2238_v60, 1  ;;  %v1501_v14 = vsel %vm1414_vm7, %v5254_v38, %v1498_v7  ;;  %v1507_v0 = vand.u32 3, %v1506_v21  ;;  %p4300_p12 = pnand %p4299_p10, %p6120_p11 }
 0x139   : > { %4255 = vcosq.f32 %v1501_v14  ;;  %v1578_v28 = vadd.s32 536870912, %v1577_v8  ;;  %v2332_v24 = vand.u32 3, %v1502_v17  ;;  %vm6107_vm9 = vcmask 1041408  }
 0x13a   : > { %v2554_v15 = vsel %vm780_vm3, %v5535_v57, %v2506_v19  ;;  %4257 = vsinq.f32 %v1501_v14  ;;  %vm1512_vm6 = vcmp.eq.s32.totalorder %v1507_v0, 2  ;;  %vm1509_vm2 = vcmp.eq.s32.totalorder %v1507_v0, 0  ;;  %p4301_p13 = pneg %p4300_p12 }
 0x13b   : > { %v2563_v35 = vsel %vm2557_vm14, %v2554_v15, %v2530_v43  ;;  %v5645_v51 = vshrl.u32 %v1578_v28, 30  ;;  %vm2337_vm4 = vcmp.eq.s32.totalorder %v2332_v24, 2  ;;  %vm2334_vm5 = vcmp.eq.s32.totalorder %v2332_v24, 0 }
 0x13c   : > { %v4120_v4 = vpack.c.bf16 %v2563_v35, %v579_v54  ;;  %vm1508_vm10 = vcmp.lt.s32.totalorder %v1507_v0, 2  ;;  %vm2333_vm11 = vcmp.lt.s32.totalorder %v2332_v24, 2  ;;  %v2547_v48 = vsel %vm6107_vm9, %v582_v55, %v4282_v39 }
 0x13d   : > { %v1580_v23 = vshll.u32 %v5645_v51, 30  ;;  %v1573_v42 = vadd.s32 %v5607_v20, %v5613_v47  ;;  %v1603_v47 = vsub.s32 4, %v5645_v51  ;;  %vm1519_vm8 = vcmp.lt.s32.totalorder %v5481_v1, 0 }
 0x13e   : > { %4121 = vmatprep.subr.bf16.mxu1 %v4120_v4  ;;  %vm1518_vm15 = vcmp.le.f32.partialorder %v1517_v49, 0.7853982  ;;  %v2484_v28 = vrot.slane %v5300_v34, %v4591_v30 }
 0x13f   : > { %4123 = vmatpush3.bf16.msra.mxu1 %v4120_v4  ;;  %v1581_v26 = vsub.s32 %v1577_v8, %v1580_v23  ;;  %v1604_v19 = vsel %vm1519_vm8, %v1603_v47, %v5645_v51  ;;  %v584_v51 = vld [vmem:[%s4568_s23 + $0x78] sm:$0x3] }
 0x140   : > { %4068 = vmatprep.subr.msk.mxu1 %vm780_vm3, %v2530_v43  ;;  %v1606_v54 = vsel %vm1518_vm15, 0, %v1604_v19 }
 0x141   : > { %v1583_v29 = vsub.s32 0, %v1581_v26  ;;  %v1610_v18 = vadd.s32 3, %v1606_v54  ;;  %v2435_v8 = vand.u32 3, %v1606_v54 }
 0x143   : > { %v4256_v57 = vpop.eup %4255  ;;  %4069 = vmatpush3.msk.msra.mxu1 %vm780_vm3, %v2530_v43  ;;  %v3867_v9 = vmin.u32 %v1583_v29, %v1581_v26  ;;  %v1611_v15 = vand.u32 3, %v1610_v18  ;;  %vm2440_vm12 = vcmp.eq.s32.totalorder %v2435_v8, 2 }
 0x144   : > { %v4258_v61 = vpop.eup %4257  ;;  %4071 = vmatmul.mubr.msk.f32.vlgmr.msra.gmra.mrb[8].mxu1 %vm2586_vm0, %v5653_v44  ;;  %v1513_v46 = vxor.u32 2147483648, %v4256_v57 }
 0x145   : > { %v1510_v2 = vxor.u32 2147483648, %v4258_v61  ;;  %4073 = vmatprep.mubr.msk.f32.mxu1 %vm2586_vm0, %v5661_v33  ;;  %v1585_v32 = vclz %v3867_v9  ;;  %vm1616_vm7 = vcmp.eq.s32.totalorder %v1611_v15, 2 }
 0x146   : > { %v1514_v50 = vsel %vm1512_vm6, %v1513_v46, %v4258_v61  ;;  %v2339_v11 = vsel %vm2337_vm4, %v1513_v46, %v4258_v61  ;;  %vm1613_vm6 = vcmp.eq.s32.totalorder %v1611_v15, 0  ;;  %vm2437_vm4 = vcmp.eq.s32.totalorder %v2435_v8, 0 }
 0x147   : > { %v1511_v62 = vsel %vm1509_vm2, %v4256_v57, %v1510_v2  ;;  %v2336_v13 = vsel %vm2334_vm5, %v4256_v57, %v1510_v2  ;;  %v3868_v31 = vadd.s32 4294967294, %v1585_v32  ;;  %vm1612_vm2 = vcmp.lt.s32.totalorder %v1611_v15, 2 }
 0x148   : > { %v1515_v52 = vsel %vm1508_vm10, %v1511_v62, %v1514_v50  ;;  %v2340_v56 = vsel %vm2333_vm11, %v2336_v13, %v2339_v11  ;;  %4074 = vmatmul.mubr.msk.f32.gmra.mrb[10].mxu1 %vm2586_vm0, %v5672_v16  ;;  %vm2436_vm5 = vcmp.lt.s32.totalorder %v2435_v8, 2  ;;  %vm1609_vm10 = vweird.f32 %v5481_v1  ;;  %vm6108_vm11 = vmmov %vm6107_vm9  ;;  %v583_v50 = vld [vmem:[%s4568_s23 + $0x70] sm:$0xff]  ;;  %s567_s23 = sld [smem:[#allocation4]] }
 0x149   : > { %v1516_v38 = vsel %vm1505_vm1, nan, %v1515_v52  ;;  %v2341_v12 = vsel %vm1505_vm1, nan, %v2340_v56  ;;  %4094 = vmatprep.mubr.msk.f32.mxu1 %vm2586_vm0, %v5272_v36  ;;  %vm3869_vm13 = vcmp.lt.s32.totalorder %v3868_v31, 0  ;;  %v2548_v2 = vsel %vm6108_vm11, %v584_v51, %v2484_v28  ;;  %vm6110_vm1 = vmmov %vm6107_vm9 }
 0x14a   : > { %v2507_v3 = vrot.slane %v1516_v38, 5  ;;  %v2531_v5 = vrot.slane %v2341_v12, 1  ;;  %v1588_v45 = vsel %vm3869_vm13, 0, %v3868_v31  ;;  %vm3520_vm9 = vcmask 1043456  }
 0x14b   : > { %v1589_v63 = vsub.s32 32, %v1588_v45  ;;  %v1590_v40 = vshll.u32 %v1581_v26, %v1588_v45  ;;  %v1593_v37 = vsub.s32 4294967266, %v1588_v45  ;;  %vm3522_vm13 = vcmask 1044480  }
 0x14c   : > { %v2555_v41 = vsel %vm780_vm3, %v2547_v48, %v2507_v3 }
 0x14d   : > { %v2564_v10 = vsel %vm2557_vm14, %v2555_v41, %v2531_v5  ;;  %v1591_v25 = vshrl.u32 %v1573_v42, %v1589_v63  ;;  %v1594_v36 = vadd.s32 127, %v1593_v37 }
 0x14e   : > { %v4124_v59 = vpack.c.bf16 %v2564_v10, %v581_v6  ;;  %v5738_v54 = vstv %s567_s23  ;;  %s6082_s23 = sshll.u32 %s4482_s13, 7 }
 0x14f   : > { %v1592_v22 = vor.u32 %v1591_v25, %v1590_v40  ;;  %v1595_v53 = vshll.u32 %v1594_v36, 23  ;;  %s5985_s25 = scalar_lea.hbm %s6070_s8, %s6082_s23 }
 0x150   : > { %4125 = vmatprep.subr.bf16.mxu0 %v4124_v59 }
 0x151   : > { %4127 = vmatpush3.bf16.msra.mxu0 %v4124_v59  ;;  %v1596_v58 = vor.u32 4788187, %v1595_v53  ;;  %v1599_v60 = vcvt.s32.f32 %v1592_v22 }
 0x152   : > { %4080 = vmatprep.subr.msk.mxu0 %vm780_vm3, %v2531_v5 }
 0x153   : > { %v1597_v20 = vand.u32 2147483647, %v1596_v58 }
 0x155   : > { %4081 = vmatpush3.msk.msra.mxu0 %vm780_vm3, %v2531_v5  ;;  %v1600_v7 = vmul.f32 %v1599_v60, %v1597_v20 }
 0x156   : > { %4083 = vmatmul.mubr.msk.f32.vlgmr.msra.gmra.mrb[12].mxu0 %vm2586_vm0, %v5653_v44 }
 0x157   : > { %4085 = vmatprep.mubr.msk.f32.mxu0 %vm2586_vm0, %v5661_v33  ;;  %v1601_v17 = vxor.u32 2147483648, %v1600_v7 }
 0x159   : > { %v1602_v43 = vsel %vm1519_vm8, %v1601_v17, %v1600_v7  ;;  %vm3524_vm8 = vcmask 1045504  }
 0x15a   : > { %4086 = vmatmul.mubr.msk.f32.gmra.mrb[14].mxu0 %vm2586_vm0, %v5672_v16  ;;  %v1605_v14 = vsel %vm1518_vm15, %v5481_v1, %v1602_v43 }
 0x15b   : > { %4259 = vcosq.f32 %v1605_v14 }
 0x15c   : > { %4261 = vsinq.f32 %v1605_v14 }
 0x165   : > { %v4260_v35 = vpop.eup %4259 }
 0x166   : > { %v4262_v49 = vpop.eup %4261  ;;  %v1617_v21 = vxor.u32 2147483648, %v4260_v35 }
 0x167   : > { %v1614_v4 = vxor.u32 2147483648, %v4262_v49 }
 0x168   : > { %v1618_v0 = vsel %vm1616_vm7, %v1617_v21, %v4262_v49  ;;  %v2442_v24 = vsel %vm2440_vm12, %v1617_v21, %v4262_v49  ;;  %vm6112_vm7 = vmmov %vm6110_vm1 }
 0x169   : > { %v1615_v23 = vsel %vm1613_vm6, %v4260_v35, %v1614_v4  ;;  %v2439_v26 = vsel %vm2437_vm4, %v4260_v35, %v1614_v4 }
 0x16a   : > { %v1619_v57 = vsel %vm1612_vm2, %v1615_v23, %v1618_v0  ;;  %v2443_v61 = vsel %vm2436_vm5, %v2439_v26, %v2442_v24 }
 0x16b   : > { %v1620_v46 = vsel %vm1609_vm10, nan, %v1619_v57  ;;  %v2444_v29 = vsel %vm1609_vm10, nan, %v2443_v61 }
 0x16c   : > { %v2508_v39 = vrot.slane %v1620_v46, 5  ;;  %v2532_v55 = vrot.slane %v2444_v29, 1 }
 0x16e   : > { %v2556_v11 = vsel %vm780_vm3, %v2548_v2, %v2508_v39 }
 0x16f   : > { %v2565_v34 = vsel %vm2557_vm14, %v2556_v11, %v2532_v55 }
 0x170   : > { %v4128_v9 = vpack.c.bf16 %v2565_v34, %v583_v50 }
 0x172   : > { %4129 = vmatprep.subr.bf16.mxu1 %v4128_v9 }
 0x173   : > { %4131 = vmatpush3.bf16.msra.mxu1 %v4128_v9 }
 0x174   : > { %4092 = vmatprep.subr.msk.mxu1 %vm780_vm3, %v2532_v55 }
 0x177   : > { %4093 = vmatpush3.msk.msra.mxu1 %vm780_vm3, %v2532_v55 }
 0x178   : > { %4095 = vmatmul.mubr.msk.f32.vlgmr.msra.gmra.mrb[12].mxu1 %vm2586_vm0, %v5653_v44 }
 0x179   : > { %4097 = vmatprep.mubr.msk.f32.mxu1 %vm2586_vm0, %v5661_v33 }
 0x17c   : > { %4098 = vmatmul.mubr.msk.f32.gmra.mrb[14].mxu1 %vm2586_vm0, %v5672_v16  ;;  %vm6109_vm0 = vcmask 1040384  }
 0x17d   : > { %vm6111_vm15 = vmmov %vm6109_vm0 }
 0x18a   : > { %v4012_v1 = vpop.f32.mrb[0].mxu0 }
 0x18b   : > { %v2667_v62 = vpop.f32.mrb[1].mxu0 }
 0x18e   : > { %v5714_v13 = vpop.f32.mrb[2].mxu0 }
 0x18f   : > { %v5716_v52 = vpop.f32.mrb[3].mxu0 }
 0x195   : > { %v4024_v56 = vpop.f32.mrb[0].mxu1 }
 0x196   : > { %v2801_v32 = vpop.f32.mrb[1].mxu1 }
 0x199   : > { %v5718_v38 = vpop.f32.mrb[2].mxu1 }
 0x19a   : > { %v5720_v12 = vpop.f32.mrb[3].mxu1 }
 0x19e   : > { %v5722_v48 = vpop.permute.xlu0 %2568  ;;  %v5726_v3 = vpop.permute.xlu1 %2692 }
 0x19f   : > { %v2668_v44 = vadd.f32 %v2667_v62, %v5722_v48  ;;  %v2802_v33 = vadd.f32 %v2801_v32, %v5722_v48 }
 0x1a1   : > { %v2686_v16 = vmax.f32 %v2668_v44, 0.0  ;;  %v2820_v5 = vmax.f32 %v2802_v33, 0.0 }
 0x1a2   : > { %v5734_v63 = vpop.permute.xlu1 %2697 }
 0x1a3   : > { %v5728_v31 = vpop.permute.xlu0 %2573  ;;  %v2700_v10 = vmul.f32 %v5726_v3, %v2686_v16  ;;  %v2824_v59 = vmul.f32 %v2820_v5, %v5726_v3 }
 0x1a4   : > { %v2673_v6 = vadd.f32 %v4012_v1, %v5728_v31  ;;  %v2807_v41 = vadd.f32 %v4024_v56, %v5728_v31 }
 0x1a6   : > { %v2687_v42 = vmax.f32 %v2673_v6, 0.0  ;;  %v2821_v45 = vmax.f32 %v2807_v41, 0.0 }
 0x1a8   : > { %v2701_v40 = vmul.f32 %v5734_v63, %v2687_v42  ;;  %v2825_v37 = vmul.f32 %v2821_v45, %v5734_v63 }
 0x1aa   : > { %v2702_v25 = vadd.f32 %v2701_v40, %v2700_v10  ;;  %v2826_v36 = vadd.f32 %v2825_v37, %v2824_v59 }
 0x1ac   : > { %v2703_v22 = vrot.slane %v2702_v25, 4  ;;  %v2827_v53 = vrot.slane %v2826_v36, 4 }
 0x1ae   : > { %v2704_v58 = vadd.f32 %v2703_v22, %v2702_v25  ;;  %v2828_v60 = vadd.f32 %v2827_v53, %v2826_v36 }
 0x1b0   : > { %v2705_v20 = vrot.slane %v2704_v58, 2  ;;  %v2829_v47 = vrot.slane %v2828_v60, 2 }
 0x1b2   : > { %v2706_v7 = vadd.f32 %v2705_v20, %v2704_v58  ;;  %v2830_v17 = vadd.f32 %v2829_v47, %v2828_v60 }
 0x1b4   : > { %v2707_v19 = vrot.slane %v2706_v7, 1  ;;  %v2831_v43 = vrot.slane %v2830_v17, 1  ;;  %v4036_v14 = vpop.f32.mrb[4].mxu0 }
 0x1b5   : > { %v2919_v18 = vadd.f32 %v4036_v14, %v5728_v31  ;;  %v2913_v15 = vpop.f32.mrb[5].mxu0 }
 0x1b6   : > { %v2708_v8 = vadd.f32 %v2707_v19, %v2706_v7  ;;  %v2832_v35 = vadd.f32 %v2831_v43, %v2830_v17  ;;  %v2914_v21 = vadd.f32 %v2913_v15, %v5722_v48 }
 0x1b7   : > { %v2933_v49 = vmax.f32 %v2919_v18, 0.0 }
 0x1b8   : > { %v2710_v4 = vadd.f32 %v5738_v54, %v2708_v8  ;;  %v2833_v28 = vadd.f32 %v2832_v35, %v5738_v54  ;;  %v5744_v51 = vpop.f32.mrb[6].mxu0  ;;  %v2932_v24 = vmax.f32 %v2914_v21, 0.0 }
 0x1b9   : > { %v2937_v0 = vmul.f32 %v2933_v49, %v5734_v63  ;;  %v5747_v23 = vpop.f32.mrb[7].mxu0 }
 0x1ba   : > { %v3517_v26 = vsel %vm6109_vm0, %v2710_v4, %v2833_v28  ;;  %v2936_v57 = vmul.f32 %v2932_v24, %v5726_v3 }
 0x1bc   : > { %v2938_v61 = vadd.f32 %v2937_v0, %v2936_v57 }
 0x1be   : > { %v2939_v46 = vrot.slane %v2938_v61, 4 }
 0x1c0   : > { %v2940_v29 = vadd.f32 %v2939_v46, %v2938_v61 }
 0x1c2   : > { %v2941_v2 = vrot.slane %v2940_v29, 2 }
 0x1c4   : > { %v2942_v39 = vadd.f32 %v2941_v2, %v2940_v29 }
 0x1c6   : > { %v2943_v55 = vrot.slane %v2942_v39, 1 }
 0x1c8   : > { %v2944_v50 = vadd.f32 %v2943_v55, %v2942_v39 }
 0x1ca   : > { %v2945_v11 = vadd.f32 %v2944_v50, %v5738_v54 }
 0x1cc   : > { %v3518_v34 = vsel %vm6110_vm1, %v3517_v26, %v2945_v11 }
 0x1d9   : > { %v4048_v9 = vpop.f32.mrb[4].mxu1 }
 0x1da   : > { %v3031_v1 = vadd.f32 %v4048_v9, %v5728_v31  ;;  %v3025_v62 = vpop.f32.mrb[5].mxu1 }
 0x1db   : > { %v3026_v56 = vadd.f32 %v3025_v62, %v5722_v48 }
 0x1dc   : > { %v3045_v32 = vmax.f32 %v3031_v1, 0.0 }
 0x1dd   : > { %v3044_v44 = vmax.f32 %v3026_v56, 0.0  ;;  %v5755_v33 = vpop.f32.mrb[6].mxu1 }
 0x1de   : > { %v3049_v16 = vmul.f32 %v3045_v32, %v5734_v63  ;;  %v5758_v5 = vpop.f32.mrb[7].mxu1  ;;  %v5777_v32 = vpop.permute.xlu1 %2583 }
 0x1df   : > { %v3048_v6 = vmul.f32 %v3044_v44, %v5726_v3 }
 0x1e1   : > { %v3050_v41 = vadd.f32 %v3049_v16, %v3048_v6  ;;  %v5780_v6 = vpop.permute.xlu0 %2578 }
 0x1e3   : > { %v3051_v42 = vrot.slane %v3050_v41, 4 }
 0x1e5   : > { %v3052_v10 = vadd.f32 %v3051_v42, %v3050_v41 }
 0x1e7   : > { %v3053_v45 = vrot.slane %v3052_v10, 2 }
 0x1e9   : > { %v3054_v59 = vadd.f32 %v3053_v45, %v3052_v10  ;;  %v5785_v45 = vadd.f32 %v5714_v13, %v5777_v32 }
 0x1eb   : > { %v3055_v40 = vrot.slane %v3054_v59, 1 }
 0x1ed   : > { %v3056_v37 = vadd.f32 %v3055_v40, %v3054_v59 }
 0x1ef   : > { %v3057_v25 = vadd.f32 %v3056_v37, %v5738_v54 }
 0x1f1   : > { %v3519_v36 = vsel %vm780_vm3, %v3518_v34, %v3057_v25  ;;  %v5790_v25 = vadd.f32 %v5716_v52, %v5780_v6 }
 0x1f5   : > { %v4060_v22 = vpop.f32.mrb[8].mxu0 }
 0x1f6   : > { %v3143_v53 = vadd.f32 %v4060_v22, %v5728_v31  ;;  %v3137_v58 = vpop.f32.mrb[9].mxu0  ;;  %v5798_v22 = vadd.f32 %v5718_v38, %v5777_v32 }
 0x1f7   : > { %v3138_v60 = vadd.f32 %v3137_v58, %v5722_v48  ;;  %v5803_v58 = vadd.f32 %v5744_v51, %v5777_v32  ;;  %v5817_v51 = vpop.permute.xlu0 %2713 }
 0x1f8   : > { %v3157_v20 = vmax.f32 %v3143_v53, 0.0 }
 0x1f9   : > { %v3156_v47 = vmax.f32 %v3138_v60, 0.0  ;;  %v5765_v7 = vpop.f32.mrb[10].mxu0  ;;  %v5807_v60 = vadd.f32 %v5747_v23, %v5780_v6  ;;  %v2935_v23 = vmax.f32 %v5803_v58, 0.0 }
 0x1fa   : > { %v3161_v17 = vmul.f32 %v3157_v20, %v5734_v63  ;;  %v5768_v19 = vpop.f32.mrb[11].mxu0 }
 0x1fb   : > { %v3160_v43 = vmul.f32 %v3156_v47, %v5726_v3  ;;  %v2688_v47 = vmax.f32 %v5790_v25, 0.0 }
 0x1fd   : > { %v3162_v14 = vadd.f32 %v3161_v17, %v3160_v43  ;;  %v2689_v17 = vmax.f32 %v5785_v45, 0.0  ;;  %v2823_v43 = vmax.f32 %v5798_v22, 0.0 }
 0x1ff   : > { %v3163_v18 = vrot.slane %v3162_v14, 4 }
 0x201   : > { %v3164_v15 = vadd.f32 %v3163_v18, %v3162_v14  ;;  %v5815_v14 = vpop.permute.xlu1 %2718  ;;  %v5822_v18 = vadd.f32 %v5755_v33, %v5777_v32 }
 0x202   : > { %v2722_v33 = vmul.f32 %v5815_v14, %v2689_v17 }
 0x203   : > { %v3165_v8 = vrot.slane %v3164_v15, 2 }
 0x205   : > { %v3166_v35 = vadd.f32 %v3165_v8, %v3164_v15  ;;  %v2934_v15 = vmax.f32 %v5807_v60, 0.0 }
 0x207   : > { %v3167_v49 = vrot.slane %v3166_v35, 1 }
 0x209   : > { %v3168_v21 = vadd.f32 %v3167_v49, %v3166_v35  ;;  %v5827_v35 = vadd.f32 %v5758_v5, %v5780_v6  ;;  %v5831_v49 = vadd.f32 %v5765_v7, %v5777_v32  ;;  %v2721_v5 = vmul.f32 %v5817_v51, %v2688_v47 }
 0x20b   : > { %v3169_v4 = vadd.f32 %v3168_v21, %v5738_v54  ;;  %v5835_v21 = vadd.f32 %v5768_v19, %v5780_v6  ;;  %v2947_v19 = vmul.f32 %v2935_v23, %v5815_v14 }
 0x20d   : > { %v3521_v28 = vsel %vm3520_vm9, %v3519_v36, %v3169_v4  ;;  %v5794_v36 = vadd.f32 %v5720_v12, %v5780_v6 }
 0x20f   : > { %v2822_v38 = vmax.f32 %v5794_v36, 0.0  ;;  %v3642_v36 = vsub.s32 7, %v4583_v27 }
 0x211   : > { %v2834_v7 = vmul.f32 %v2822_v38, %v5817_v51 }
 0x217   : > { %v4072_v0 = vpop.f32.mrb[8].mxu1 }
 0x218   : > { %v3255_v24 = vadd.f32 %v4072_v0, %v5728_v31  ;;  %v3249_v26 = vpop.f32.mrb[9].mxu1  ;;  %v6080_v0 = vmax.f32 %v5822_v18, 0.0 }
 0x219   : > { %v3250_v57 = vadd.f32 %v3249_v26, %v5722_v48 }
 0x21a   : > { %v3269_v61 = vmax.f32 %v3255_v24, 0.0  ;;  %v2946_v24 = vmul.f32 %v2934_v15, %v5817_v51 }
 0x21b   : > { %v3268_v46 = vmax.f32 %v3250_v57, 0.0  ;;  %v4075_v29 = vpop.f32.mrb[10].mxu1  ;;  %v3046_v57 = vmax.f32 %v5827_v35, 0.0 }
 0x21c   : > { %v3273_v2 = vmul.f32 %v3269_v61, %v5734_v63  ;;  %v3259_v39 = vpop.f32.mrb[11].mxu1  ;;  %v6078_v61 = vmax.f32 %v5831_v49, 0.0 }
 0x21d   : > { %v3272_v55 = vmul.f32 %v3268_v46, %v5726_v3  ;;  %v5859_v46 = vadd.f32 %v4075_v29, %v5777_v32  ;;  %v2948_v29 = vadd.f32 %v2947_v19, %v2946_v24 }
 0x21f   : > { %v3274_v50 = vadd.f32 %v3273_v2, %v3272_v55  ;;  %v5862_v2 = vadd.f32 %v3259_v39, %v5780_v6  ;;  %v6079_v55 = vmax.f32 %v5835_v21, 0.0  ;;  %v3058_v39 = vmul.f32 %v3046_v57, %v5817_v51 }
 0x221   : > { %v3275_v11 = vrot.slane %v3274_v50, 4 }
 0x223   : > { %v3276_v34 = vadd.f32 %v3275_v11, %v3274_v50 }
 0x225   : > { %v3277_v9 = vrot.slane %v3276_v34, 2 }
 0x227   : > { %v3278_v1 = vadd.f32 %v3277_v9, %v3276_v34  ;;  %v2723_v9 = vadd.f32 %v2722_v33, %v2721_v5 }
 0x229   : > { %v3279_v62 = vrot.slane %v3278_v1, 1  ;;  %v4084_v56 = vpop.f32.mrb[12].mxu0 }
 0x22a   : > { %v3367_v44 = vadd.f32 %v4084_v56, %v5728_v31  ;;  %v3361_v16 = vpop.f32.mrb[13].mxu0 }
 0x22b   : > { %v3280_v41 = vadd.f32 %v3279_v62, %v3278_v1  ;;  %v3362_v42 = vadd.f32 %v3361_v16, %v5722_v48  ;;  %v3059_v62 = vmul.f32 %v6080_v0, %v5815_v14  ;;  %v6075_v16 = vmax.f32 %v5859_v46, 0.0 }
 0x22c   : > { %v3381_v10 = vmax.f32 %v3367_v44, 0.0  ;;  %v3171_v44 = vmul.f32 %v6078_v61, %v5815_v14 }
 0x22d   : > { %v3281_v59 = vadd.f32 %v3280_v41, %v5738_v54  ;;  %v3380_v40 = vmax.f32 %v3362_v42, 0.0  ;;  %v4087_v37 = vpop.f32.mrb[14].mxu0  ;;  %v6076_v41 = vmax.f32 %v5862_v2, 0.0  ;;  %v3170_v42 = vmul.f32 %v6079_v55, %v5817_v51 }
 0x22e   : > { %v3385_v53 = vmul.f32 %v3381_v10, %v5734_v63  ;;  %v3371_v13 = vpop.f32.mrb[15].mxu0  ;;  %v5866_v11 = vadd.f32 %v4087_v37, %v5777_v32  ;;  %v2724_v37 = vrot.slane %v2723_v9, 4 }
 0x22f   : > { %v3523_v52 = vsel %vm3522_vm13, %v3521_v28, %v3281_v59  ;;  %v3384_v12 = vmul.f32 %v3380_v40, %v5726_v3  ;;  %v2835_v28 = vmul.f32 %v2823_v43, %v5815_v14  ;;  %v5869_v34 = vadd.f32 %v3371_v13, %v5780_v6 }
 0x230   : > { %v6077_v59 = vmax.f32 %v5866_v11, 0.0  ;;  %v3172_v33 = vadd.f32 %v3171_v44, %v3170_v42  ;;  %v2725_v19 = vadd.f32 %v2724_v37, %v2723_v9 }
 0x231   : > { %v3386_v20 = vadd.f32 %v3385_v53, %v3384_v12  ;;  %v2836_v1 = vadd.f32 %v2835_v28, %v2834_v7  ;;  %v6081_v40 = vmax.f32 %v5869_v34, 0.0  ;;  %v2949_v12 = vrot.slane %v2948_v29, 4 }
 0x232   : > { %v3395_v5 = vmul.f32 %v6077_v59, %v5815_v14 }
 0x233   : > { %v3387_v8 = vrot.slane %v3386_v20, 4  ;;  %v2837_v53 = vrot.slane %v2836_v1, 4  ;;  %v3394_v7 = vmul.f32 %v6081_v40, %v5817_v51 }
 0x235   : > { %v3388_v4 = vadd.f32 %v3387_v8, %v3386_v20  ;;  %v3060_v20 = vadd.f32 %v3059_v62, %v3058_v39  ;;  %v3283_v8 = vmul.f32 %v6075_v16, %v5815_v14  ;;  %v2838_v24 = vadd.f32 %v2837_v53, %v2836_v1 }
 0x236   : > { %v2950_v62 = vadd.f32 %v2949_v12, %v2948_v29  ;;  %v3396_v39 = vadd.f32 %v3395_v5, %v3394_v7 }
 0x237   : > { %v3389_v26 = vrot.slane %v3388_v4, 2  ;;  %v2839_v44 = vrot.slane %v2838_v24, 2 }
 0x239   : > { %v3390_v50 = vadd.f32 %v3389_v26, %v3388_v4  ;;  %v3282_v4 = vmul.f32 %v6076_v41, %v5817_v51  ;;  %v3061_v26 = vrot.slane %v3060_v20, 4  ;;  %v3397_v41 = vrot.slane %v3396_v39, 4 }
 0x23a   : > { %v2840_v61 = vadd.f32 %v2839_v44, %v2838_v24  ;;  %v2730_v24 = vstv %s3837_s16 }
 0x23b   : > { %v3391_v56 = vrot.slane %v3390_v50, 1  ;;  %v3062_v42 = vadd.f32 %v3061_v26, %v3060_v20  ;;  %v3398_v1 = vadd.f32 %v3397_v41, %v3396_v39 }
 0x23c   : > { %v2841_v29 = vrot.slane %v2840_v61, 1 }
 0x23d   : > { %v3392_v10 = vadd.f32 %v3391_v56, %v3390_v50  ;;  %v3284_v50 = vadd.f32 %v3283_v8, %v3282_v4  ;;  %v3173_v56 = vrot.slane %v3172_v33, 4  ;;  %v3063_v55 = vrot.slane %v3062_v42, 2 }
 0x23f   : > { %v3393_v13 = vadd.f32 %v3392_v10, %v5738_v54  ;;  %v2726_v10 = vrot.slane %v2725_v19, 2  ;;  %v3174_v16 = vadd.f32 %v3173_v56, %v3172_v33  ;;  %v3064_v4 = vadd.f32 %v3063_v55, %v3062_v42 }
 0x241   : > { %v5895_v28 = vsel %vm3524_vm8, %v3523_v52, %v3393_v13  ;;  %v3285_v52 = vrot.slane %v3284_v50, 4  ;;  %v2951_v13 = vrot.slane %v2950_v62, 2  ;;  %v2727_v59 = vadd.f32 %v2726_v10, %v2725_v19 }
 0x242   : > { %v3175_v9 = vrot.slane %v3174_v16, 2  ;;  %v3399_v19 = vrot.slane %v3398_v1, 2  ;;  %v2842_v10 = vadd.f32 %v2841_v29, %v2840_v61  ;;  %v3065_v44 = vrot.slane %v3064_v4, 1 }
 0x243   : > { %v3286_v0 = vadd.f32 %v3285_v52, %v3284_v50  ;;  %v2952_v40 = vadd.f32 %v2951_v13, %v2950_v62  ;;  %v2728_v53 = vrot.slane %v2727_v59, 1 }
 0x244   : > { %v3176_v7 = vadd.f32 %v3175_v9, %v3174_v16  ;;  %v3400_v9 = vadd.f32 %v3399_v19, %v3398_v1 }
 0x245   : > { %v3287_v20 = vrot.slane %v3286_v0, 2  ;;  %v2953_v33 = vrot.slane %v2952_v40, 1  ;;  %v2729_v62 = vadd.f32 %v2728_v53, %v2727_v59 }
 0x246   : > { %v3177_v52 = vrot.slane %v3176_v7, 1 }
 0x247   : > { %v3288_v55 = vadd.f32 %v3287_v20, %v3286_v0  ;;  %v2954_v16 = vadd.f32 %v2953_v33, %v2952_v40  ;;  %v3066_v0 = vadd.f32 %v3065_v44, %v3064_v4 }
 0x248   : > { %v3178_v29 = vadd.f32 %v3177_v52, %v3176_v7 }
 0x249   : > { %v3289_v53 = vrot.slane %v3288_v55, 1  ;;  %v2955_v40 = vadd.f32 %v2954_v16, %v2730_v24  ;;  %v3067_v33 = vadd.f32 %v3066_v0, %v2730_v24 }
 0x24b   : > { %v4096_v37 = vpop.f32.mrb[12].mxu1 }
 0x24c   : > { %v3479_v12 = vadd.f32 %v4096_v37, %v5728_v31  ;;  %v3473_v8 = vpop.f32.mrb[13].mxu1  ;;  %v2843_v37 = vadd.f32 %v2842_v10, %v2730_v24 }
 0x24d   : > { %v3474_v5 = vadd.f32 %v3473_v8, %v5722_v48 }
 0x24e   : > { %v3493_v26 = vmax.f32 %v3479_v12, 0.0  ;;  %v3401_v12 = vrot.slane %v3400_v9, 1 }
 0x24f   : > { %v3492_v56 = vmax.f32 %v3474_v5, 0.0  ;;  %v4099_v50 = vpop.f32.mrb[14].mxu1  ;;  %v2844_v5 = vmax.f32 %v2843_v37, 0.0 }
 0x250   : > { %v3497_v41 = vmul.f32 %v3493_v26, %v5734_v63  ;;  %v5907_v39 = vadd.f32 %v4099_v50, %v5777_v32  ;;  %v3483_v31 = vpop.f32.mrb[15].mxu1  ;;  %v2731_v63 = vadd.f32 %v2730_v24, %v2729_v62  ;;  %v3290_v26 = vadd.f32 %v3289_v53, %v3288_v55 }
 0x251   : > { %v3496_v42 = vmul.f32 %v3492_v56, %v5726_v3  ;;  %v5911_v48 = vadd.f32 %v3483_v31, %v5780_v6  ;;  %v2956_v50 = vmax.f32 %v2955_v40, 0.0  ;;  %v3402_v4 = vadd.f32 %v3401_v12, %v3400_v9 }
 0x252   : > { %v3495_v13 = vmax.f32 %v5907_v39, 0.0  ;;  %v2732_v20 = vmax.f32 %v2731_v63, 0.0  ;;  %v3068_v31 = vmax.f32 %v3067_v33, 0.0 }
 0x253   : > { %v3498_v59 = vadd.f32 %v3497_v41, %v3496_v42  ;;  %v3494_v61 = vmax.f32 %v5911_v48, 0.0  ;;  %v3403_v52 = vadd.f32 %v3402_v4, %v2730_v24 }
 0x254   : > { %v3507_v32 = vmul.f32 %v3495_v13, %v5815_v14  ;;  %v3179_v14 = vadd.f32 %v3178_v29, %v2730_v24  ;;  %v3527_v41 = vsel %vm6111_vm15, %v2732_v20, %v2844_v5 }
 0x255   : > { %v3499_v3 = vrot.slane %v3498_v59, 4  ;;  %v3506_v6 = vmul.f32 %v3494_v61, %v5817_v51  ;;  %v3291_v51 = vadd.f32 %v3290_v26, %v2730_v24  ;;  %v3528_v42 = vsel %vm6112_vm7, %v3527_v41, %v2956_v50 }
 0x256   : > { %v3180_v16 = vmax.f32 %v3179_v14, 0.0  ;;  %v3529_v55 = vsel %vm780_vm3, %v3528_v42, %v3068_v31  ;;  %v3404_v53 = vmax.f32 %v3403_v52, 0.0 }
 0x257   : > { %v3500_v1 = vadd.f32 %v3499_v3, %v3498_v59  ;;  %v3508_v8 = vadd.f32 %v3507_v32, %v3506_v6  ;;  %v3292_v37 = vmax.f32 %v3291_v51, 0.0 }
 0x258   : > { %v3530_v0 = vsel %vm3520_vm9, %v3529_v55, %v3180_v16 }
 0x259   : > { %v3501_v19 = vrot.slane %v3500_v1, 2  ;;  %v3509_v56 = vrot.slane %v3508_v8, 4  ;;  %v3531_v29 = vsel %vm3522_vm13, %v3530_v0, %v3292_v37 }
 0x25b   : > { %v3502_v62 = vadd.f32 %v3501_v19, %v3500_v1  ;;  %v3510_v10 = vadd.f32 %v3509_v56, %v3508_v8  ;;  %v3532_v8 = vsel %vm3524_vm8, %v3531_v29, %v3404_v53 }
 0x25d   : > { %v3503_v44 = vrot.slane %v3502_v62, 1  ;;  %v3511_v7 = vrot.slane %v3510_v10, 2 }
 0x25f   : > { %v3504_v59 = vadd.f32 %v3503_v44, %v3502_v62  ;;  %v3512_v63 = vadd.f32 %v3511_v7, %v3510_v10 }
 0x261   : > { %v3505_v32 = vadd.f32 %v3504_v59, %v5738_v54  ;;  %v3513_v9 = vrot.slane %v3512_v63, 1 }
 0x263   : > { %v3526_v3 = vsel %vm2557_vm14, %v5895_v28, %v3505_v32  ;;  %v3514_v6 = vadd.f32 %v3513_v9, %v3512_v63 }
 0x264   : > { %v3534_v40 = vrot.slane %v3526_v3, 4 }
 0x265   : > { %v3515_v12 = vadd.f32 %v3514_v6, %v2730_v24  ;;  %v593_v6 = vld [vmem:[%s554_s28] sm:$0xff]  ;;  %s4406_s28 = smov [#allocation7]  }
 0x266   : > { %v3535_v1 = vmax.f32 %v3526_v3, %v3534_v40  ;;  %s4302_s29 = sshll.u32 %s4406_s28, 4  ;;  %s4303_s29 = int_to_ptr.vmem [resolvable:$false] %s4302_s29 }
 0x267   : > { %v3516_v20 = vmax.f32 %v3515_v12, 0.0  ;;  %v3594_v12 = vsub.s32 1, %v4583_v27  ;;  %s4304_s16 = scalar_lea.vmem %s4303_s29, 512  ;;  %p4305_p0 = scmp.lt.s32.totalorder %s5978_s14, %s4303_s29 }
 0x268   : > { %v3536_v5 = vrot.slane %v3535_v1, 2  ;;  %p4306_p1 = scmp.lt.s32.totalorder %s4304_s16, %s4298_s27 }
 0x269   : > { %v3533_v33 = vsel %vm2557_vm14, %v3532_v8, %v3516_v20  ;;  %v3610_v20 = vsub.s32 3, %v4583_v27 }
 0x26a   : > { %v3537_v54 = vmax.f32 %v3535_v1, %v3536_v5  ;;  %v3569_v26 = vrot.slane %v3533_v33, 4  ;;  %v3602_v1 = vsub.s32 2, %v4583_v27  ;;  %p4307_p2 = por %p4306_p1, %p4305_p0 }
 0x26c   : > { %v3538_v19 = vrot.slane %v3537_v54, 1  ;;  %v3570_v56 = vmax.f32 %v3533_v33, %v3569_v26  ;;  %p4308_p3 = pnand %p4307_p2, %p4301_p13 }
 0x26e   : > { %v3539_v50 = vmax.f32 %v3537_v54, %v3538_v19  ;;  %v3571_v14 = vrot.slane %v3570_v56, 2 }
 0x270   : > { %v3540_v4 = vsub.f32 %v3526_v3, %v3539_v50  ;;  %v3572_v28 = vmax.f32 %v3570_v56, %v3571_v14  ;;  %v3626_v14 = vsub.s32 5, %v4583_v27 }
 0x272   : > { %v3541_v62 = vmul.f32 1.442695, %v3540_v4  ;;  %v3573_v10 = vrot.slane %v3572_v28, 1 }
 0x274   : > { %4263 = vpow2.f32 %v3541_v62  ;;  %v3574_v24 = vmax.f32 %v3572_v28, %v3573_v10 }
 0x276   : > { %v3575_v41 = vsub.f32 %v3533_v33, %v3574_v24  ;;  %v3618_v33 = vsub.s32 4, %v4583_v27 }
 0x278   : > { %v3576_v31 = vmul.f32 1.442695, %v3575_v41 }
 0x27a   : > { %4265 = vpow2.f32 %v3576_v31 }
 0x27e   : > { %v4264_v51 = vpop.eup %4263 }
 0x27f   : > { %v3543_v44 = vrot.slane %v4264_v51, 4 }
 0x281   : > { %v3544_v7 = vadd.f32 %v4264_v51, %v3543_v44 }
 0x283   : > { %v3545_v42 = vrot.slane %v3544_v7, 2 }
 0x284   : > { %v4266_v16 = vpop.eup %4265 }
 0x285   : > { %v3546_v52 = vadd.f32 %v3545_v42, %v3544_v7  ;;  %v3578_v59 = vrot.slane %v4266_v16, 4 }
 0x287   : > { %v3547_v63 = vrot.slane %v3546_v52, 1  ;;  %v3579_v55 = vadd.f32 %v4266_v16, %v3578_v59 }
 0x289   : > { %v3580_v37 = vrot.slane %v3579_v55, 2  ;;  %v3548_v32 = vadd.f32 %v3547_v63, %v3546_v52 }
 0x28b   : > { %v3581_v9 = vadd.f32 %v3580_v37, %v3579_v55  ;;  %4267 = vrcp.f32 %v3548_v32  ;;  %v6117_v55 = vmax.f32 %v5859_v46, 0.0 }
 0x28d   : > { %v3582_v0 = vrot.slane %v3581_v9, 1 }
 0x28f   : > { %v3583_v53 = vadd.f32 %v3582_v0, %v3581_v9  ;;  %v6118_v0 = vmax.f32 %v5869_v34, 0.0 }
 0x291   : > { %4269 = vrcp.f32 %v3583_v53  ;;  %v6119_v53 = vmax.f32 %v5866_v11, 0.0 }
 0x295   : > { %v4268_v3 = vpop.eup %4267 }
 0x296   : > { %v3550_v40 = vmul.f32 %v4268_v3, %v4264_v51 }
 0x298   : > { %v3551_v29 = vmul.f32 %v3550_v40, %v593_v6 }
 0x29a   : > { %v3552_v54 = vrot.slane %v3551_v29, 4 }
 0x29b   : > { %v4270_v8 = vpop.eup %4269 }
 0x29c   : > { %v3585_v5 = vmul.f32 %v4270_v8, %v4266_v16  ;;  %v3553_v41 = vmax.f32 %v3551_v29, %v3552_v54 }
 0x29e   : > { %v3589_v26 = vrot.slane %v3585_v5, %v4591_v30  ;;  %v3595_v19 = vrot.slane %v3585_v5, %v3594_v12  ;;  %v3603_v56 = vrot.slane %v3585_v5, %v3602_v1  ;;  %v3611_v50 = vrot.slane %v3585_v5, %v3610_v20 }
 0x29f   : > { %v3619_v24 = vrot.slane %v3585_v5, %v3618_v33  ;;  %v3634_v30 = vsub.s32 6, %v4583_v27  ;;  %v3554_v42 = vrot.slane %v3553_v41, 2  ;;  %v3643_v52 = vrot.slane %v3585_v5, %v3642_v36 }
 0x2a0   : > { %v3590_v4 = vmul.f32 %v3589_v26, %v2688_v47  ;;  %v3591_v28 = vmul.f32 %v3589_v26, %v2689_v17  ;;  %v3596_v62 = vmul.f32 %v3595_v19, %v2822_v38  ;;  %v3597_v10 = vmul.f32 %v3595_v19, %v2823_v43 }
 0x2a1   : > { %v3604_v25 = vmul.f32 %v3603_v56, %v2934_v15  ;;  %v3605_v45 = vmul.f32 %v3603_v56, %v2935_v23  ;;  %v3627_v47 = vrot.slane %v3585_v5, %v3626_v14  ;;  %v3612_v22 = vmul.f32 %v3611_v50, %v3046_v57 }
 0x2a2   : > { %v3598_v31 = vadd.f32 %v3596_v62, %v3590_v4  ;;  %v3599_v51 = vadd.f32 %v3597_v10, %v3591_v28  ;;  %v6113_v43 = vmax.f32 %v5822_v18, 0.0  ;;  %v3635_v7 = vrot.slane %v3585_v5, %v3634_v30 }
 0x2a3   : > { %v6114_v15 = vmax.f32 %v5835_v21, 0.0  ;;  %v6115_v23 = vmax.f32 %v5831_v49, 0.0  ;;  %v3555_v59 = vmax.f32 %v3553_v41, %v3554_v42  ;;  %v6116_v57 = vmax.f32 %v5862_v2, 0.0 }
 0x2a4   : > { %v3606_v17 = vadd.f32 %v3604_v25, %v3598_v31  ;;  %v3607_v38 = vadd.f32 %v3605_v45, %v3599_v51  ;;  %v3613_v44 = vmul.f32 %v3611_v50, %v6113_v43  ;;  %v3629_v37 = vmul.f32 %v3627_v47, %v6117_v55 }
 0x2a5   : > { %v3620_v58 = vmul.f32 %v3619_v24, %v6114_v15  ;;  %v3621_v27 = vmul.f32 %v3619_v24, %v6115_v23  ;;  %v3628_v18 = vmul.f32 %v3627_v47, %v6116_v57  ;;  %v3556_v32 = vrot.slane %v3555_v59, 1 }
 0x2a6   : > { %v3614_v16 = vadd.f32 %v3612_v22, %v3606_v17  ;;  %v3615_v60 = vadd.f32 %v3613_v44, %v3607_v38  ;;  %v3636_v49 = vmul.f32 %v3635_v7, %v6118_v0  ;;  %v3637_v3 = vmul.f32 %v3635_v7, %v6119_v53 }
 0x2a7   : > { %v3557_v6 = vmax.f32 %v3555_v59, %v3556_v32  ;;  %v3644_v46 = vmul.f32 %v3643_v52, %v3494_v61  ;;  %v3645_v12 = vmul.f32 %v3643_v52, %v3495_v13 }
 0x2a8   : > { %v3622_v63 = vadd.f32 %v3620_v58, %v3614_v16  ;;  %v3623_v35 = vadd.f32 %v3621_v27, %v3615_v60 }
 0x2a9   : > { %v3558_v11 = vsub.f32 %v3551_v29, %v3557_v6 }
 0x2aa   : > { %v3630_v21 = vadd.f32 %v3628_v18, %v3622_v63  ;;  %v3631_v9 = vadd.f32 %v3629_v37, %v3623_v35 }
 0x2ab   : > { %v3559_v8 = vmul.f32 1.442695, %v3558_v11 }
 0x2ac   : > { %v3638_v2 = vadd.f32 %v3636_v49, %v3630_v21  ;;  %v3639_v40 = vadd.f32 %v3637_v3, %v3631_v9 }
 0x2ae   : > { %v3646_v34 = vadd.f32 %v3644_v46, %v3638_v2  ;;  %v3647_v1 = vadd.f32 %v3645_v12, %v3639_v40 }
 0x2b0   : > { %3648 = vst [vmem:[%s543_s24] sm:$0xff] %v3646_v34  ;;  %3649 = vst [vmem:[%s543_s24 + $0x8] sm:$0xff] %v3647_v1 }
 0x2b1   : > { %4311 = shalt.err (!%p4308_p3)
}
 0x2b2   : > { %s4312_s24 = scalar_lea.hbm %s5985_s25, 256  ;;  %s4316_s28 = scalar_lea.hbm %s6070_s8, 512 }
 0x2b3   : > { %p4313_p4 = scmp.ne.s32.totalorder %s5985_s25, %s4312_s24  ;;  %p4317_p9 = scmp.lt.u32.totalorder %s5985_s25, %s6070_s8 }
 0x2b4   : > { %p4318_p5 = scmp.lt.u32.totalorder %s4316_s28, %s4312_s24  ;;  %p4320_p12 = scmp.lt.u32.totalorder %s4312_s24, %s5985_s25 }
 0x2b5   : > { %p4314_p7 = pnand %p4313_p4, %p6120_p11 }
 0x2b6   : > { %p4319_p10 = por %p4318_p5, %p4317_p9 }
 0x2b7   : > { %p4315_p8 = pneg %p4314_p7 }
 0x2b8   : > { %p4321_p13 = por %p4320_p12, %p4319_p10 }
 0x2ba   : > { %p4322_p0 = pnand %p4321_p13, %p4315_p8 }
 0x2bc   : > { %4325 = shalt.err (!%p4322_p0)
}
 0x2bd   : > { %s4407_s27 = smov 128   ;;  %s4408_s16 = smov 256   ;;  %4271 = vpow2.f32 %v3559_v8 }
 0x2be   : > { %s4409_s23 = smov 8   ;;  %s6121_s17 = sshll.u32 %s4564_s19, 3 }
 0x2bf   : > { %4168 = dma.vmem_to_hbm [thread:$0]  (%p6120_p11), %s5978_s14, 256, %s5985_s25, %s3652_s26, %s4407_s27, %s4408_s16, %s4409_s23  }
 0x2c0   : > { %s550_s24 = scalar_lea.vmem [#allocation8], %s6121_s17  ;;  %s6122_s28 = sshll.u32 %s4482_s13, 7 }
 0x2c1   : > { %s3685_s22 = sshll.u32 %s550_s24, 4  ;;  %s6018_s14 = scalar_lea.hbm %s6071_s9, %s6122_s28  ;;  %s6020_s22 = int_to_ptr.vmem [resolvable:$true] %s3685_s22 }
 0x2c2   : > { %s3657_s25 = scalar_lea.sflag [#allocation9], %s4564_s19  ;;  %s4326_s26 = scalar_lea.vmem %s6020_s22, 128 }
 0x2c3   : > { %p4327_p1 = scmp.ne.s32.totalorder %s6020_s22, %s4326_s26  ;;  %s4410_s27 = smov [#allocation8]  }
 0x2c4   : > { %s4330_s16 = sshll.u32 %s4410_s27, 4  ;;  %s4331_s16 = int_to_ptr.vmem [resolvable:$false] %s4330_s16 }
 0x2c5   : > { %p4328_p2 = pnand %p4327_p1, %p6120_p11  ;;  %s4332_s13 = scalar_lea.vmem %s4331_s16, 256 }
 0x2c6   : > { %p4333_p4 = scmp.lt.s32.totalorder %s6020_s22, %s4331_s16  ;;  %p4334_p7 = scmp.lt.s32.totalorder %s4332_s13, %s4326_s26 }
 0x2c7   : > { %v4272_v39 = vpop.eup %4271  ;;  %p4329_p3 = pneg %p4328_p2 }
 0x2c8   : > { %v3561_v48 = vrot.slane %v4272_v39, 4  ;;  %p4335_p8 = por %p4334_p7, %p4333_p4 }
 0x2ca   : > { %v3562_v13 = vadd.f32 %v4272_v39, %v3561_v48  ;;  %p4336_p9 = pnand %p4335_p8, %p4329_p3 }
 0x2cc   : > { %v3563_v61 = vrot.slane %v3562_v13, 2 }
 0x2ce   : > { %v3564_v29 = vadd.f32 %v3563_v61, %v3562_v13 }
 0x2d0   : > { %v3565_v20 = vrot.slane %v3564_v29, 1 }
 0x2d2   : > { %v3566_v5 = vadd.f32 %v3565_v20, %v3564_v29 }
 0x2d4   : > { %4273 = vrcp.f32 %v3566_v5 }
 0x2de   : > { %v4274_v33 = vpop.eup %4273 }
 0x2df   : > { %v3568_v54 = vmul.f32 %v4274_v33, %v4272_v39 }
 0x2e1   : > { %3650 = vst [vmem:[%s550_s24] sm:$0xff] %v3568_v54 }
 0x2e2   : > { %4339 = shalt.err (!%p4336_p9)
}
 0x2e3   : > { %s4340_s0 = scalar_lea.hbm %s6018_s14, 128  ;;  %s4344_s17 = scalar_lea.hbm %s6071_s9, 256 }
 0x2e4   : > { %p4341_p5 = scmp.ne.s32.totalorder %s6018_s14, %s4340_s0  ;;  %p4345_p13 = scmp.lt.u32.totalorder %s6018_s14, %s6071_s9 }
 0x2e5   : > { %p4346_p0 = scmp.lt.u32.totalorder %s4344_s17, %s4340_s0  ;;  %p4348_p2 = scmp.lt.u32.totalorder %s4340_s0, %s6018_s14 }
 0x2e6   : > { %p4342_p10 = pnand %p4341_p5, %p6120_p11 }
 0x2e7   : > { %p4347_p1 = por %p4346_p0, %p4345_p13 }
 0x2e8   : > { %p4343_p12 = pneg %p4342_p10 }
 0x2e9   : > { %p4349_p3 = por %p4348_p2, %p4347_p1 }
 0x2eb   : > { %p4350_p4 = pnand %p4349_p3, %p4343_p12 }
 0x2ed   : > { %4353 = shalt.err (!%p4350_p4)
}
 0x2ee   : > { %4169 = dma.vmem_to_hbm [thread:$0]  (%p6120_p11), %s6020_s22, 128, %s6018_s14, %s3657_s25  }
 0x2ef PF: > { %s3697_s29 = sand.u32 1, %s4384_s30   ;;  %p6123_p7 = scmp.ne.s32.totalorder %s6087_s21, 0 }
 0x2f0   : > { %s3698_s26 = scalar_lea.sflag [#allocation5], %s3697_s29 }
 0x2f1   : > { %p4177_p8 = pnand %p3826_p6, %p6123_p7 }
 0x2f3   : > { %4375 = dma.done.wait (!%p4177_p8), %s3698_s26, 256  }
 0x2f4   : > { %4377 = vsyncadd (!%p4177_p8), %s3698_s26, 4294967040  ;;  %s3707_s27 = scalar_lea.sflag [#allocation9], %s3697_s29 }
 0x2f5   : > { %4379 = dma.done.wait (!%p4177_p8), %s3707_s27, 128  }
 0x2f6   : > { %4381 = vsyncadd (!%p4177_p8), %s3707_s27, 4294967168  ;;  %p24_p11 = scmp.ge.s32.totalorder %s4486_s15, 4   ;;  %s6124_s30 = smov %s4388_s10 }
 0x2f7   : > { %s6125_s10 = smov %s4392_s11  ;;  %s6126_s11 = smov %s4498_s18 }
 0x2f8   : > { %s6127_s12 = smov %s4486_s15  ;;  %26 = sbr.rel (!%p24_p11) target bundleno = 8 (0x8), region = 204 }
 0x2ff   :  { %3712 = vsyncpa [#allocation5], 1 }
 0x300   :  { %3714 = vsyncpa [#allocation5 + $0x1], 1 }
 0x301   :  { %3715 = vsyncpa [#allocation9], 1 }
 0x302   :  { %3717 = vsyncpa [#allocation9 + $0x1], 1 }
 0x303   :  { %3718 = vsyncpa [#allocation6], 1 }
 0x304   :  { %3720 = vsyncpa [#allocation6 + $0x1], 1 }

</bundles_post_ra>
